<compile_context>
chip_gen: v5e
topology: v5e:2x2
jax: 0.10.0
libtpu: 0.0.40
codegen_flags: <defaults>
</compile_context>

<pallas_src>
import functools

import jax
import jax.numpy as jnp
from jax.experimental import pallas as pl
from jax.experimental.pallas import tpu as pltpu

NUM1 = 50      # hidden width of the G branch
NUM2 = 50      # hidden width of the M branch
HID  = 128     # fused hidden width: G -> features [0:NUM1), M -> [NUM1:NUM1+NUM2)
TM_MAX = 1024  # max samples per kernel tile (v6e/v7x); 512 on v5e and older
TM_MIN = 256

assert NUM1 + NUM2 <= HID


def _softplus(x):
    # numerically-stable softplus(x) = log(1 + exp(x)); exp/log/max only
    # (safe to lower at bf16 as well as f32).
    return jnp.maximum(x, 0.0) + jnp.log(1.0 + jnp.exp(-jnp.abs(x)))


def cdfnet_kernel(x_ref, wh_ref, c_ref, w4_ref, scal_ref, o_ref, *, act_dtype):
    f32, bf16 = jnp.float32, jnp.bfloat16
    lam = scal_ref[0]
    dt  = scal_ref[1]
    Kn  = scal_ref[2]
    b4g = scal_ref[3]   # bias of the G output head
    b4m = scal_ref[4]   # bias of the M output head

    # Lane-dense inputs: rows are u, q, u_p, u_m over TM samples (samples = lanes).
    x = x_ref[...]                         # (4, TM) f32
    u, q, up, um = x[0:1, :], x[1:2, :], x[2:3, :], x[3:4, :]

    c = c_ref[...]                         # (HID, 8) f32 feature-column constants
    a_u, a_q = c[:, 0:1], c[:, 1:2]        # layer-0 weights (u feeds only the M block)
    b0, b1, b2, b3 = c[:, 2:3], c[:, 3:4], c[:, 4:5], c[:, 5:6]

    def act(pre_f32):                      # bf16 on v6e/v7x, f32 on v5e
        return jnp.tanh(pre_f32.astype(act_dtype))

    def mm(w_bf16, a):                     # (H,H)x(H,TM) MXU matmul, f32 accumulation
        return jnp.dot(w_bf16, a.astype(bf16), preferred_element_type=f32)

    # Layer 0 (fan-in 1 / 2) stays on the VPU in f32: outer-product broadcasts.
    z = act(a_u * u + a_q * q + b0)                      # (HID, TM)
    z = act(mm(wh_ref[0], z) + b1)                       # layer 1 (G|M block-diag)
    z = act(mm(wh_ref[1], z) + b2)                       # layer 2 (G|M block-diag)
    y = (mm(wh_ref[2], z) + b3).astype(act_dtype)        # layer 3 pre-activation
    feat = jax.lax.broadcasted_iota(jnp.int32, y.shape, 0)
    z = jnp.where(feat < NUM1, jnp.tanh(y), _softplus(y))  # G: tanh, M: softplus

    # Both 1-wide heads as a single tiny MXU matmul; result rows are lane-dense
    # per-sample vectors (rows 2..7 of W4 are zero padding).
    heads = jnp.dot(w4_ref[...], z.astype(bf16), preferred_element_type=f32)  # (8, TM)
    g = _softplus(heads[0:1, :] + b4g)                   # (1, TM) f32
    m = _softplus(heads[1:2, :] + b4m)                   # (1, TM) f32

    # Lane-dense tail; divides replaced with approximate reciprocals.
    G_c = -(Kn * Kn) * g
    theta_diff = (um - up) * pl.reciprocal(up * um, approx=True)   # 1/up - 1/um
    num = G_c * q - (0.5 * lam) * theta_diff
    den = G_c - dt * m
    o_ref[...] = (num * pl.reciprocal(den, approx=True)).reshape(o_ref.shape)


def init_params(key):
    """PyTorch nn.Linear default init: U(-1/sqrt(fan_in), +1/sqrt(fan_in)).
    Weights stored (in_features, out_features); biases (1, out_features)."""
    dims = [(1, NUM1), (NUM1, NUM1), (NUM1, NUM1), (NUM1, NUM1), (NUM1, 1),   # G layers
            (2, NUM2), (NUM2, NUM2), (NUM2, NUM2), (NUM2, NUM2), (NUM2, 1)]   # M layers
    keys = jax.random.split(key, 2 * len(dims))
    params = []
    for li, (fin, fout) in enumerate(dims):
        bound = 1.0 / (fin ** 0.5)
        W = jax.random.uniform(keys[2 * li],     (fin, fout), jnp.float32, -bound, bound)
        b = jax.random.uniform(keys[2 * li + 1], (1,  fout),  jnp.float32, -bound, bound)
        params.append((W, b))
    return params


def pack_params(params):
    """Pack the 10 (W, b) pairs into the fused, feature-major kernel constants."""
    g0, g1, g2, g3, g4, m0, m1, m2, m3, m4 = params
    f32 = jnp.float32

    def blockdiag_T(wg, wm):
        # transposed (out_features x in_features) block-diagonal hidden weight
        W = jnp.zeros((HID, HID), f32)
        W = W.at[:NUM1, :NUM1].set(wg.T)
        W = W.at[NUM1:NUM1 + NUM2, NUM1:NUM1 + NUM2].set(wm.T)
        return W

    WhT = jnp.stack([blockdiag_T(g1[0], m1[0]),
                     blockdiag_T(g2[0], m2[0]),
                     blockdiag_T(g3[0], m3[0])]).astype(jnp.bfloat16)   # (3,128,128)

    def featvec(vg=None, vm=None):
        v = jnp.zeros((HID,), f32)
        if vg is not None:
            v = v.at[:NUM1].set(vg.reshape(-1))
        if vm is not None:
            v = v.at[NUM1:NUM1 + NUM2].set(vm.reshape(-1))
        return v

    # (HID, 8) f32 feature columns: a_u, a_q, b0, b1, b2, b3, 0, 0
    C = jnp.stack([
        featvec(None,        m0[0][0]),   # a_u  (u only feeds the M branch)
        featvec(g0[0][0],    m0[0][1]),   # a_q
        featvec(g0[1],       m0[1]),      # b0
        featvec(g1[1],       m1[1]),      # b1
        featvec(g2[1],       m2[1]),      # b2
        featvec(g3[1],       m3[1]),      # b3
        jnp.zeros((HID,), f32),
        jnp.zeros((HID,), f32),
    ], axis=1)                            # (HID, 8)

    # (8, HID) bf16 head weights as MXU LHS rows: row 0 = G head, row 1 = M head.
    W4 = jnp.zeros((8, HID), f32)
    W4 = W4.at[0, :NUM1].set(g4[0][:, 0])
    W4 = W4.at[1, NUM1:NUM1 + NUM2].set(m4[0][:, 0])
    W4 = W4.astype(jnp.bfloat16)

    head_b = jnp.array([g4[1][0, 0], m4[1][0, 0]], f32)                # (2,)
    return WhT, C, W4, head_b


def _device_kind():
    try:
        return jax.devices()[0].device_kind.lower()
    except Exception:
        return ""


def _is_old_gen(kind=None):
    kind = _device_kind() if kind is None else kind
    # v5e and older: no bf16 VPU/EUP -> keep activations f32; smaller tiles.
    return any(t in kind for t in ("v2", "v3", "v4", "v5"))


def _num_tensorcores(kind=None):
    kind = _device_kind() if kind is None else kind
    return 2 if ("v7" in kind or "7x" in kind) else 1


def _default_act_dtype():
    return jnp.float32 if _is_old_gen() else jnp.bfloat16


def _pick_tile_rows(N, num_cores, tm_max):
    """Largest tile <= tm_max with >= 2 grid steps per TensorCore when N allows
    (keeps per-core pipelining and balances v7x's two cores)."""
    tm = tm_max
    min_steps = 2 * max(1, num_cores)
    while tm > TM_MIN and (N + tm - 1) // tm < min_steps:
        tm //= 2
    return tm


def cdfnet_forward(u, q, lam, dt, K, n, Kn, params, tile_rows=None, act_dtype=None):
    f32 = jnp.float32
    kind = _device_kind()
    if act_dtype is None:
        act_dtype = jnp.float32 if _is_old_gen(kind) else jnp.bfloat16
    tm_max = 512 if _is_old_gen(kind) else TM_MAX

    WhT, C, W4, head_b = pack_params(params)

    # glue: circular shifts, flattening, lane-dense packing, padding (layout only)
    u_p = jnp.roll(u, -1, axis=1)   # cat([u[:,1:],  u[:,0:1]], dim=1)
    u_m = jnp.roll(u,  1, axis=1)   # cat([u[:,-1:], u[:,0:-1]], dim=1)
    N = K * n
    X = jnp.stack([u.reshape(N), q.reshape(N),
                   u_p.reshape(N), u_m.reshape(N)], axis=0).astype(f32)   # (4, N)

    TM = tile_rows if tile_rows is not None else _pick_tile_rows(N, _num_tensorcores(kind), tm_max)
    assert TM % 128 == 0, "tile_rows must be a multiple of 128"
    grid_n = (N + TM - 1) // TM
    N_pad = grid_n * TM
    pad = N_pad - N
    if pad:
        # padded samples: u = up = um = 1, q = 0  -> finite, discarded later
        pad_cols = jnp.tile(jnp.array([[1.0], [0.0], [1.0], [1.0]], f32), (1, pad))
        X = jnp.concatenate([X, pad_cols], axis=1)

    scal = jnp.concatenate([jnp.array([lam, dt, Kn], f32), head_b])       # (5,)

    kernel = functools.partial(cdfnet_kernel, act_dtype=act_dtype)
    out = pl.pallas_call(
        kernel,
        out_shape=jax.ShapeDtypeStruct((grid_n, 1, TM), jnp.float32),
        grid=(grid_n,),
        in_specs=[
            pl.BlockSpec((4, TM), lambda i: (0, i)),                  # lane-dense rows
            pl.BlockSpec((3, HID, HID), lambda i: (0, 0, 0)),         # fused bf16 weights (resident)
            pl.BlockSpec((HID, 8), lambda i: (0, 0)),                 # f32 feature constants (resident)
            pl.BlockSpec((8, HID), lambda i: (0, 0)),                 # bf16 head weights (resident)
            pl.BlockSpec(memory_space=pltpu.MemorySpace.SMEM),        # scalars
        ],
        out_specs=pl.BlockSpec((1, 1, TM), lambda i: (i, 0, 0)),      # full-128-lane store
        compiler_params=pltpu.CompilerParams(dimension_semantics=("parallel",)),
    )(X, WhT, C, W4, scal)
    return out.reshape(N_pad)[:N].reshape(K, n)


def cdfnet_reference_matched(u, q, lam, dt, K, n, Kn, params, act_dtype):
    """Plain-JAX mirror of the fused kernel math (same precisions / cast points);
    only the approximate reciprocals are replaced with exact division."""
    f32, bf16 = jnp.float32, jnp.bfloat16
    WhT, C, W4, head_b = pack_params(params)
    N = K * n
    u_p = jnp.roll(u, -1, axis=1).reshape(1, N)
    u_m = jnp.roll(u,  1, axis=1).reshape(1, N)
    ur, qr = u.reshape(1, N), q.reshape(1, N)

    a_u, a_q, b0, b1, b2, b3 = (C[:, k:k + 1] for k in range(6))
    act = lambda pre: jnp.tanh(pre.astype(act_dtype))
    mm = lambda w, a: jnp.dot(w, a.astype(bf16), preferred_element_type=f32)

    z = act(a_u * ur + a_q * qr + b0)
    z = act(mm(WhT[0], z) + b1)
    z = act(mm(WhT[1], z) + b2)
    y = (mm(WhT[2], z) + b3).astype(act_dtype)
    feat = jnp.arange(HID)[:, None]
    z = jnp.where(feat < NUM1, jnp.tanh(y), _softplus(y))

    heads = jnp.dot(W4, z.astype(bf16), preferred_element_type=f32)
    g = _softplus(heads[0:1, :] + head_b[0])
    m = _softplus(heads[1:2, :] + head_b[1])

    G_c = -(Kn * Kn) * g
    theta = (u_m - u_p) / (u_p * u_m)
    q1 = (G_c * qr - 0.5 * lam * theta) / (G_c - dt * m)
    return q1.reshape(K, n)


def cdfnet_reference_f32(u, q, lam, dt, K, n, Kn, params):
    """Pure-f32 PyTorch-equivalent forward (the semantic spec)."""
    g0, g1, g2, g3, g4, m0, m1, m2, m3, m4 = params
    lin = lambda x, p: x @ p[0] + p[1]

    u_p = jnp.roll(u, -1, axis=1)
    u_m = jnp.roll(u,  1, axis=1)
    qf, uf = q.reshape(K * n, 1), u.reshape(K * n, 1)

    z = jnp.tanh(lin(qf, g0))
    z = jnp.tanh(lin(z, g1)); z = jnp.tanh(lin(z, g2)); z = jnp.tanh(lin(z, g3))
    G_c = -(_softplus(lin(z, g4)) * Kn * Kn).reshape(K, n)

    x = jnp.concatenate([uf, qf], axis=1)
    z = jnp.tanh(lin(x, m0))
    z = jnp.tanh(lin(z, m1)); z = jnp.tanh(lin(z, m2))
    z = _softplus(lin(z, m3))
    M_c = _softplus(lin(z, m4)).reshape(K, n)

    return (G_c * q - 0.5 * lam * (1.0 / u_p - 1.0 / u_m)) / (G_c - dt * M_c)


if __name__ == "__main__":
    key = jax.random.PRNGKey(0)
    kp, ku, kq = jax.random.split(key, 3)

    # K cells x n quadrature points -> N = 1024 samples
    K, n = 8, 128
    lam, dt, Kn = 0.5, 0.01, 0.1

    params = init_params(kp)
    u = jax.random.uniform(ku, (K, n), jnp.float32, 0.5, 1.5)   # positive (it gets inverted)
    q = jax.random.uniform(kq, (K, n), jnp.float32, -1.0, 1.0)

    act_dtype = _default_act_dtype()

    q1 = cdfnet_forward(u, q, lam, dt, K, n, Kn, params, act_dtype=act_dtype)
    q1 = jax.block_until_ready(q1)
    assert q1.shape == (K, n)
    assert bool(jnp.all(jnp.isfinite(q1))), "non-finite output"

    # tight check vs a reference mirroring the kernel's fused math and precisions
    # (tolerance leaves room for the approx-reciprocal error, ~2^-12 relative)
    q1_match = cdfnet_reference_matched(u, q, lam, dt, K, n, Kn, params, act_dtype)
    assert jnp.allclose(q1, q1_match, atol=2e-2, rtol=2e-2), "mismatch vs matched-precision reference"

    # sanity check vs the pure-f32 (PyTorch-equivalent) reference
    q1_f32 = cdfnet_reference_f32(u, q, lam, dt, K, n, Kn, params)
    assert jnp.allclose(q1, q1_f32, atol=5e-2, rtol=1e-1), "mismatch vs f32 reference"

    print("KERNEL_OK")
</pallas_src>

<mosaic_0001>
module attributes {stable_mosaic.version = 11 : i64} {
  func.func @cdfnet_kernel(%arg0: i32, %arg1: memref<4x512xf32, #tpu.memory_space<vmem>>, %arg2: memref<3x128x128xbf16, #tpu.memory_space<vmem>>, %arg3: memref<128x8xf32, #tpu.memory_space<vmem>>, %arg4: memref<8x128xbf16, #tpu.memory_space<vmem>>, %arg5: memref<5xf32, #tpu.memory_space<smem>>, %arg6: memref<1x1x512xf32, #tpu.memory_space<vmem>>) attributes {dimension_semantics = [#tpu.dimension_semantics<parallel>], iteration_bounds = array<i64: 2>, scalar_prefetch = 0 : i64, scratch_operands = 0 : i64, tpu.core_type = #tpu.core_type<tc>, window_params = [{transform_indices = @transform_0, window_bounds = array<i64: 4, 512>}, {pipeline_mode = #tpu.pipeline_mode<synchronous>, transform_indices = @transform_1, window_bounds = array<i64: 3, 128, 128>}, {pipeline_mode = #tpu.pipeline_mode<synchronous>, transform_indices = @transform_2, window_bounds = array<i64: 128, 8>}, {pipeline_mode = #tpu.pipeline_mode<synchronous>, transform_indices = @transform_3, window_bounds = array<i64: 8, 128>}, {transform_indices = @transform_4, window_bounds = array<i64: 5>}, {transform_indices = @transform_5, window_bounds = array<i64: 1, 1, 512>}]} {
    %c0 = arith.constant 0 : index
    %0 = memref.load %arg5[%c0] : memref<5xf32, #tpu.memory_space<smem>>
    %c1 = arith.constant 1 : index
    %1 = memref.load %arg5[%c1] : memref<5xf32, #tpu.memory_space<smem>>
    %c2 = arith.constant 2 : index
    %2 = memref.load %arg5[%c2] : memref<5xf32, #tpu.memory_space<smem>>
    %c3 = arith.constant 3 : index
    %3 = memref.load %arg5[%c3] : memref<5xf32, #tpu.memory_space<smem>>
    %c4 = arith.constant 4 : index
    %4 = memref.load %arg5[%c4] : memref<5xf32, #tpu.memory_space<smem>>
    %c0_0 = arith.constant 0 : index
    %c0_1 = arith.constant 0 : index
    %5 = vector.load %arg1[%c0_0, %c0_1] : memref<4x512xf32, #tpu.memory_space<vmem>>, vector<4x512xf32>
    %6 = vector.extract_strided_slice %5 {offsets = [0, 0], sizes = [1, 512], strides = [1, 1]} : vector<4x512xf32> to vector<1x512xf32>
    %7 = vector.extract_strided_slice %5 {offsets = [1, 0], sizes = [1, 512], strides = [1, 1]} : vector<4x512xf32> to vector<1x512xf32>
    %8 = vector.extract_strided_slice %5 {offsets = [2, 0], sizes = [1, 512], strides = [1, 1]} : vector<4x512xf32> to vector<1x512xf32>
    %9 = vector.extract_strided_slice %5 {offsets = [3, 0], sizes = [1, 512], strides = [1, 1]} : vector<4x512xf32> to vector<1x512xf32>
    %c0_2 = arith.constant 0 : index
    %c0_3 = arith.constant 0 : index
    %10 = vector.load %arg3[%c0_2, %c0_3] : memref<128x8xf32, #tpu.memory_space<vmem>>, vector<128x8xf32>
    %11 = vector.extract_strided_slice %10 {offsets = [0, 0], sizes = [128, 1], strides = [1, 1]} : vector<128x8xf32> to vector<128x1xf32>
    %12 = vector.extract_strided_slice %10 {offsets = [0, 1], sizes = [128, 1], strides = [1, 1]} : vector<128x8xf32> to vector<128x1xf32>
    %13 = vector.extract_strided_slice %10 {offsets = [0, 2], sizes = [128, 1], strides = [1, 1]} : vector<128x8xf32> to vector<128x1xf32>
    %14 = vector.extract_strided_slice %10 {offsets = [0, 3], sizes = [128, 1], strides = [1, 1]} : vector<128x8xf32> to vector<128x1xf32>
    %15 = vector.extract_strided_slice %10 {offsets = [0, 4], sizes = [128, 1], strides = [1, 1]} : vector<128x8xf32> to vector<128x1xf32>
    %16 = vector.extract_strided_slice %10 {offsets = [0, 5], sizes = [128, 1], strides = [1, 1]} : vector<128x8xf32> to vector<128x1xf32>
    %17 = vector.broadcast %11 : vector<128x1xf32> to vector<128x512xf32>
    %18 = vector.broadcast %6 : vector<1x512xf32> to vector<128x512xf32>
    %19 = arith.mulf %17, %18 : vector<128x512xf32>
    %20 = vector.broadcast %12 : vector<128x1xf32> to vector<128x512xf32>
    %21 = vector.broadcast %7 : vector<1x512xf32> to vector<128x512xf32>
    %22 = arith.mulf %20, %21 : vector<128x512xf32>
    %23 = arith.addf %19, %22 : vector<128x512xf32>
    %24 = vector.broadcast %13 : vector<128x1xf32> to vector<128x512xf32>
    %25 = arith.addf %23, %24 : vector<128x512xf32>
    %26 = arith.truncf %25 : vector<128x512xf32> to vector<128x512xbf16>
    %27 = math.tanh %26 : vector<128x512xbf16>
    %c0_4 = arith.constant 0 : index
    %c0_5 = arith.constant 0 : index
    %c0_6 = arith.constant 0 : index
    %28 = vector.load %arg2[%c0_4, %c0_5, %c0_6] : memref<3x128x128xbf16, #tpu.memory_space<vmem>>, vector<1x128x128xbf16>
    %29 = vector.shape_cast %28 : vector<1x128x128xbf16> to vector<128x128xbf16>
    %cst = arith.constant dense<0.000000e+00> : vector<128x512xf32>
    %30 = tpu.matmul %29, %27, %cst {dimension_numbers = #tpu.dot_dimension_numbers<[1], [0], [0], [1], [0, 0, 1, 1], [], []>} : vector<128x128xbf16>, vector<128x512xbf16>, vector<128x512xf32> -> vector<128x512xf32>
    %31 = vector.broadcast %14 : vector<128x1xf32> to vector<128x512xf32>
    %32 = arith.addf %30, %31 : vector<128x512xf32>
    %33 = arith.truncf %32 : vector<128x512xf32> to vector<128x512xbf16>
    %34 = math.tanh %33 : vector<128x512xbf16>
    %c1_7 = arith.constant 1 : index
    %c0_8 = arith.constant 0 : index
    %c0_9 = arith.constant 0 : index
    %35 = vector.load %arg2[%c1_7, %c0_8, %c0_9] : memref<3x128x128xbf16, #tpu.memory_space<vmem>>, vector<1x128x128xbf16>
    %36 = vector.shape_cast %35 : vector<1x128x128xbf16> to vector<128x128xbf16>
    %cst_10 = arith.constant dense<0.000000e+00> : vector<128x512xf32>
    %37 = tpu.matmul %36, %34, %cst_10 {dimension_numbers = #tpu.dot_dimension_numbers<[1], [0], [0], [1], [0, 0, 1, 1], [], []>} : vector<128x128xbf16>, vector<128x512xbf16>, vector<128x512xf32> -> vector<128x512xf32>
    %38 = vector.broadcast %15 : vector<128x1xf32> to vector<128x512xf32>
    %39 = arith.addf %37, %38 : vector<128x512xf32>
    %40 = arith.truncf %39 : vector<128x512xf32> to vector<128x512xbf16>
    %41 = math.tanh %40 : vector<128x512xbf16>
    %c2_11 = arith.constant 2 : index
    %c0_12 = arith.constant 0 : index
    %c0_13 = arith.constant 0 : index
    %42 = vector.load %arg2[%c2_11, %c0_12, %c0_13] : memref<3x128x128xbf16, #tpu.memory_space<vmem>>, vector<1x128x128xbf16>
    %43 = vector.shape_cast %42 : vector<1x128x128xbf16> to vector<128x128xbf16>
    %cst_14 = arith.constant dense<0.000000e+00> : vector<128x512xf32>
    %44 = tpu.matmul %43, %41, %cst_14 {dimension_numbers = #tpu.dot_dimension_numbers<[1], [0], [0], [1], [0, 0, 1, 1], [], []>} : vector<128x128xbf16>, vector<128x512xbf16>, vector<128x512xf32> -> vector<128x512xf32>
    %45 = vector.broadcast %16 : vector<128x1xf32> to vector<128x512xf32>
    %46 = arith.addf %44, %45 : vector<128x512xf32>
    %47 = arith.truncf %46 : vector<128x512xf32> to vector<128x512xbf16>
    %48 = tpu.iota {dimensions = array<i32: 0>} : vector<128x512xi32>
    %c50_i32 = arith.constant 50 : i32
    %49 = vector.broadcast %c50_i32 : i32 to vector<128x512xi32>
    %50 = arith.cmpi slt, %48, %49 : vector<128x512xi32>
    %51 = math.tanh %47 : vector<128x512xbf16>
    %cst_15 = arith.constant 0.000000e+00 : bf16
    %52 = vector.broadcast %cst_15 : bf16 to vector<128x512xbf16>
    %53 = arith.maximumf %47, %52 : vector<128x512xbf16>
    %54 = math.absf %47 : vector<128x512xbf16>
    %cst_16 = arith.constant 0.000000e+00 : bf16
    %55 = vector.broadcast %cst_16 : bf16 to vector<128x512xbf16>
    %56 = arith.subf %55, %54 : vector<128x512xbf16>
    %57 = math.exp %56 : vector<128x512xbf16>
    %cst_17 = arith.constant 1.000000e+00 : bf16
    %58 = vector.broadcast %cst_17 : bf16 to vector<128x512xbf16>
    %59 = arith.addf %58, %57 : vector<128x512xbf16>
    %60 = math.log %59 : vector<128x512xbf16>
    %61 = arith.addf %53, %60 : vector<128x512xbf16>
    %62 = arith.select %50, %51, %61 : vector<128x512xi1>, vector<128x512xbf16>
    %c0_18 = arith.constant 0 : index
    %c0_19 = arith.constant 0 : index
    %63 = vector.load %arg4[%c0_18, %c0_19] : memref<8x128xbf16, #tpu.memory_space<vmem>>, vector<8x128xbf16>
    %cst_20 = arith.constant dense<0.000000e+00> : vector<8x512xf32>
    %64 = tpu.matmul %63, %62, %cst_20 {dimension_numbers = #tpu.dot_dimension_numbers<[1], [0], [0], [1], [0, 0, 1, 1], [], []>} : vector<8x128xbf16>, vector<128x512xbf16>, vector<8x512xf32> -> vector<8x512xf32>
    %65 = vector.extract_strided_slice %64 {offsets = [0, 0], sizes = [1, 512], strides = [1, 1]} : vector<8x512xf32> to vector<1x512xf32>
    %66 = vector.broadcast %3 : f32 to vector<1x512xf32>
    %67 = arith.addf %65, %66 : vector<1x512xf32>
    %cst_21 = arith.constant 0.000000e+00 : f32
    %68 = vector.broadcast %cst_21 : f32 to vector<1x512xf32>
    %69 = arith.maximumf %67, %68 : vector<1x512xf32>
    %70 = math.absf %67 : vector<1x512xf32>
    %cst_22 = arith.constant 0.000000e+00 : f32
    %71 = vector.broadcast %cst_22 : f32 to vector<1x512xf32>
    %72 = arith.subf %71, %70 : vector<1x512xf32>
    %73 = math.exp %72 : vector<1x512xf32>
    %cst_23 = arith.constant 1.000000e+00 : f32
    %74 = vector.broadcast %cst_23 : f32 to vector<1x512xf32>
    %75 = arith.addf %74, %73 : vector<1x512xf32>
    %76 = math.log %75 : vector<1x512xf32>
    %77 = arith.addf %69, %76 : vector<1x512xf32>
    %78 = vector.extract_strided_slice %64 {offsets = [1, 0], sizes = [1, 512], strides = [1, 1]} : vector<8x512xf32> to vector<1x512xf32>
    %79 = vector.broadcast %4 : f32 to vector<1x512xf32>
    %80 = arith.addf %78, %79 : vector<1x512xf32>
    %cst_24 = arith.constant 0.000000e+00 : f32
    %81 = vector.broadcast %cst_24 : f32 to vector<1x512xf32>
    %82 = arith.maximumf %80, %81 : vector<1x512xf32>
    %83 = math.absf %80 : vector<1x512xf32>
    %cst_25 = arith.constant 0.000000e+00 : f32
    %84 = vector.broadcast %cst_25 : f32 to vector<1x512xf32>
    %85 = arith.subf %84, %83 : vector<1x512xf32>
    %86 = math.exp %85 : vector<1x512xf32>
    %cst_26 = arith.constant 1.000000e+00 : f32
    %87 = vector.broadcast %cst_26 : f32 to vector<1x512xf32>
    %88 = arith.addf %87, %86 : vector<1x512xf32>
    %89 = math.log %88 : vector<1x512xf32>
    %90 = arith.addf %82, %89 : vector<1x512xf32>
    %91 = arith.mulf %2, %2 : f32
    %cst_27 = arith.constant 0.000000e+00 : f32
    %92 = arith.subf %cst_27, %91 : f32
    %93 = vector.broadcast %92 : f32 to vector<1x512xf32>
    %94 = arith.mulf %93, %77 : vector<1x512xf32>
    %95 = arith.subf %9, %8 : vector<1x512xf32>
    %96 = arith.mulf %8, %9 : vector<1x512xf32>
    %97 = tpu.reciprocal %96 {approx = true} : vector<1x512xf32> -> vector<1x512xf32>
    %98 = arith.mulf %95, %97 : vector<1x512xf32>
    %99 = arith.mulf %94, %7 : vector<1x512xf32>
    %cst_28 = arith.constant 5.000000e-01 : f32
    %100 = arith.mulf %cst_28, %0 : f32
    %101 = vector.broadcast %100 : f32 to vector<1x512xf32>
    %102 = arith.mulf %101, %98 : vector<1x512xf32>
    %103 = arith.subf %99, %102 : vector<1x512xf32>
    %104 = vector.broadcast %1 : f32 to vector<1x512xf32>
    %105 = arith.mulf %104, %90 : vector<1x512xf32>
    %106 = arith.subf %94, %105 : vector<1x512xf32>
    %107 = tpu.reciprocal %106 {approx = true} : vector<1x512xf32> -> vector<1x512xf32>
    %108 = arith.mulf %103, %107 : vector<1x512xf32>
    %109 = vector.shape_cast %108 : vector<1x512xf32> to vector<1x1x512xf32>
    %c0_29 = arith.constant 0 : index
    %c0_30 = arith.constant 0 : index
    %c0_31 = arith.constant 0 : index
    %110 = vector.load %arg6[%c0_29, %c0_30, %c0_31] : memref<1x1x512xf32, #tpu.memory_space<vmem>>, vector<1x1x512xf32>
    tpu.vector_store %arg6[%c0_29, %c0_30, %c0_31], %109 {strides = array<i32>} : memref<1x1x512xf32, #tpu.memory_space<vmem>>, vector<1x1x512xf32>,
    return
  }
  func.func @transform_0(%arg0: i32) -> (i32, i32) {
    %c0_i32 = arith.constant 0 : i32
    %c0_i32_0 = arith.constant 0 : i32
    return %c0_i32, %arg0 : i32, i32
  }
  func.func @transform_1(%arg0: i32) -> (i32, i32, i32) {
    %c0_i32 = arith.constant 0 : i32
    %c0_i32_0 = arith.constant 0 : i32
    %c0_i32_1 = arith.constant 0 : i32
    %c0_i32_2 = arith.constant 0 : i32
    return %c0_i32, %c0_i32_0, %c0_i32_1 : i32, i32, i32
  }
  func.func @transform_2(%arg0: i32) -> (i32, i32) {
    %c0_i32 = arith.constant 0 : i32
    %c0_i32_0 = arith.constant 0 : i32
    %c0_i32_1 = arith.constant 0 : i32
    return %c0_i32, %c0_i32_0 : i32, i32
  }
  func.func @transform_3(%arg0: i32) -> (i32, i32) {
    %c0_i32 = arith.constant 0 : i32
    %c0_i32_0 = arith.constant 0 : i32
    %c0_i32_1 = arith.constant 0 : i32
    return %c0_i32, %c0_i32_0 : i32, i32
  }
  func.func @transform_4(%arg0: i32) -> i32 {
    %c0_i32 = arith.constant 0 : i32
    %c0_i32_0 = arith.constant 0 : i32
    return %c0_i32 : i32
  }
  func.func @transform_5(%arg0: i32) -> (i32, i32, i32) {
    %c0_i32 = arith.constant 0 : i32
    %c0_i32_0 = arith.constant 0 : i32
    %c0_i32_1 = arith.constant 0 : i32
    return %arg0, %c0_i32, %c0_i32_0 : i32, i32, i32
  }
}

</mosaic_0001>

<bundles_post_ra>
// kernel: tpu_custom_call.1
= control target key start
LH: loop header
LB: loop body
LE: loop exit
PB: predicated region body
PF: predicated region fallthrough
CT: control target
= control target key end

     0   :  { %10 = vsyncpa [#allocation3], 0  ;;  %s7952_s0 = inlined_call_operand.vmem [shape: f32[4,1024], index: 0, kind: input, shape index: {}]   ;;  %s7953_s1 = inlined_call_operand.hbm [shape: bf16[3,128,128], index: 1, kind: input, shape index: {}]   ;;  %s7954_s2 = inlined_call_operand.vmem [shape: f32[128,8], index: 2, kind: input, shape index: {}]   ;;  %s7955_s3 = inlined_call_operand.vmem [shape: bf16[8,128], index: 3, kind: input, shape index: {}]   ;;  %s7956_s4 = inlined_call_operand.vmem [shape: f32[5], index: 4, kind: input, shape index: {}]   ;;  %s7957_s5 = inlined_call_operand.hbm [shape: f32[2,1,512], index: 5, kind: output, shape index: {}]  }
   0x1   :  { %11 = vsyncpa [#allocation5], 0 }
   0x2   :  { %12 = vsyncpa [#allocation4], 0 }
   0x3   :  { %14 = vsyncpa [#allocation4 + $0x1], 0  ;;  %s5467_s18 = smov 0   ;;  %s5469_s19 = smov 0  }
   0x4   :  { %s5471_s20 = smov 0   ;;  %s5473_s21 = smov 0  }
   0x5 LB: > { %s5488_s22 = sadd.s32 4294967295, %s5423_s21   ;;  %s4207_s23 = sadd.s32 4294967294, %s5423_s21   ;;  %s5423_s21 = sphi %s5473_s21, %s8453_s21   ;;  %s5419_s20 = sphi %s5471_s20, %s8452_s20   ;;  %s5415_s19 = sphi %s5469_s19, %s8451_s19   ;;  %s5411_s18 = sphi %s5467_s18, %s8450_s18  }
   0x6   : > { %s5492_s24 = sadd.s32 1, %s5423_s21   ;;  %s137_s25 = sadd.s32 1, %s5419_s20 }
   0x7   : > { %s134_s26 = ssub.s32 %s5423_s21, %s5492_s24  ;;  %p147_p0 = scmp.ne.s32.totalorder %s5419_s20, %s5415_s19 }
   0x8   : > { %p135_p1 = scmp.eq.s32.totalorder %s134_s26, 0  ;;  %p148_p2 = scmp.eq.s32.totalorder %s5488_s22, 1 }
   0x9   : > { %p153_p3 = scmp.ne.s32.totalorder %s5415_s19, %s5411_s18  ;;  %p154_p4 = scmp.eq.s32.totalorder %s4207_s23, 1 }
   0xa   : > { %s5503_s27 = scalar_select %p135_p1, %s5419_s20, %s137_s25  }
   0xb   : > { %p5505_p5 = por %p148_p2, %p147_p0  ;;  %p5509_p6 = por %p154_p4, %p153_p3 }
   0xc   : > { %p4208_p7 = scmp.ge.s32.totalorder %s5423_s21, 1  ;;  %p161_p8 = scmp.lt.s32.totalorder %s5423_s21, 3 }
   0xd   : > { %p4369_p9 = scmp.eq.s32.totalorder %s5488_s22, 0  ;;  %s172_s8 = sshll.u32 %s7953_s1, 4  ;;  %s173_s8 = int_to_ptr.hbm [resolvable:$true] %s172_s8 }
   0xe   : > { %p5516_p10 = pnand %p4208_p7, %p161_p8  ;;  %s5425_s9 = smov [#allocation2]  }
   0xf   : > { %s174_s10 = sshll.u32 %s5425_s9, 4  ;;  %s193_s13 = sshll.u32 %s7956_s4, 4  ;;  %s175_s10 = int_to_ptr.vmem [resolvable:$true] %s174_s10  ;;  %s194_s13 = int_to_ptr.vmem [resolvable:$true] %s193_s13 }
  0x10   : > { %p4358_p11 = pneg %p5516_p10  ;;  %s5426_s14 = smov 64  }
  0x11   : > { %s5427_s15 = smov 4   ;;  %s5428_s16 = smov [#allocation6]  }
  0x12   : > { %p4359_p12 = pnand %p4369_p9, %p4358_p11  ;;  %215 = sbr.rel (%p5516_p10) target bundleno = 1617 (0x651), region = 40 }
  0x14   : > { %4361 = dma.hbm_to_vmem [thread:$0]  (!%p4359_p12), %s173_s8, 3072, %s175_s10, [#allocation3], %s5426_s14, %s5426_s14, %s5427_s15  }
  0x15   : > { %4364 = dma.vmem_to_smem (!%p4359_p12), %s194_s13, 16, %s5428_s16, [#allocation5]  }
  0x17   : > { %5398 = dma.done.wait (%p4369_p9), [#allocation3], 3072  }
  0x18   : > { %5400 = vsyncadd (%p4369_p9), [#allocation3], 4294964224 }
  0x19   : > { %5402 = dma.done.wait (%p4369_p9), [#allocation5], 16  }
  0x1a   : > { %5404 = vsyncadd (%p4369_p9), [#allocation5], 4294967280 }
  0x1b   : > { %227 = sfence }
  0x1c   : > { %v277_v0 = vld [vmem:[%s7954_s2 + $0x70] sm:$0xff]  ;;  %v275_v1 = vld [vmem:[%s7954_s2 + $0x60] sm:$0xff]  ;;  %v5429_v2 = vmov 1   ;;  %v5430_v3 = vmov 0   ;;  %v278_v4 = vld [vmem:[%s7954_s2 + $0x78] sm:$0xff]  ;;  %v5431_v8 = vmov 2  }
  0x1d   : > { %4420 = vset.pattern.permute.xlu0 %v5429_v2  ;;  %4418 = vset.pattern.permute.xlu1 %v5429_v2  ;;  %v276_v5 = vld [vmem:[%s7954_s2 + $0x68] sm:$0xff]  ;;  %v269_v7 = vld [vmem:[%s7954_s2 + $0x30] sm:$0xff]  ;;  %v274_v10 = vld [vmem:[%s7954_s2 + $0x58] sm:$0xff]  ;;  %s5639_s17 = sshll.u32 %s5488_s22, 2  ;;  %vm5435_vm0 = vmmov 0   ;;  %vm5436_vm4 = vmmov 1  }
  0x1e   : > { %4419 = vset.pattern.permute.xlu2 %v5430_v3  ;;  %494 = vperm.xlu1 %4418, %v277_v0   ;;  %v272_v6 = vld [vmem:[%s7954_s2 + $0x48] sm:$0xff]  ;;  %v273_v9 = vld [vmem:[%s7954_s2 + $0x50] sm:$0xff]  ;;  %v271_v11 = vld [vmem:[%s7954_s2 + $0x40] sm:$0xff]  ;;  %p251_p13 = scmp.lt.s32.totalorder %s5639_s17, 7  ;;  %s4221_s12 = sld [smem:[#allocation6 + $0x4]]  ;;  %vm4098_vm6 = vcmask 1042434  }
  0x1f   : > { %486 = vperm.xlu0 %4420, %v275_v1   ;;  %341 = vperm.xlu2 %4419, %v275_v1   ;;  %v270_v12 = vld [vmem:[%s7954_s2 + $0x38] sm:$0xff]  ;;  %v5596_v14 = vld [vmem:[%s7954_s2] sm:$0xff]  ;;  %v268_v16 = vld [vmem:[%s7954_s2 + $0x28] sm:$0xff]  ;;  %s4220_s13 = sld [smem:[#allocation6 + $0x3]]  ;;  %s247_s25 = sand.u32 1, %s5415_s19   ;;  %vm4096_vm7 = vcmask 1040384  }
  0x20   : > { %v266_v13 = vld [vmem:[%s7954_s2 + $0x18] sm:$0xff]  ;;  %v267_v15 = vld [vmem:[%s7954_s2 + $0x20] sm:$0xff]  ;;  %v264_v18 = vld [vmem:[%s7954_s2 + $0x8] sm:$0xff]  ;;  %s252_s23 = scalar_select %p251_p13, %s5639_s17, 7  ;;  %vm4100_vm8 = vcmask 1041408  }
  0x21   : > { %v265_v20 = vld [vmem:[%s7954_s2 + $0x10] sm:$0xff]  ;;  %vm7507_vm1 = vmpackc.low %vm5435_vm0, %vm5435_vm0  ;;  %s7880_s14 = sld [smem:[#allocation6 + $0x2]]  ;;  %s4215_s26 = sshll.u32 %s247_s25, 2 }
  0x22   : > { %s4217_s22 = sshll.u32 %s252_s23, 2  ;;  %vm7666_vm5 = vmpackc.low %vm5436_vm4, %vm5436_vm4  ;;  %s7893_s16 = sld [smem:[#allocation6]] }
  0x23   : > { %s5657_s30 = scalar_lea.vmem %s7952_s0, %s4217_s22  ;;  %s4119_s8 = scalar_lea.hbm %s7957_s5, %s5639_s17 }
  0x24   : > { %v5663_v32 = vld [vmem:[%s5657_s30] sm:$0xff]  ;;  %v5666_v33 = vld [vmem:[%s5657_s30 + $0x8] sm:$0xff]  ;;  %s249_s9 = scalar_lea.vmem [#allocation7], %s4215_s26  ;;  %s4123_s11 = sshll.u32 %s4119_s8, 4  ;;  %s4124_s11 = int_to_ptr.hbm [resolvable:$true] %s4123_s11 }
  0x25   : > { %8037 = vst [vmem:[#allocation11_spill] sm:$0xff] %v5663_v32  ;;  %v361_v35 = vperm.slane %v5663_v32, 0  ;;  %v362_v36 = vperm.slane %v5663_v32, 4  ;;  %v363_v37 = vperm.slane %v5666_v33, 0  ;;  %v364_v38 = vperm.slane %v5666_v33, 4  ;;  %s4121_s10 = sshll.u32 %s249_s9, 4  ;;  %s4122_s10 = int_to_ptr.vmem [resolvable:$true] %s4121_s10 }
  0x26   : > { %498 = vperm.xlu1 %4418, %v278_v4   ;;  %8038 = vst [vmem:[#allocation12_spill] sm:$0xff] %v5666_v33  ;;  %v7958_v39 = vperm.slane %v5663_v32, 1  ;;  %v7960_v40 = vperm.slane %v5663_v32, 5  ;;  %v7961_v41 = vperm.slane %v5666_v33, 1  ;;  %v7959_v42 = vperm.slane %v5666_v33, 5  ;;  %s4109_s17 = scalar_lea.sflag [#allocation4], %s247_s25 }
  0x27   : > { %346 = vperm.xlu2 %4419, %v276_v5   ;;  %474 = vperm.xlu0 %4420, %v272_v6   ;;  %v5683_v45 = vperm.slane %v361_v35, 0  ;;  %v5685_v46 = vperm.slane %v362_v36, 0  ;;  %v5687_v47 = vperm.slane %v363_v37, 0  ;;  %v5689_v48 = vperm.slane %v364_v38, 0  ;;  %s4007_s15 = smul.f32 %s7880_s14, %s7880_s14 }
  0x28   : > { %v5694_v49 = vperm.slane %v7958_v39, 1  ;;  %v5698_v50 = vperm.slane %v7960_v40, 1  ;;  %v5702_v51 = vperm.slane %v7961_v41, 1  ;;  %v5706_v52 = vperm.slane %v7959_v42, 1  ;;  %s4042_s22 = smul.f32 0.5, %s7893_s16 }
  0x29   : > { %s4008_s23 = ssub.f32 0.0, %s4007_s15  ;;  %s5373_s15 = scalar_lea.hbm %s7957_s5, 8 }
  0x2a   : > { %8040 = vst [vmem:[#allocation14_spill] sm:$0xff] %v5694_v49 }
  0x2b   : > { %8041 = vst [vmem:[#allocation15_spill] sm:$0xff] %v5698_v50 }
  0x2e   : > { %490 = vperm.xlu1 %4418, %v276_v5  }
  0x2f   : > { %4421 = vset.pattern.permute.xlu2 %v5431_v8  ;;  %462 = vperm.xlu0 %4420, %v269_v7  }
  0x30   : > { %698 = vperm.xlu2 %4421, %v277_v0  }
  0x36   : > { %4422 = vset.pattern.permute.xlu1 %v5431_v8 }
  0x37   : > { %4436 = vset.pattern.permute.xlu0 %v5431_v8  ;;  %702 = vperm.xlu1 %4422, %v278_v4  }
  0x38   : > { %4423 = vset.pattern.permute.xlu2 %v5430_v3  ;;  %678 = vperm.xlu0 %4436, %v272_v6  }
  0x39   : > { %331 = vperm.xlu2 %4423, %v273_v9  }
  0x3f   : > { %4424 = vset.pattern.permute.xlu1 %v5429_v2 }
  0x40   : > { %666 = vperm.xlu0 %4436, %v269_v7   ;;  %478 = vperm.xlu1 %4424, %v273_v9  }
  0x41   : > { %4425 = vset.pattern.permute.xlu2 %v5429_v2 }
  0x42   : > { %482 = vperm.xlu2 %4425, %v274_v10  }
  0x48   : > { %4441 = vset.pattern.permute.xlu0 %v5430_v3  ;;  %4426 = vset.pattern.permute.xlu1 %v5431_v8 }
  0x49   : > { %351 = vperm.xlu0 %4441, %v277_v0   ;;  %690 = vperm.xlu1 %4426, %v275_v1  }
  0x4a   : > { %4427 = vset.pattern.permute.xlu2 %v5431_v8 }
  0x4b   : > { %694 = vperm.xlu2 %4427, %v276_v5  }
  0x51   : > { %356 = vperm.xlu0 %4441, %v278_v4   ;;  %4428 = vset.pattern.permute.xlu1 %v5430_v3 }
  0x52   : > { %326 = vperm.xlu1 %4428, %v272_v6  }
  0x53   : > { %4429 = vset.pattern.permute.xlu2 %v5429_v2 }
  0x54   : > { %470 = vperm.xlu2 %4429, %v271_v11  }
  0x59   : > { %336 = vperm.xlu0 %4441, %v274_v10  }
  0x5a   : > { %4430 = vset.pattern.permute.xlu1 %v5431_v8 }
  0x5b   : > { %682 = vperm.xlu1 %4430, %v273_v9  }
  0x5c   : > { %4431 = vset.pattern.permute.xlu2 %v5431_v8 }
  0x5d   : > { %686 = vperm.xlu2 %4431, %v274_v10  }
  0x61   : > { %321 = vperm.xlu0 %4441, %v271_v11  }
  0x63   : > { %4432 = vset.pattern.permute.xlu1 %v5430_v3 }
  0x64   : > { %311 = vperm.xlu1 %4432, %v269_v7  }
  0x65   : > { %4433 = vset.pattern.permute.xlu2 %v5430_v3 }
  0x66   : > { %316 = vperm.xlu2 %4433, %v270_v12  }
  0x69   : > { %296 = vperm.xlu0 %4441, %v266_v13  }
  0x6c   : > { %4434 = vset.pattern.permute.xlu1 %v5429_v2 }
  0x6d   : > { %466 = vperm.xlu1 %4434, %v270_v12  }
  0x6e   : > { %4435 = vset.pattern.permute.xlu2 %v5431_v8 }
  0x6f   : > { %674 = vperm.xlu2 %4435, %v271_v11  }
  0x71   : > { %281 = vperm.xlu0 %4441, %v5596_v14  }
  0x75   : > { %4437 = vset.pattern.permute.xlu1 %v5430_v3 }
  0x76   : > { %301 = vperm.xlu1 %4437, %v267_v15  }
  0x77   : > { %4438 = vset.pattern.permute.xlu2 %v5430_v3 }
  0x78   : > { %306 = vperm.xlu2 %4438, %v268_v16  }
  0x79   : > { %4450 = vset.pattern.permute.xlu0 %v5429_v2  ;;  %v5608_v17 = vpop.permute.xlu2 %341 }
  0x7a   : > { %442 = vperm.xlu0 %4450, %v264_v18   ;;  %v421_v54 = vmul.f32 %v5683_v45, %v5608_v17  ;;  %v422_v55 = vmul.f32 %v5685_v46, %v5608_v17  ;;  %v423_v56 = vmul.f32 %v5687_v47, %v5608_v17  ;;  %v424_v57 = vmul.f32 %v5689_v48, %v5608_v17 }
  0x7e   : > { %4439 = vset.pattern.permute.xlu1 %v5429_v2 }
  0x7f   : > { %454 = vperm.xlu1 %4439, %v267_v15  }
  0x80   : > { %4440 = vset.pattern.permute.xlu2 %v5429_v2 }
  0x81   : > { %458 = vperm.xlu2 %4440, %v268_v16   ;;  %v5615_v19 = vpop.permute.xlu2 %346 }
  0x82   : > { %v425_v58 = vmul.f32 %v5683_v45, %v5615_v19  ;;  %v426_v59 = vmul.f32 %v5685_v46, %v5615_v19  ;;  %v427_v60 = vmul.f32 %v5687_v47, %v5615_v19  ;;  %v428_v61 = vmul.f32 %v5689_v48, %v5615_v19 }
  0x87   : > { %4442 = vset.pattern.permute.xlu1 %v5431_v8 }
  0x88   : > { %670 = vperm.xlu1 %4442, %v270_v12  }
  0x89   : > { %4443 = vset.pattern.permute.xlu2 %v5430_v3 }
  0x8a   : > { %291 = vperm.xlu2 %4443, %v265_v20   ;;  %v5625_v22 = vpop.permute.xlu2 %698 }
  0x90   : > { %v5622_v21 = vpop.permute.xlu1 %494  ;;  %4444 = vset.pattern.permute.xlu1 %v5429_v2 }
  0x91   : > { %v5627_v23 = vpop.permute.xlu0 %486  ;;  %446 = vperm.xlu1 %4444, %v265_v20   ;;  %v5742_v4 = vmul.f32 %v5702_v51, %v5622_v21  ;;  %v5746_v5 = vmul.f32 %v5706_v52, %v5622_v21 }
  0x92   : > { %4445 = vset.pattern.permute.xlu2 %v5429_v2  ;;  %v561_v62 = vmul.f32 %v5694_v49, %v5627_v23  ;;  %v562_v63 = vmul.f32 %v5698_v50, %v5627_v23  ;;  %v563_v0 = vmul.f32 %v5702_v51, %v5627_v23  ;;  %v564_v1 = vmul.f32 %v5706_v52, %v5627_v23 }
  0x93   : > { %450 = vperm.xlu2 %4445, %v266_v13   ;;  %v5635_v26 = vpop.permute.xlu2 %331 }
  0x94   : > { %v5754_v9 = vmul.f32 %v5685_v46, %v5635_v26  ;;  %v5762_v12 = vmul.f32 %v5687_v47, %v5635_v26  ;;  %v626_v17 = vadd.f32 %v562_v63, %v422_v55  ;;  %v628_v19 = vadd.f32 %v564_v1, %v424_v57 }
  0x98   : > { %v5630_v24 = vpop.permute.xlu1 %498 }
  0x99   : > { %4446 = vset.pattern.permute.xlu1 %v5431_v8  ;;  %v5633_v25 = vpop.permute.xlu0 %474  ;;  %v575_v23 = vmul.f32 %v5702_v51, %v5630_v24 }
  0x9a   : > { %658 = vperm.xlu1 %4446, %v267_v15   ;;  %v5788_v35 = vmul.f32 %v5698_v50, %v5633_v25  ;;  %v5792_v38 = vmul.f32 %v5702_v51, %v5633_v25  ;;  %v5799_v57 = vmul.f32 %v5706_v52, %v5633_v25 }
  0x9b   : > { %4447 = vset.pattern.permute.xlu2 %v5431_v8 }
  0x9c   : > { %662 = vperm.xlu2 %4447, %v268_v16   ;;  %v5649_v29 = vpop.permute.xlu2 %482  ;;  %v625_v16 = vadd.f32 %v561_v62, %v421_v54 }
  0x9d   : > { %v5803_v62 = vmul.f32 %v5694_v49, %v5649_v29 }
  0xa0   : > { %v5642_v27 = vpop.permute.xlu1 %490 }
  0xa1   : > { %v5644_v28 = vpop.permute.xlu0 %462  ;;  %v565_v10 = vmul.f32 %v5694_v49, %v5642_v27  ;;  %v566_v11 = vmul.f32 %v5698_v50, %v5642_v27  ;;  %v568_v15 = vmul.f32 %v5706_v52, %v5642_v27 }
  0xa2   : > { %4448 = vset.pattern.permute.xlu1 %v5430_v3  ;;  %v5738_v3 = vmul.f32 %v5698_v50, %v5622_v21  ;;  %v5827_v63 = vmul.f32 %v5702_v51, %v5644_v28  ;;  %v5831_v1 = vmul.f32 %v5706_v52, %v5644_v28 }
  0xa3   : > { %286 = vperm.xlu1 %4448, %v264_v18   ;;  %v629_v36 = vadd.f32 %v565_v10, %v425_v58  ;;  %v630_v37 = vadd.f32 %v566_v11, %v426_v59  ;;  %v632_v55 = vadd.f32 %v568_v15, %v428_v61  ;;  %v5807_v58 = vmul.f32 %v5698_v50, %v5649_v29 }
  0xa4   : > { %4449 = vset.pattern.permute.xlu2 %v5429_v2  ;;  %v569_v2 = vmul.f32 %v5694_v49, %v5622_v21  ;;  %v574_v21 = vmul.f32 %v5698_v50, %v5630_v24  ;;  %v5811_v59 = vmul.f32 %v5702_v51, %v5649_v29  ;;  %v5823_v61 = vmul.f32 %v5698_v50, %v5644_v28 }
  0xa5   : > { %438 = vperm.xlu2 %4449, %v5596_v14   ;;  %v5669_v34 = vpop.permute.xlu2 %694  ;;  %8044 = vst [vmem:[#allocation18_spill] sm:$0xff] %v5827_v63 }
  0xa6   : > { %8043 = vst [vmem:[#allocation17_spill] sm:$0xff] %v5823_v61  ;;  %v758_v10 = vadd.f32 %v5669_v34, %v630_v37  ;;  %v760_v39 = vadd.f32 %v5669_v34, %v632_v55 }
  0xa7   : > { %8045 = vst [vmem:[#allocation19_spill] sm:$0xff] %v5831_v1 }
  0xa9   : > { %v5652_v30 = vpop.permute.xlu1 %702 }
  0xaa   : > { %v5659_v31 = vpop.permute.xlu0 %678 }
  0xab   : > { %4451 = vset.pattern.permute.xlu1 %v5431_v8 }
  0xac   : > { %650 = vperm.xlu1 %4451, %v265_v20   ;;  %v573_v20 = vmul.f32 %v5694_v49, %v5630_v24 }
  0xad   : > { %4452 = vset.pattern.permute.xlu2 %v5431_v8  ;;  %v5750_v8 = vmul.f32 %v5683_v45, %v5635_v26 }
  0xae   : > { %654 = vperm.xlu2 %4452, %v266_v13   ;;  %v5708_v53 = vpop.permute.xlu2 %470  ;;  %v5766_v13 = vmul.f32 %v5689_v48, %v5635_v26  ;;  %v5780_v26 = vmul.f32 %v5706_v52, %v5630_v24 }
  0xaf   : > { %v5840_v42 = vmul.f32 %v5694_v49, %v5708_v53 }
  0xb2   : > { %v5679_v43 = vpop.permute.xlu1 %478  ;;  %v5681_v44 = vpop.permute.xlu0 %666 }
  0xb3   : > { %8039 = vst [vmem:[#allocation13_spill] sm:$0xff] %v5681_v44  ;;  %v554_v1 = vmul.f32 %v5698_v50, %v5679_v43  ;;  %v556_v63 = vmul.f32 %v5706_v52, %v5679_v43 }
  0xb4   : > { %642 = vperm.xlu1 %4451, %v5596_v14   ;;  %v567_v14 = vmul.f32 %v5702_v51, %v5642_v27  ;;  %v5784_v27 = vmul.f32 %v5694_v49, %v5633_v25  ;;  %v5819_v25 = vmul.f32 %v5694_v49, %v5644_v28  ;;  %v5844_v28 = vmul.f32 %v5698_v50, %v5708_v53 }
  0xb6   : > { %646 = vperm.xlu2 %4452, %v264_v18   ;;  %v627_v18 = vadd.f32 %v563_v0, %v423_v56  ;;  %v631_v54 = vadd.f32 %v567_v14, %v427_v60  ;;  %v5815_v60 = vmul.f32 %v5706_v52, %v5649_v29  ;;  %8042 = vst [vmem:[#allocation16_spill] sm:$0xff] %v5819_v25 }
  0xb7   : > { %v5795_v24 = vpop.permute.xlu2 %686  ;;  %v757_v29 = vadd.f32 %v5669_v34, %v629_v36  ;;  %v5848_v36 = vmul.f32 %v5702_v51, %v5708_v53 }
  0xb8   : > { %v759_v15 = vadd.f32 %v5669_v34, %v631_v54  ;;  %v553_v54 = vmul.f32 %v5694_v49, %v5679_v43 }
  0xb9   : > { %8046 = vst [vmem:[#allocation20_spill] sm:$0xff] %v5848_v36 }
  0xbb   : > { %v352_v6 = vpop.permute.xlu0 %351  ;;  %v691_v7 = vpop.permute.xlu1 %690 }
  0xbc   : > { %v429_v56 = vmul.f32 %v5683_v45, %v352_v6  ;;  %v430_v34 = vmul.f32 %v5685_v46, %v352_v6  ;;  %v431_v55 = vmul.f32 %v5687_v47, %v352_v6  ;;  %v754_v32 = vadd.f32 %v691_v7, %v626_v17 }
  0xbd   : > { %v755_v49 = vadd.f32 %v691_v7, %v627_v18  ;;  %v756_v61 = vadd.f32 %v691_v7, %v628_v19 }
  0xbe   : > { %v633_v40 = vadd.f32 %v569_v2, %v429_v56  ;;  %v432_v2 = vmul.f32 %v5689_v48, %v352_v6  ;;  %v753_v56 = vadd.f32 %v691_v7, %v625_v16  ;;  %v634_v17 = vadd.f32 %v5738_v3, %v430_v34 }
  0xbf   : > { %v5879_v19 = vpack.c.bf16 %v759_v15, %v755_v49  ;;  %v617_v3 = vadd.f32 %v553_v54, %v5750_v8 }
  0xc0   : > { %v636_v25 = vadd.f32 %v5746_v5, %v432_v2  ;;  %v5869_v50 = vpop.permute.xlu2 %316  ;;  %v5875_v18 = vpack.c.bf16 %v757_v29, %v753_v56 }
  0xc1   : > { %v855_v56 = vunpack.c.h.bf16 %v5879_v19 }
  0xc3   : > { %v357_v0 = vpop.permute.xlu0 %356 }
  0xc4   : > { %v433_v11 = vmul.f32 %v5683_v45, %v357_v0  ;;  %v327_v14 = vpop.permute.xlu1 %326  ;;  %v434_v37 = vmul.f32 %v5685_v46, %v357_v0  ;;  %v435_v33 = vmul.f32 %v5687_v47, %v357_v0  ;;  %v436_v6 = vmul.f32 %v5689_v48, %v357_v0 }
  0xc5   : > { %v5884_v0 = vpack.c.bf16 %v760_v39, %v756_v61  ;;  %v853_v39 = vunpack.c.h.bf16 %v5875_v18  ;;  %v412_v54 = vmul.f32 %v5689_v48, %v327_v14 }
  0xc6   : > { %v637_v41 = vadd.f32 %v573_v20, %v433_v11  ;;  %v555_v20 = vmul.f32 %v5702_v51, %v5679_v43  ;;  %v761_v11 = vadd.f32 %v5625_v22, %v633_v40  ;;  %v638_v16 = vadd.f32 %v574_v21, %v434_v37 }
  0xc7   : > { %v5873_v40 = vmul.f32 %v5706_v52, %v5708_v53  ;;  %v5877_v43 = vpack.c.bf16 %v758_v10, %v754_v32  ;;  %v639_v7 = vadd.f32 %v575_v23, %v435_v33  ;;  %v620_v32 = vadd.f32 %v556_v63, %v5766_v13 }
  0xc8   : > { %v765_v44 = vadd.f32 %v5652_v30, %v637_v41  ;;  %v635_v41 = vadd.f32 %v5742_v4, %v431_v55  ;;  %v618_v4 = vadd.f32 %v554_v1, %v5754_v9  ;;  %v619_v5 = vadd.f32 %v555_v20, %v5762_v12 }
  0xc9   : > { %v766_v53 = vadd.f32 %v5652_v30, %v638_v16  ;;  %v762_v33 = vadd.f32 %v5625_v22, %v634_v17  ;;  %v764_v23 = vadd.f32 %v5625_v22, %v636_v25  ;;  %v767_v9 = vadd.f32 %v5652_v30, %v639_v7  ;;  %v5909_v20 = vpop.permute.xlu2 %674 }
  0xca   : > { %v797_v36 = vpack.c.bf16 %v765_v44, %v761_v11  ;;  %v640_v44 = vadd.f32 %v5780_v26, %v436_v6  ;;  %v763_v49 = vadd.f32 %v5625_v22, %v635_v41  ;;  %v849_v12 = vunpack.c.l.bf16 %v5875_v18 }
  0xcb   : > { %v337_v29 = vpop.permute.xlu0 %336  ;;  %v850_v26 = vunpack.c.l.bf16 %v5877_v43  ;;  %v854_v13 = vunpack.c.h.bf16 %v5877_v43  ;;  %v851_v63 = vunpack.c.l.bf16 %v5879_v19  ;;  %v409_v22 = vmul.f32 %v5683_v45, %v327_v14 }
  0xcc   : > { %v857_v8 = vunpack.c.l.bf16 %v797_v36  ;;  %v417_v61 = vmul.f32 %v5683_v45, %v337_v29  ;;  %v861_v1 = vunpack.c.h.bf16 %v797_v36  ;;  %v768_v10 = vadd.f32 %v5652_v30, %v640_v44 }
  0xcd   : > { %v683_v21 = vpop.permute.xlu1 %682  ;;  %v410_v25 = vmul.f32 %v5685_v46, %v327_v14  ;;  %v798_v15 = vpack.c.bf16 %v766_v53, %v762_v33  ;;  %v411_v37 = vmul.f32 %v5687_v47, %v327_v14  ;;  %v418_v34 = vmul.f32 %v5685_v46, %v337_v29 }
  0xce   : > { %4462 = vtanh.f32 %v857_v8  ;;  %v419_v36 = vmul.f32 %v5687_v47, %v337_v29  ;;  %v420_v55 = vmul.f32 %v5689_v48, %v337_v29  ;;  %v799_v2 = vpack.c.bf16 %v767_v9, %v763_v49 }
  0xcf   : > { %v621_v30 = vadd.f32 %v5803_v62, %v417_v61  ;;  %4464 = vtanh.f32 %v861_v1  ;;  %v852_v11 = vunpack.c.l.bf16 %v5884_v0  ;;  %v856_v6 = vunpack.c.h.bf16 %v5884_v0 }
  0xd0   : > { %v613_v14 = vadd.f32 %v5784_v27, %v409_v22  ;;  %v614_v16 = vadd.f32 %v5788_v35, %v410_v25  ;;  %v858_v41 = vunpack.c.l.bf16 %v798_v15  ;;  %v800_v7 = vpack.c.bf16 %v768_v10, %v764_v23 }
  0xd1   : > { %v615_v44 = vadd.f32 %v5792_v38, %v411_v37  ;;  %v616_v53 = vadd.f32 %v5799_v57, %v412_v54  ;;  %v622_v62 = vadd.f32 %v5807_v58, %v418_v34  ;;  %v862_v29 = vunpack.c.h.bf16 %v798_v15 }
  0xd2   : > { %v623_v33 = vadd.f32 %v5811_v59, %v419_v36  ;;  %v624_v49 = vadd.f32 %v5815_v60, %v420_v55  ;;  %v859_v9 = vunpack.c.l.bf16 %v799_v2  ;;  %4466 = vtanh.f32 %v849_v12  ;;  %v5941_v55 = vpop.permute.xlu2 %306 }
  0xd3   : > { %v322_v8 = vpop.permute.xlu0 %321  ;;  %v745_v35 = vadd.f32 %v683_v21, %v617_v3  ;;  %v746_v61 = vadd.f32 %v683_v21, %v618_v4  ;;  %v749_v1 = vadd.f32 %v5795_v24, %v621_v30  ;;  %v863_v23 = vunpack.c.h.bf16 %v799_v2 }
  0xd4   : > { %v4463_v27 = vpop.eup %4462  ;;  %v747_v10 = vadd.f32 %v683_v21, %v619_v5  ;;  %v748_v38 = vadd.f32 %v683_v21, %v620_v32  ;;  %4468 = vtanh.f32 %v858_v41  ;;  %v860_v57 = vunpack.c.l.bf16 %v800_v7 }
  0xd5   : > { %v4465_v22 = vpop.eup %4464  ;;  %v750_v58 = vadd.f32 %v5795_v24, %v622_v62  ;;  %v405_v59 = vmul.f32 %v5683_v45, %v322_v8  ;;  %4470 = vtanh.f32 %v862_v29  ;;  %v864_v60 = vunpack.c.h.bf16 %v800_v7 }
  0xd6   : > { %v5915_v17 = vpop.permute.xlu1 %311  ;;  %v751_v25 = vadd.f32 %v5795_v24, %v623_v33  ;;  %v406_v12 = vmul.f32 %v5685_v46, %v322_v8  ;;  %v957_v3 = vpack.c.bf16 %v4465_v22, %v4463_v27  ;;  %4472 = vtanh.f32 %v859_v9  ;;  %v8048_v22 = vld [vmem:[#allocation16_spill] sm:$0xff] }
  0xd7   : > { %v752_v4 = vadd.f32 %v5795_v24, %v624_v49  ;;  %v789_v15 = vpack.c.bf16 %v749_v1, %v745_v35  ;;  %v407_v21 = vmul.f32 %v5687_v47, %v322_v8  ;;  %4474 = vtanh.f32 %v863_v23 }
  0xd8   : > { %v5929_v5 = vpop.eup %4466  ;;  %v741_v32 = vadd.f32 %v5659_v31, %v613_v14  ;;  %v742_v37 = vadd.f32 %v5659_v31, %v614_v16  ;;  %v408_v54 = vmul.f32 %v5689_v48, %v322_v8  ;;  %1089 = vmatpush.bf16.msra.mxu0 %v957_v3  ;;  %4476 = vtanh.f32 %v860_v57 }
  0xd9   : > { %v5935_v34 = vadd.f32 %v5659_v31, %v615_v44  ;;  %v5938_v36 = vadd.f32 %v5659_v31, %v616_v53  ;;  %v609_v24 = vadd.f32 %v5840_v42, %v405_v59  ;;  %4478 = vtanh.f32 %v864_v60  ;;  %v8047_v31 = vld [vmem:[#allocation20_spill] sm:$0xff] }
  0xda   : > { %v4469_v30 = vpop.eup %4468  ;;  %v790_v14 = vpack.c.bf16 %v750_v58, %v746_v61  ;;  %v5945_v16 = vpack.c.bf16 %v751_v25, %v747_v10  ;;  %v610_v41 = vadd.f32 %v5844_v28, %v406_v12  ;;  %4480 = vtanh.f32 %v853_v39 }
  0xdb   : > { %v4471_v7 = vpop.eup %4470  ;;  %v5950_v44 = vpack.c.bf16 %v752_v4, %v748_v38  ;;  %v611_v53 = vadd.f32 %v8047_v31, %v407_v21  ;;  %4482 = vtanh.f32 %v850_v26  ;;  %v841_v42 = vunpack.c.l.bf16 %v789_v15  ;;  %v5985_v12 = vpop.permute.xlu2 %458 }
  0xdc   : > { %v4473_v62 = vpop.eup %4472  ;;  %v612_v29 = vadd.f32 %v5873_v40, %v408_v54  ;;  %v958_v33 = vpack.c.bf16 %v4471_v7, %v4469_v30  ;;  %4484 = vtanh.f32 %v854_v13  ;;  %v845_v28 = vunpack.c.h.bf16 %v789_v15  ;;  %v8050_v15 = vld [vmem:[#allocation18_spill] sm:$0xff] }
  0xdd   : > { %v4475_v49 = vpop.eup %4474  ;;  %v737_v18 = vadd.f32 %v5909_v20, %v609_v24  ;;  %v397_v39 = vmul.f32 %v5683_v45, %v5915_v17  ;;  %v398_v8 = vmul.f32 %v5685_v46, %v5915_v17  ;;  %4486 = vtanh.f32 %v851_v63 }
  0xde   : > { %v4477_v26 = vpop.eup %4476  ;;  %v738_v40 = vadd.f32 %v5909_v20, %v610_v41  ;;  %v399_v43 = vmul.f32 %v5687_v47, %v5915_v17  ;;  %1138 = vmatpush.bf16.msra.mxu1 %v958_v33  ;;  %v959_v13 = vpack.c.bf16 %v4475_v49, %v4473_v62  ;;  %4488 = vtanh.f32 %v855_v56  ;;  %v8052_v62 = vld [vmem:[#allocation13_spill] sm:$0xff] }
  0xdf   : > { %v5943_v2 = vpop.permute.xlu1 %466  ;;  %v4479_v9 = vpop.eup %4478  ;;  %v739_v27 = vadd.f32 %v5909_v20, %v611_v53  ;;  %v400_v35 = vmul.f32 %v5689_v48, %v5915_v17  ;;  %4490 = vtanh.f32 %v852_v11  ;;  %v842_v63 = vunpack.c.l.bf16 %v790_v14 }
  0xe0   : > { %v4481_v61 = vpop.eup %4480  ;;  %v740_v1 = vadd.f32 %v5909_v20, %v612_v29  ;;  %1187 = vmatpush.bf16.msra.mxu2 %v959_v13  ;;  %v960_v23 = vpack.c.bf16 %v4479_v9, %v4477_v26  ;;  %4492 = vtanh.f32 %v856_v6  ;;  %v846_v19 = vunpack.c.h.bf16 %v790_v14  ;;  %v8049_v6 = vld [vmem:[#allocation17_spill] sm:$0xff] }
  0xe1   : > { %v4483_v56 = vpop.eup %4482  ;;  %v953_v10 = vpack.c.bf16 %v4481_v61, %v5929_v5  ;;  %4494 = vtanh.f32 %v841_v42  ;;  %v843_v38 = vunpack.c.l.bf16 %v5945_v16  ;;  %v785_v17 = vpack.c.bf16 %v741_v32, %v737_v18  ;;  %v8051_v5 = vld [vmem:[#allocation19_spill] sm:$0xff] }
  0xe2   : > { %v4485_v57 = vpop.eup %4484  ;;  %v601_v11 = vadd.f32 %v8048_v22, %v397_v39  ;;  %1236 = vmatpush.bf16.msra.mxu3 %v960_v23  ;;  %4496 = vtanh.f32 %v845_v28  ;;  %v847_v20 = vunpack.c.h.bf16 %v5945_v16  ;;  %v786_v58 = vpack.c.bf16 %v742_v37, %v738_v40 }
  0xe3   : > { %v4487_v0 = vpop.eup %4486  ;;  %v602_v60 = vadd.f32 %v8049_v6, %v398_v8  ;;  %1090 = vmatpush.bf16.msra.mxu0 %v953_v10  ;;  %v954_v25 = vpack.c.bf16 %v4485_v57, %v4483_v56  ;;  %4498 = vtanh.f32 %v842_v63  ;;  %v844_v3 = vunpack.c.l.bf16 %v5950_v44 }
  0xe4   : > { %v4489_v4 = vpop.eup %4488  ;;  %v603_v21 = vadd.f32 %v8050_v15, %v399_v43  ;;  %v604_v32 = vadd.f32 %v8051_v5, %v400_v35  ;;  %4500 = vtanh.f32 %v846_v19  ;;  %v848_v37 = vunpack.c.h.bf16 %v5950_v44  ;;  %v8053_v19 = vld [vmem:[#allocation14_spill] sm:$0xff] }
  0xe5   : > { %v4491_v54 = vpop.eup %4490  ;;  %1139 = vmatpush.bf16.msra.mxu1 %v954_v25  ;;  %v955_v24 = vpack.c.bf16 %v4489_v4, %v4487_v0  ;;  %4502 = vtanh.f32 %v843_v38  ;;  %v833_v30 = vunpack.c.l.bf16 %v785_v17  ;;  %v787_v14 = vpack.c.bf16 %v5935_v34, %v739_v27 }
  0xe6   : > { %v4493_v16 = vpop.eup %4492  ;;  %4504 = vtanh.f32 %v847_v20  ;;  %v837_v41 = vunpack.c.h.bf16 %v785_v17  ;;  %v834_v7 = vunpack.c.l.bf16 %v786_v58  ;;  %v788_v31 = vpack.c.bf16 %v5938_v36, %v740_v1  ;;  %v6003_v1 = vpop.permute.xlu2 %291  ;;  %v8054_v17 = vld [vmem:[#allocation15_spill] sm:$0xff] }
  0xe7   : > { %v4495_v53 = vpop.eup %4494  ;;  %1188 = vmatpush.bf16.msra.mxu2 %v955_v24  ;;  %v956_v42 = vpack.c.bf16 %v4493_v16, %v4491_v54  ;;  %4506 = vtanh.f32 %v844_v3  ;;  %v5994_v29 = vadd.f32 %v8052_v62, %v601_v11  ;;  %v5997_v44 = vadd.f32 %v8052_v62, %v602_v60 }
  0xe8   : > { %v5982_v59 = vpop.permute.xlu1 %301  ;;  %v4497_v33 = vpop.eup %4496  ;;  %4508 = vtanh.f32 %v848_v37  ;;  %v838_v28 = vunpack.c.h.bf16 %v786_v58  ;;  %v835_v18 = vunpack.c.l.bf16 %v787_v14  ;;  %v731_v36 = vadd.f32 %v8052_v62, %v603_v21 }
  0xe9   : > { %v4499_v34 = vpop.eup %4498  ;;  %1237 = vmatpush.bf16.msra.mxu3 %v956_v42  ;;  %v949_v49 = vpack.c.bf16 %v4497_v33, %v4495_v53  ;;  %4510 = vtanh.f32 %v833_v30  ;;  %v839_v8 = vunpack.c.h.bf16 %v787_v14  ;;  %v732_v26 = vadd.f32 %v8052_v62, %v604_v32 }
  0xea   : > { %v4501_v39 = vpop.eup %4500  ;;  %4512 = vtanh.f32 %v837_v41  ;;  %v836_v13 = vunpack.c.l.bf16 %v788_v31  ;;  %v840_v35 = vunpack.c.h.bf16 %v788_v31  ;;  %v541_v56 = vmul.f32 %v8053_v19, %v5943_v2 }
  0xeb   : > { %v4503_v40 = vpop.eup %4502  ;;  %1091 = vmatpush.bf16.msra.mxu0 %v949_v49  ;;  %v950_v43 = vpack.c.bf16 %v4501_v39, %v4499_v34  ;;  %4514 = vtanh.f32 %v834_v7  ;;  %v542_v57 = vmul.f32 %v8054_v17, %v5943_v2  ;;  %v543_v22 = vmul.f32 %v5702_v51, %v5943_v2 }
  0xec   : > { %v4505_v27 = vpop.eup %4504  ;;  %4516 = vtanh.f32 %v838_v28  ;;  %v544_v20 = vmul.f32 %v5706_v52, %v5943_v2  ;;  %v401_v0 = vmul.f32 %v5683_v45, %v5869_v50  ;;  %v402_v6 = vmul.f32 %v5685_v46, %v5869_v50 }
  0xed   : > { %v4507_v63 = vpop.eup %4506  ;;  %1140 = vmatpush.bf16.msra.mxu1 %v950_v43  ;;  %v951_v61 = vpack.c.bf16 %v4505_v27, %v4503_v40  ;;  %4518 = vtanh.f32 %v835_v18  ;;  %v403_v60 = vmul.f32 %v5687_v47, %v5869_v50  ;;  %v404_v4 = vmul.f32 %v5689_v48, %v5869_v50 }
  0xee   : > { %v4509_v23 = vpop.eup %4508  ;;  %4520 = vtanh.f32 %v839_v8  ;;  %v605_v21 = vadd.f32 %v541_v56, %v401_v0  ;;  %v606_v5 = vadd.f32 %v542_v57, %v402_v6  ;;  %v6021_v50 = vpop.permute.xlu2 %450  ;;  %v393_v43 = vmul.f32 %v5683_v45, %v5941_v55 }
  0xef   : > { %v4511_v10 = vpop.eup %4510  ;;  %1189 = vmatpush.bf16.msra.mxu2 %v951_v61  ;;  %v952_v38 = vpack.c.bf16 %v4509_v23, %v4507_v63  ;;  %4522 = vtanh.f32 %v836_v13  ;;  %v607_v32 = vadd.f32 %v543_v22, %v403_v60  ;;  %v608_v24 = vadd.f32 %v544_v20, %v404_v4  ;;  %v6039_v61 = vpop.permute.xlu0 %296 }
  0xf0   : > { %v4513_v11 = vpop.eup %4512  ;;  %4524 = vtanh.f32 %v840_v35  ;;  %v395_v35 = vmul.f32 %v5687_v47, %v5941_v55  ;;  %v535_v63 = vmul.f32 %v5702_v51, %v5985_v12  ;;  %v396_v23 = vmul.f32 %v5689_v48, %v5941_v55 }
  0xf1   : > { %v6001_v9 = vpop.permute.xlu1 %454  ;;  %v4515_v58 = vpop.eup %4514  ;;  %1238 = vmatpush.bf16.msra.mxu3 %v952_v38  ;;  %v945_v25 = vpack.c.bf16 %v4513_v11, %v4511_v10  ;;  %v389_v60 = vmul.f32 %v5683_v45, %v5982_v59 }
  0xf2   : > { %v4517_v3 = vpop.eup %4516  ;;  %v529_v38 = vmul.f32 %v8053_v19, %v6001_v9  ;;  %v530_v57 = vmul.f32 %v8054_v17, %v6001_v9  ;;  %v531_v22 = vmul.f32 %v5702_v51, %v6001_v9  ;;  %v599_v4 = vadd.f32 %v535_v63, %v395_v35 }
  0xf3   : > { %v4519_v15 = vpop.eup %4518  ;;  %1092 = vmatpush.bf16.msra.mxu0 %v945_v25  ;;  %v946_v2 = vpack.c.bf16 %v4517_v3, %v4515_v58  ;;  %v536_v58 = vmul.f32 %v5706_v52, %v5985_v12  ;;  %v390_v25 = vmul.f32 %v5685_v46, %v5982_v59  ;;  %v391_v3 = vmul.f32 %v5687_v47, %v5982_v59 }
  0xf4   : > { %v4521_v37 = vpop.eup %4520 }
  0xf5   : > { %v4523_v30 = vpop.eup %4522  ;;  %1141 = vmatpush.bf16.msra.mxu1 %v946_v2  ;;  %v947_v14 = vpack.c.bf16 %v4521_v37, %v4519_v15  ;;  %v532_v15 = vmul.f32 %v5706_v52, %v6001_v9  ;;  %v5432_v37 = vmov 3   ;;  %v5274_v9 = vld [vmem:[%s7954_s2 + $0x78] sm:$0xff] }
  0xf6   : > { %v4525_v31 = vpop.eup %4524  ;;  %v6049_v11 = vpop.permute.xlu2 %662  ;;  %4454 = vset.pattern.permute.xlu1 %v5432_v37  ;;  %4453 = vset.pattern.permute.xlu0 %v5432_v37 }
  0xf7   : > { %1190 = vmatpush.bf16.msra.mxu2 %v947_v14  ;;  %v948_v42 = vpack.c.bf16 %v4525_v31, %v4523_v30  ;;  %1038 = vperm.xlu1 %4454, %v5274_v9  }
  0xf8   : > { %4455 = vset.pattern.permute.xlu2 %v5432_v37 }
  0xf9   : > { %1239 = vmatpush.bf16.msra.mxu3 %v948_v42 }
  0xfa   : > { %v671_v54 = vpop.permute.xlu1 %670 }
  0xfb   : > { %v733_v16 = vadd.f32 %v671_v54, %v605_v21  ;;  %v734_v41 = vadd.f32 %v671_v54, %v606_v5  ;;  %v735_v7 = vadd.f32 %v671_v54, %v607_v32  ;;  %v736_v53 = vadd.f32 %v671_v54, %v608_v24 }
  0xfc   : > { %v593_v21 = vadd.f32 %v529_v38, %v389_v60  ;;  %v594_v5 = vadd.f32 %v530_v57, %v390_v25  ;;  %v595_v32 = vadd.f32 %v531_v22, %v391_v3  ;;  %v392_v24 = vmul.f32 %v5689_v48, %v5982_v59  ;;  %v5275_v59 = vld [vmem:[%s7954_s2 + $0x70] sm:$0xff] }
  0xfd   : > { %v781_v62 = vpack.c.bf16 %v733_v16, %v5994_v29  ;;  %v782_v33 = vpack.c.bf16 %v734_v41, %v5997_v44  ;;  %v783_v28 = vpack.c.bf16 %v735_v7, %v731_v36  ;;  %v784_v39 = vpack.c.bf16 %v736_v53, %v732_v26  ;;  %1034 = vperm.xlu0 %4453, %v5275_v59  }
  0xfe   : > { %v394_v29 = vmul.f32 %v5685_v46, %v5941_v55  ;;  %v533_v44 = vmul.f32 %v8053_v19, %v5985_v12  ;;  %v534_v36 = vmul.f32 %v8054_v17, %v5985_v12  ;;  %v381_v57 = vmul.f32 %v5683_v45, %v6003_v1 }
  0xff   : > { %v825_v34 = vunpack.c.l.bf16 %v781_v62  ;;  %v829_v49 = vunpack.c.h.bf16 %v781_v62  ;;  %v826_v18 = vunpack.c.l.bf16 %v782_v33  ;;  %v830_v8 = vunpack.c.h.bf16 %v782_v33  ;;  %v6081_v35 = vpop.permute.xlu2 %438 }
 0x100   : > { %v827_v40 = vunpack.c.l.bf16 %v783_v28  ;;  %v831_v27 = vunpack.c.h.bf16 %v783_v28  ;;  %v828_v26 = vunpack.c.l.bf16 %v784_v39  ;;  %v832_v56 = vunpack.c.h.bf16 %v784_v39  ;;  %v282_v39 = vpop.permute.xlu0 %281 }
 0x101   : > { %4526 = vtanh.f32 %v825_v34  ;;  %v597_v55 = vadd.f32 %v533_v44, %v393_v43  ;;  %v598_v0 = vadd.f32 %v534_v36, %v394_v29  ;;  %v727_v33 = vadd.f32 %v6049_v11, %v599_v4  ;;  %v5276_v43 = vld [vmem:[%s7954_s2 + $0x60] sm:$0xff] }
 0x102   : > { %4528 = vtanh.f32 %v829_v49  ;;  %v596_v34 = vadd.f32 %v532_v15, %v392_v24  ;;  %v385_v49 = vmul.f32 %v5683_v45, %v6039_v61  ;;  %1026 = vperm.xlu2 %4455, %v5276_v43   ;;  %v387_v29 = vmul.f32 %v5687_v47, %v6039_v61 }
 0x103   : > { %v6027_v13 = vpop.permute.xlu1 %446  ;;  %4530 = vtanh.f32 %v826_v18  ;;  %v725_v30 = vadd.f32 %v6049_v11, %v597_v55  ;;  %v726_v7 = vadd.f32 %v6049_v11, %v598_v0  ;;  %v386_v18 = vmul.f32 %v5685_v46, %v6039_v61 }
 0x104   : > { %4532 = vtanh.f32 %v830_v8  ;;  %v600_v44 = vadd.f32 %v536_v58, %v396_v23  ;;  %v382_v22 = vmul.f32 %v5685_v46, %v6003_v1  ;;  %v525_v58 = vmul.f32 %v8053_v19, %v6021_v50 }
 0x105   : > { %4534 = vtanh.f32 %v827_v40  ;;  %v526_v55 = vmul.f32 %v8054_v17, %v6021_v50  ;;  %v527_v60 = vmul.f32 %v5702_v51, %v6021_v50  ;;  %v388_v3 = vmul.f32 %v5689_v48, %v6039_v61 }
 0x106   : > { %4536 = vtanh.f32 %v831_v27  ;;  %v728_v23 = vadd.f32 %v6049_v11, %v600_v44  ;;  %v5277_v11 = vld [vmem:[%s7954_s2 + $0x68] sm:$0xff]  ;;  %v6104_v4 = vmul.f32 %v5683_v45, %v282_v39  ;;  %v6117_v61 = vmul.f32 %v5687_v47, %v282_v39 }
 0x107   : > { %v4527_v10 = vpop.eup %4526  ;;  %4538 = vtanh.f32 %v828_v26  ;;  %1030 = vperm.xlu1 %4454, %v5277_v11   ;;  %v590_v37 = vadd.f32 %v526_v55, %v386_v18  ;;  %v516_v55 = vmul.f32 %v5706_v52, %v6081_v35 }
 0x108   : > { %v4529_v20 = vpop.eup %4528  ;;  %4540 = vtanh.f32 %v832_v56  ;;  %v655_v18 = vpop.permute.xlu2 %654 }
 0x109   : > { %v4531_v6 = vpop.eup %4530  ;;  %v941_v2 = vpack.c.bf16 %v4529_v20, %v4527_v10  ;;  %v383_v20 = vmul.f32 %v5687_v47, %v6003_v1 }
 0x10a   : > { %v4533_v12 = vpop.eup %4532 }
 0x10b   : > { %v4535_v54 = vpop.eup %4534  ;;  %1093 = vmatpush.bf16.msra.mxu0 %v941_v2  ;;  %v942_v14 = vpack.c.bf16 %v4533_v12, %v4531_v6  ;;  %v384_v6 = vmul.f32 %v5689_v48, %v6003_v1  ;;  %v5278_v2 = vld [vmem:[%s7954_s2 + $0x58] sm:$0xff]  ;;  %v528_v12 = vmul.f32 %v5706_v52, %v6021_v50  ;;  %v521_v50 = vmul.f32 %v8053_v19, %v6027_v13 }
 0x10c   : > { %v659_v16 = vpop.permute.xlu1 %658  ;;  %v4537_v41 = vpop.eup %4536  ;;  %1022 = vperm.xlu0 %4453, %v5278_v2  }
 0x10d   : > { %v721_v31 = vadd.f32 %v659_v16, %v593_v21  ;;  %v722_v53 = vadd.f32 %v659_v16, %v594_v5  ;;  %v723_v42 = vadd.f32 %v659_v16, %v595_v32  ;;  %v4539_v62 = vpop.eup %4538  ;;  %1142 = vmatpush.bf16.msra.mxu1 %v942_v14  ;;  %v943_v28 = vpack.c.bf16 %v4537_v41, %v4535_v54  ;;  %v443_v54 = vpop.permute.xlu0 %442 }
 0x10e   : > { %v4541_v27 = vpop.eup %4540  ;;  %v724_v36 = vadd.f32 %v659_v16, %v596_v34  ;;  %v6114_v21 = vmul.f32 %v5685_v46, %v282_v39  ;;  %v6120_v5 = vmul.f32 %v5689_v48, %v282_v39  ;;  %v589_v32 = vadd.f32 %v525_v58, %v385_v49  ;;  %v5282_v58 = vld [vmem:[%s7954_s2 + $0x48] sm:$0xff] }
 0x10f   : > { %v777_v8 = vpack.c.bf16 %v725_v30, %v721_v31  ;;  %v778_v40 = vpack.c.bf16 %v726_v7, %v722_v53  ;;  %1191 = vmatpush.bf16.msra.mxu2 %v943_v28  ;;  %v779_v26 = vpack.c.bf16 %v727_v33, %v723_v42  ;;  %v944_v63 = vpack.c.bf16 %v4541_v27, %v4539_v62  ;;  %v5279_v30 = vld [vmem:[%s7954_s2 + $0x50] sm:$0xff]  ;;  %v6146_v27 = vld [vmem:[%s7954_s2 + $0x40] sm:$0xff] }
 0x110   : > { %v780_v25 = vpack.c.bf16 %v728_v23, %v724_v36  ;;  %1018 = vperm.xlu2 %4455, %v5279_v30   ;;  %v522_v14 = vmul.f32 %v8054_v17, %v6027_v13  ;;  %v591_v16 = vadd.f32 %v527_v60, %v387_v29  ;;  %v523_v7 = vmul.f32 %v5702_v51, %v6027_v13 }
 0x111   : > { %v817_v56 = vunpack.c.l.bf16 %v777_v8  ;;  %v821_v10 = vunpack.c.h.bf16 %v777_v8  ;;  %v818_v38 = vunpack.c.l.bf16 %v778_v40  ;;  %1240 = vmatpush.bf16.msra.mxu3 %v944_v63  ;;  %v822_v0 = vunpack.c.h.bf16 %v778_v40  ;;  %8055 = vst [vmem:[#allocation20_spill] sm:$0xff] %v6146_v27  ;;  %1010 = vperm.xlu1 %4454, %v6146_v27  }
 0x112   : > { %v819_v1 = vunpack.c.l.bf16 %v779_v26  ;;  %v823_v24 = vunpack.c.h.bf16 %v779_v26  ;;  %v820_v9 = vunpack.c.l.bf16 %v780_v25  ;;  %v524_v31 = vmul.f32 %v5706_v52, %v6027_v13 }
 0x113   : > { %4542 = vtanh.f32 %v817_v56  ;;  %v824_v53 = vunpack.c.h.bf16 %v780_v25  ;;  %v592_v59 = vadd.f32 %v528_v12, %v388_v3  ;;  %v517_v62 = vmul.f32 %v8053_v19, %v443_v54 }
 0x114   : > { %4544 = vtanh.f32 %v821_v10  ;;  %v518_v33 = vmul.f32 %v8054_v17, %v443_v54  ;;  %v519_v28 = vmul.f32 %v5702_v51, %v443_v54  ;;  %v513_v49 = vmul.f32 %v8053_v19, %v6081_v35 }
 0x115   : > { %v6106_v15 = vpop.permute.xlu1 %286  ;;  %4546 = vtanh.f32 %v818_v38  ;;  %v520_v39 = vmul.f32 %v5706_v52, %v443_v54  ;;  %v514_v13 = vmul.f32 %v8054_v17, %v6081_v35  ;;  %v515_v40 = vmul.f32 %v5702_v51, %v6081_v35  ;;  %v5281_v17 = vld [vmem:[%s7954_s2 + $0x30] sm:$0xff]  ;;  %v647_v54 = vpop.permute.xlu2 %646 }
 0x116   : > { %4548 = vtanh.f32 %v822_v0  ;;  %v585_v43 = vadd.f32 %v521_v50, %v381_v57  ;;  %v586_v29 = vadd.f32 %v522_v14, %v382_v22  ;;  %v587_v44 = vadd.f32 %v523_v7, %v383_v20  ;;  %1002 = vperm.xlu0 %4453, %v5281_v17   ;;  %v6171_v14 = vld [vmem:[%s7954_s2 + $0x38] sm:$0xff]  ;;  %v6184_v17 = vld [vmem:[%s7954_s2 + $0x10] sm:$0xff] }
 0x117   : > { %4550 = vtanh.f32 %v819_v1  ;;  %v588_v36 = vadd.f32 %v524_v31, %v384_v6  ;;  %v717_v51 = vadd.f32 %v655_v18, %v589_v32  ;;  %v377_v26 = vmul.f32 %v5683_v45, %v6106_v15  ;;  %8056 = vst [vmem:[#allocation16_spill] sm:$0xff] %v6171_v14 }
 0x118   : > { %4552 = vtanh.f32 %v823_v24  ;;  %v378_v63 = vmul.f32 %v5685_v46, %v6106_v15  ;;  %v718_v57 = vadd.f32 %v655_v18, %v590_v37  ;;  %1014 = vperm.xlu2 %4455, %v5282_v58   ;;  %v719_v0 = vadd.f32 %v655_v18, %v591_v16  ;;  %8057 = vst [vmem:[#allocation17_spill] sm:$0xff] %v6184_v17 }
 0x119   : > { %v4543_v41 = vpop.eup %4542  ;;  %4554 = vtanh.f32 %v820_v9  ;;  %v379_v45 = vmul.f32 %v5687_v47, %v6106_v15  ;;  %v577_v46 = vadd.f32 %v513_v49, %v6104_v4  ;;  %v380_v60 = vmul.f32 %v5689_v48, %v6106_v15  ;;  %1006 = vperm.xlu1 %4454, %v6171_v14  }
 0x11a   : > { %v4545_v42 = vpop.eup %4544  ;;  %4556 = vtanh.f32 %v824_v53  ;;  %v581_v2 = vadd.f32 %v517_v62, %v377_v26  ;;  %v582_v12 = vadd.f32 %v518_v33, %v378_v63  ;;  %v578_v52 = vadd.f32 %v514_v13, %v6114_v21 }
 0x11b   : > { %v4547_v34 = vpop.eup %4546  ;;  %v937_v8 = vpack.c.bf16 %v4545_v42, %v4543_v41  ;;  %v720_v37 = vadd.f32 %v655_v18, %v592_v59  ;;  %v583_v4 = vadd.f32 %v519_v28, %v379_v45  ;;  %v579_v48 = vadd.f32 %v515_v40, %v6117_v61  ;;  %v5284_v41 = vld [vmem:[%s7954_s2 + $0x28] sm:$0xff] }
 0x11c   : > { %v4549_v19 = vpop.eup %4548  ;;  %v584_v21 = vadd.f32 %v520_v39, %v380_v60  ;;  %v580_v9 = vadd.f32 %v516_v55, %v6120_v5  ;;  %v709_v7 = vadd.f32 %v647_v54, %v581_v2  ;;  %v710_v61 = vadd.f32 %v647_v54, %v582_v12  ;;  %v5285_v5 = vld [vmem:[%s7954_s2 + $0x20] sm:$0xff] }
 0x11d   : > { %1094 = vmatpush.bf16.msra.mxu0 %v937_v8  ;;  %v938_v56 = vpack.c.bf16 %v4549_v19, %v4547_v34  ;;  %v4551_v38 = vpop.eup %4550  ;;  %v711_v28 = vadd.f32 %v647_v54, %v583_v4 }
 0x11e   : > { %v651_v10 = vpop.permute.xlu1 %650  ;;  %v4553_v6 = vpop.eup %4552  ;;  %998 = vperm.xlu0 %4453, %v5284_v41   ;;  %v4330_v41 = vld [vmem:[#allocation2 + $0x30] sm:$0xff] }
 0x11f   : > { %v713_v23 = vadd.f32 %v651_v10, %v585_v43  ;;  %v714_v22 = vadd.f32 %v651_v10, %v586_v29  ;;  %v715_v20 = vadd.f32 %v651_v10, %v587_v44  ;;  %1143 = vmatpush.bf16.msra.mxu1 %v938_v56  ;;  %v716_v25 = vadd.f32 %v651_v10, %v588_v36  ;;  %v4555_v1 = vpop.eup %4554  ;;  %v5287_v56 = vld [vmem:[%s7954_s2] sm:$0xff] }
 0x120   : > { %v939_v32 = vpack.c.bf16 %v4553_v6, %v4551_v38  ;;  %v4557_v35 = vpop.eup %4556  ;;  %994 = vperm.xlu2 %4455, %v5285_v5   ;;  %v712_v43 = vadd.f32 %v647_v54, %v584_v21  ;;  %v4327_v21 = vld [vmem:[#allocation2 + $0x18] sm:$0xff] }
 0x121   : > { %v773_v11 = vpack.c.bf16 %v717_v51, %v713_v23  ;;  %v774_v3 = vpack.c.bf16 %v718_v57, %v714_v22  ;;  %v775_v47 = vpack.c.bf16 %v719_v0, %v715_v20  ;;  %v940_v50 = vpack.c.bf16 %v4557_v35, %v4555_v1  ;;  %986 = vperm.xlu1 %4454, %v6184_v17   ;;  %v5288_v23 = vld [vmem:[%s7954_s2 + $0x18] sm:$0xff]  ;;  %v4324_v35 = vld [vmem:[#allocation2] sm:$0xff] }
 0x122   : > { %1192 = vmatpush.bf16.msra.mxu2 %v939_v32  ;;  %v776_v16 = vpack.c.bf16 %v720_v37, %v716_v25 }
 0x123   : > { %v809_v24 = vunpack.c.l.bf16 %v773_v11  ;;  %v813_v30 = vunpack.c.h.bf16 %v773_v11  ;;  %v810_v15 = vunpack.c.l.bf16 %v774_v3  ;;  %1241 = vmatpush.bf16.msra.mxu3 %v940_v50  ;;  %v814_v53 = vunpack.c.h.bf16 %v774_v3  ;;  %v6196_v11 = vld [vmem:[%s7954_s2 + $0x8] sm:$0xff] }
 0x124   : > { %v811_v33 = vunpack.c.l.bf16 %v775_v47  ;;  %v815_v34 = vunpack.c.h.bf16 %v775_v47  ;;  %v812_v8 = vunpack.c.l.bf16 %v776_v16  ;;  %v816_v13 = vunpack.c.h.bf16 %v776_v16  ;;  %8058 = vst [vmem:[#allocation18_spill] sm:$0xff] %v6196_v11  ;;  %v4328_v16 = vld [vmem:[#allocation2 + $0x20] sm:$0xff] }
 0x125   : > { %4558 = vtanh.f32 %v809_v24 }
 0x126   : > { %v643_v31 = vpop.permute.xlu1 %642  ;;  %4560 = vtanh.f32 %v813_v30  ;;  %978 = vperm.xlu0 %4453, %v5287_v56  }
 0x127   : > { %v705_v42 = vadd.f32 %v643_v31, %v577_v46  ;;  %v706_v59 = vadd.f32 %v643_v31, %v578_v52  ;;  %v707_v62 = vadd.f32 %v643_v31, %v579_v48  ;;  %4562 = vtanh.f32 %v810_v15  ;;  %v4325_v48 = vld [vmem:[#allocation2 + $0x8] sm:$0xff]  ;;  %v4326_v15 = vld [vmem:[#allocation2 + $0x10] sm:$0xff] }
 0x128   : > { %v708_v49 = vadd.f32 %v643_v31, %v580_v9  ;;  %4564 = vtanh.f32 %v814_v53  ;;  %990 = vperm.xlu2 %4455, %v5288_v23   ;;  %v4329_v9 = vld [vmem:[#allocation2 + $0x28] sm:$0xff] }
 0x129   : > { %v769_v18 = vpack.c.bf16 %v709_v7, %v705_v42  ;;  %v770_v39 = vpack.c.bf16 %v710_v61, %v706_v59  ;;  %v771_v19 = vpack.c.bf16 %v711_v28, %v707_v62  ;;  %4566 = vtanh.f32 %v811_v33  ;;  %982 = vperm.xlu1 %4454, %v6196_v11   ;;  %v4331_v7 = vld [vmem:[#allocation2 + $0x38] sm:$0xff] }
 0x12a   : > { %4568 = vtanh.f32 %v815_v34  ;;  %v772_v51 = vpack.c.bf16 %v712_v43, %v708_v49 }
 0x12b   : > { %v4559_v40 = vpop.eup %4558  ;;  %v801_v29 = vunpack.c.l.bf16 %v769_v18  ;;  %v805_v36 = vunpack.c.h.bf16 %v769_v18  ;;  %4570 = vtanh.f32 %v812_v8  ;;  %v802_v63 = vunpack.c.l.bf16 %v770_v39 }
 0x12c   : > { %v4561_v44 = vpop.eup %4560  ;;  %4572 = vtanh.f32 %v816_v13  ;;  %v806_v38 = vunpack.c.h.bf16 %v770_v39  ;;  %v803_v57 = vunpack.c.l.bf16 %v771_v19  ;;  %v807_v20 = vunpack.c.h.bf16 %v771_v19 }
 0x12d   : > { %v933_v26 = vpack.c.bf16 %v4561_v44, %v4559_v40  ;;  %v4563_v10 = vpop.eup %4562  ;;  %4574 = vtanh.f32 %v801_v29  ;;  %v804_v0 = vunpack.c.l.bf16 %v772_v51  ;;  %v808_v46 = vunpack.c.h.bf16 %v772_v51 }
 0x12e   : > { %v4565_v22 = vpop.eup %4564  ;;  %4576 = vtanh.f32 %v805_v36 }
 0x12f   : > { %1095 = vmatpush.bf16.msra.mxu0 %v933_v26  ;;  %v4567_v58 = vpop.eup %4566  ;;  %v934_v55 = vpack.c.bf16 %v4565_v22, %v4563_v10  ;;  %4578 = vtanh.f32 %v802_v63 }
 0x130   : > { %v4569_v45 = vpop.eup %4568  ;;  %4580 = vtanh.f32 %v806_v38 }
 0x131   : > { %v4571_v6 = vpop.eup %4570  ;;  %1144 = vmatpush.bf16.msra.mxu1 %v934_v55  ;;  %v935_v60 = vpack.c.bf16 %v4569_v45, %v4567_v58  ;;  %4582 = vtanh.f32 %v803_v57 }
 0x132   : > { %v4573_v25 = vpop.eup %4572  ;;  %4584 = vtanh.f32 %v807_v20 }
 0x133   : > { %v4575_v3 = vpop.eup %4574  ;;  %1193 = vmatpush.bf16.msra.mxu2 %v935_v60  ;;  %v936_v1 = vpack.c.bf16 %v4573_v25, %v4571_v6  ;;  %4586 = vtanh.f32 %v804_v0 }
 0x134   : > { %v4577_v2 = vpop.eup %4576  ;;  %4588 = vtanh.f32 %v808_v46 }
 0x135   : > { %v4579_v12 = vpop.eup %4578  ;;  %1242 = vmatpush.bf16.msra.mxu3 %v936_v1  ;;  %v929_v32 = vpack.c.bf16 %v4577_v2, %v4575_v3 }
 0x136   : > { %v4581_v52 = vpop.eup %4580 }
 0x137   : > { %v4583_v37 = vpop.eup %4582  ;;  %1096 = vmatpush.bf16.msra.mxu0 %v929_v32  ;;  %v930_v54 = vpack.c.bf16 %v4581_v52, %v4579_v12 }
 0x138   : > { %v4585_v47 = vpop.eup %4584 }
 0x139   : > { %v4587_v24 = vpop.eup %4586  ;;  %1145 = vmatpush.bf16.msra.mxu1 %v930_v54  ;;  %v931_v30 = vpack.c.bf16 %v4585_v47, %v4583_v37 }
 0x13a   : > { %v4589_v4 = vpop.eup %4588  ;;  %1097 = vmatmul.bf16.vlgmr.msra.gmra.mxu0 %v4324_v35 }
 0x13b   : > { %1194 = vmatpush.bf16.msra.mxu2 %v931_v30  ;;  %v932_v50 = vpack.c.bf16 %v4589_v4, %v4587_v24 }
 0x13c   : > { %1146 = vmatmul.bf16.vlgmr.msra.gmra.mxu1 %v4324_v35 }
 0x13d   : > { %1243 = vmatpush.bf16.msra.mxu3 %v932_v50 }
 0x13e   : > { %1195 = vmatmul.bf16.vlgmr.msra.gmra.mxu2 %v4324_v35 }
 0x140   : > { %1244 = vmatmul.bf16.vlgmr.msra.gmra.mxu3 %v4324_v35 }
 0x14a   : > { %1102 = vmatmul.bf16.gmra.mxu0 %v4325_v48 }
 0x14c   : > { %1151 = vmatmul.bf16.gmra.mxu1 %v4325_v48 }
 0x14e   : > { %1200 = vmatmul.bf16.gmra.mxu2 %v4325_v48 }
 0x150   : > { %1249 = vmatmul.bf16.gmra.mxu3 %v4325_v48 }
 0x15a   : > { %1107 = vmatmul.bf16.gmra.mxu0 %v4326_v15 }
 0x15c   : > { %1156 = vmatmul.bf16.gmra.mxu1 %v4326_v15  ;;  %v6241_v22 = vpop.permute.xlu2 %1026 }
 0x15e   : > { %1205 = vmatmul.bf16.gmra.mxu2 %v4326_v15 }
 0x160   : > { %1254 = vmatmul.bf16.gmra.mxu3 %v4326_v15 }
 0x169   : > { %v6223_v29 = vpop.permute.xlu1 %1038 }
 0x16a   : > { %1112 = vmatmul.bf16.gmra.mxu0 %v4327_v21  ;;  %v6255_v60 = vpop.permute.xlu2 %1018 }
 0x16c   : > { %1161 = vmatmul.bf16.gmra.mxu1 %v4327_v21 }
 0x16e   : > { %1210 = vmatmul.bf16.gmra.mxu2 %v4327_v21 }
 0x16f   : > { %v6229_v63 = vpop.permute.xlu0 %1034 }
 0x170   : > { %1259 = vmatmul.bf16.gmra.mxu3 %v4327_v21 }
 0x172   : > { %v6273_v37 = vpop.permute.xlu2 %1014 }
 0x179   : > { %v6231_v56 = vpop.permute.xlu1 %1030 }
 0x17a   : > { %1117 = vmatmul.bf16.gmra.mxu0 %v4328_v16  ;;  %v6289_v15 = vpop.permute.xlu2 %994 }
 0x17c   : > { %1166 = vmatmul.bf16.gmra.mxu1 %v4328_v16 }
 0x17e   : > { %1215 = vmatmul.bf16.gmra.mxu2 %v4328_v16  ;;  %v6243_v58 = vpop.permute.xlu0 %1022 }
 0x180   : > { %1264 = vmatmul.bf16.gmra.mxu3 %v4328_v16 }
 0x183   : > { %v6245_v55 = vpop.permute.xlu1 %1010 }
 0x188   : > { %v6261_v1 = vpop.permute.xlu0 %1002 }
 0x18a   : > { %1122 = vmatmul.bf16.gmra.mxu0 %v4329_v9 }
 0x18b   : > { %v6263_v2 = vpop.permute.xlu1 %1006 }
 0x18c   : > { %1171 = vmatmul.bf16.gmra.mxu1 %v4329_v9 }
 0x18e   : > { %1220 = vmatmul.bf16.gmra.mxu2 %v4329_v9 }
 0x190   : > { %1269 = vmatmul.bf16.gmra.mxu3 %v4329_v9  ;;  %v6277_v47 = vpop.permute.xlu0 %998 }
 0x191   : > { %8068 = vst [vmem:[#allocation26_spill] sm:$0xff] %v6277_v47 }
 0x193   : > { %v6279_v24 = vpop.permute.xlu1 %986 }
 0x198   : > { %v6291_v21 = vpop.permute.xlu0 %978 }
 0x19a   : > { %1127 = vmatmul.bf16.gmra.mxu0 %v4330_v41 }
 0x19b   : > { %v6293_v16 = vpop.permute.xlu1 %982 }
 0x19c   : > { %1176 = vmatmul.bf16.gmra.mxu1 %v4330_v41 }
 0x19e   : > { %1225 = vmatmul.bf16.gmra.mxu2 %v4330_v41 }
 0x1a0   : > { %1274 = vmatmul.bf16.gmra.mxu3 %v4330_v41 }
 0x1aa   : > { %1132 = vmatmul.bf16.gmra.mxu0 %v4331_v7 }
 0x1ac   : > { %1181 = vmatmul.bf16.gmra.mxu1 %v4331_v7 }
 0x1ae   : > { %1230 = vmatmul.bf16.gmra.mxu2 %v4331_v7 }
 0x1b0   : > { %1279 = vmatmul.bf16.gmra.mxu3 %v4331_v7 }
 0x1b7   : > { %v1098_v61 = vpop.f32.mrf.mxu0 }
 0x1b8   : > { %v1099_v9 = vadd.f32 %v1098_v61, %v6291_v21 }
 0x1b9   : > { %v1147_v31 = vpop.f32.mrf.mxu1 }
 0x1ba   : > { %v1148_v11 = vadd.f32 %v1147_v31, %v6291_v21 }
 0x1bf   : > { %v1100_v53 = vpop.f32.mrf.mxu0 }
 0x1c0   : > { %v1101_v41 = vadd.f32 %v1100_v53, %v6293_v16 }
 0x1c1   : > { %v6199_v42 = vpop.f32.mrf.mxu2  ;;  %v1149_v59 = vpop.f32.mrf.mxu1 }
 0x1c2   : > { %v1150_v17 = vadd.f32 %v1149_v59, %v6293_v16 }
 0x1c3   : > { %v6201_v62 = vpop.f32.mrf.mxu3 }
 0x1c4   : > { %8059 = vst [vmem:[#allocation19_spill] sm:$0xff] %v6201_v62  ;;  %v1286_v61 = vpack.c.bf16 %v1150_v17, %v1148_v11 }
 0x1c7   : > { %v6203_v33 = vpop.f32.mrf.mxu0 }
 0x1c8   : > { %v1104_v31 = vadd.f32 %v6203_v33, %v6279_v24  ;;  %v1318_v33 = vunpack.c.l.bf16 %v1286_v61 }
 0x1c9   : > { %v6205_v5 = vpop.f32.mrf.mxu2  ;;  %v6207_v28 = vpop.f32.mrf.mxu1 }
 0x1ca   : > { %v1153_v17 = vadd.f32 %v6207_v28, %v6279_v24 }
 0x1cb   : > { %v6209_v34 = vpop.f32.mrf.mxu3 }
 0x1cc   : > { %8060 = vst [vmem:[#allocation13_spill] sm:$0xff] %v6209_v34  ;;  %v1285_v34 = vpack.c.bf16 %v1101_v41, %v1099_v9 }
 0x1cf   : > { %v6211_v49 = vpop.f32.mrf.mxu0 }
 0x1d1   : > { %v6213_v18 = vpop.f32.mrf.mxu2  ;;  %v6215_v39 = vpop.f32.mrf.mxu1 }
 0x1d3   : > { %v6217_v8 = vpop.f32.mrf.mxu3 }
 0x1d4   : > { %8061 = vst [vmem:[#allocation14_spill] sm:$0xff] %v6217_v8 }
 0x1d7   : > { %v1108_v13 = vpop.f32.mrf.mxu0 }
 0x1d8   : > { %v1109_v8 = vadd.f32 %v1108_v13, %v6289_v15  ;;  %v1317_v13 = vunpack.c.l.bf16 %v1285_v34 }
 0x1d9   : > { %v6219_v40 = vpop.f32.mrf.mxu2  ;;  %v1157_v43 = vpop.f32.mrf.mxu1 }
 0x1da   : > { %v1158_v53 = vadd.f32 %v1157_v43, %v6289_v15  ;;  %4590 = vtanh.f32 %v1317_v13 }
 0x1db   : > { %v6221_v19 = vpop.f32.mrf.mxu3 }
 0x1dc   : > { %8062 = vst [vmem:[#allocation15_spill] sm:$0xff] %v6221_v19 }
 0x1df   : > { %v1110_v44 = vpop.f32.mrf.mxu0 }
 0x1e0   : > { %v1111_v27 = vadd.f32 %v1110_v44, %v6277_v47  ;;  %v1321_v44 = vunpack.c.h.bf16 %v1285_v34 }
 0x1e1   : > { %v6225_v36 = vpop.f32.mrf.mxu2  ;;  %v1159_v51 = vpop.f32.mrf.mxu1 }
 0x1e2   : > { %v1293_v9 = vpack.c.bf16 %v1111_v27, %v1109_v8  ;;  %4592 = vtanh.f32 %v1321_v44  ;;  %v6340_v44 = vpop.eup %4590 }
 0x1e3   : > { %v6227_v26 = vpop.f32.mrf.mxu3  ;;  %4594 = vtanh.f32 %v1318_v33  ;;  %8069 = vst [vmem:[#allocation27_spill] sm:$0xff] %v6340_v44 }
 0x1e4   : > { %8063 = vst [vmem:[#allocation21_spill] sm:$0xff] %v6227_v26  ;;  %v1160_v26 = vadd.f32 %v1159_v51, %v6277_v47  ;;  %v1337_v8 = vunpack.c.h.bf16 %v1293_v9 }
 0x1e6   : > { %v1294_v43 = vpack.c.bf16 %v1160_v26, %v1158_v53 }
 0x1e7   : > { %v6233_v10 = vpop.f32.mrf.mxu0 }
 0x1e8   : > { %v1114_v34 = vadd.f32 %v6233_v10, %v6261_v1  ;;  %v1334_v26 = vunpack.c.l.bf16 %v1294_v43  ;;  %v1338_v53 = vunpack.c.h.bf16 %v1294_v43 }
 0x1e9   : > { %v6235_v38 = vpop.f32.mrf.mxu2  ;;  %v6237_v57 = vpop.f32.mrf.mxu1 }
 0x1ea   : > { %8064 = vst [vmem:[#allocation22_spill] sm:$0xff] %v6235_v38  ;;  %v1322_v38 = vunpack.c.h.bf16 %v1286_v61 }
 0x1eb   : > { %v6239_v23 = vpop.f32.mrf.mxu3 }
 0x1ec   : > { %8065 = vst [vmem:[#allocation23_spill] sm:$0xff] %v6239_v23  ;;  %v6311_v23 = vpop.permute.xlu2 %990  ;;  %4596 = vtanh.f32 %v1322_v38  ;;  %v6344_v38 = vpop.eup %4592 }
 0x1ed   : > { %v1106_v59 = vadd.f32 %v6211_v49, %v6311_v23  ;;  %v1155_v11 = vadd.f32 %v6215_v39, %v6311_v23  ;;  %v1333_v49 = vunpack.c.l.bf16 %v1293_v9  ;;  %8070 = vst [vmem:[#allocation28_spill] sm:$0xff] %v6344_v38  ;;  %v6346_v43 = vpop.eup %4594 }
 0x1ee   : > { %8071 = vst [vmem:[#allocation29_spill] sm:$0xff] %v6346_v43 }
 0x1ef   : > { %v1115_v20 = vpop.f32.mrf.mxu0  ;;  %v1289_v47 = vpack.c.bf16 %v1106_v59, %v1104_v31  ;;  %v1290_v39 = vpack.c.bf16 %v1155_v11, %v1153_v17  ;;  %4598 = vtanh.f32 %v1333_v49 }
 0x1f0   : > { %v1116_v28 = vadd.f32 %v1115_v20, %v6263_v2  ;;  %4600 = vtanh.f32 %v1337_v8 }
 0x1f1   : > { %v6247_v0 = vpop.f32.mrf.mxu2  ;;  %v6249_v45 = vpop.f32.mrf.mxu1  ;;  %v1325_v59 = vunpack.c.l.bf16 %v1289_v47  ;;  %v1329_v9 = vunpack.c.h.bf16 %v1289_v47  ;;  %4602 = vtanh.f32 %v1334_v26  ;;  %v1330_v47 = vunpack.c.h.bf16 %v1290_v39 }
 0x1f2   : > { %v1165_v61 = vadd.f32 %v6249_v45, %v6263_v2  ;;  %v1297_v10 = vpack.c.bf16 %v1116_v28, %v1114_v34  ;;  %v1326_v45 = vunpack.c.l.bf16 %v1290_v39  ;;  %4604 = vtanh.f32 %v1338_v53  ;;  %v6354_v49 = vpop.eup %4596 }
 0x1f3   : > { %v6251_v46 = vpop.f32.mrf.mxu3  ;;  %4606 = vtanh.f32 %v1325_v59  ;;  %8072 = vst [vmem:[#allocation30_spill] sm:$0xff] %v6354_v49 }
 0x1f4   : > { %8066 = vst [vmem:[#allocation24_spill] sm:$0xff] %v6251_v46  ;;  %v1341_v8 = vunpack.c.l.bf16 %v1297_v10  ;;  %4608 = vtanh.f32 %v1329_v9 }
 0x1f5   : > { %v6356_v28 = vpop.eup %4598  ;;  %4610 = vtanh.f32 %v1326_v45 }
 0x1f6   : > { %v6362_v26 = vpop.eup %4600  ;;  %4612 = vtanh.f32 %v1330_v47 }
 0x1f7   : > { %v6253_v6 = vpop.f32.mrf.mxu0  ;;  %v6364_v53 = vpop.eup %4602  ;;  %4614 = vtanh.f32 %v1341_v8 }
 0x1f8   : > { %v1119_v20 = vadd.f32 %v6253_v6, %v6245_v55  ;;  %8073 = vst [vmem:[#allocation31_spill] sm:$0xff] %v6364_v53 }
 0x1f9   : > { %v6257_v25 = vpop.f32.mrf.mxu2  ;;  %v6259_v3 = vpop.f32.mrf.mxu1 }
 0x1fa   : > { %v1168_v6 = vadd.f32 %v6259_v3, %v6245_v55 }
 0x1fb   : > { %v6265_v12 = vpop.f32.mrf.mxu3 }
 0x1fc   : > { %8067 = vst [vmem:[#allocation25_spill] sm:$0xff] %v6265_v12  ;;  %v1163_v12 = vadd.f32 %v6237_v57, %v6261_v1 }
 0x1fe   : > { %v1298_v11 = vpack.c.bf16 %v1165_v61, %v1163_v12  ;;  %v1345_v12 = vunpack.c.h.bf16 %v1297_v10 }
 0x1ff   : > { %v6267_v32 = vpop.f32.mrf.mxu0 }
 0x200   : > { %v1121_v13 = vadd.f32 %v6267_v32, %v6273_v37  ;;  %v1346_v61 = vunpack.c.h.bf16 %v1298_v11  ;;  %4616 = vtanh.f32 %v1345_v12 }
 0x201   : > { %v6269_v52 = vpop.f32.mrf.mxu2  ;;  %v6271_v35 = vpop.f32.mrf.mxu1 }
 0x202   : > { %v1170_v32 = vadd.f32 %v6271_v35, %v6273_v37  ;;  %v1301_v34 = vpack.c.bf16 %v1121_v13, %v1119_v20  ;;  %v1342_v35 = vunpack.c.l.bf16 %v1298_v11 }
 0x203   : > { %v6275_v54 = vpop.f32.mrf.mxu3 }
 0x204   : > { %v1302_v59 = vpack.c.bf16 %v1170_v32, %v1168_v6  ;;  %v1353_v11 = vunpack.c.h.bf16 %v1301_v34  ;;  %4618 = vtanh.f32 %v1342_v35 }
 0x205   : > { %4620 = vtanh.f32 %v1346_v61 }
 0x206   : > { %v1350_v8 = vunpack.c.l.bf16 %v1302_v59 }
 0x207   : > { %v6281_v30 = vpop.f32.mrf.mxu0 }
 0x208   : > { %v1124_v39 = vadd.f32 %v6281_v30, %v6255_v60  ;;  %v6370_v30 = vpop.eup %4604 }
 0x209   : > { %v6283_v4 = vpop.f32.mrf.mxu2  ;;  %v6285_v50 = vpop.f32.mrf.mxu1  ;;  %8074 = vst [vmem:[#allocation32_spill] sm:$0xff] %v6370_v30 }
 0x20a   : > { %v1173_v9 = vadd.f32 %v6285_v50, %v6255_v60  ;;  %v6375_v47 = vpop.eup %4606 }
 0x20b   : > { %v6287_v48 = vpop.f32.mrf.mxu3  ;;  %8075 = vst [vmem:[#allocation33_spill] sm:$0xff] %v6375_v47  ;;  %v6377_v49 = vpop.eup %4608 }
 0x20c   : > { %8076 = vst [vmem:[#allocation34_spill] sm:$0xff] %v6377_v49 }
 0x20f   : > { %v6297_v7 = vpop.f32.mrf.mxu0 }
 0x210   : > { %v1126_v3 = vadd.f32 %v6297_v7, %v6243_v58  ;;  %v1349_v7 = vunpack.c.l.bf16 %v1301_v34 }
 0x211   : > { %v6301_v14 = vpop.f32.mrf.mxu2  ;;  %v6303_v62 = vpop.f32.mrf.mxu1 }
 0x212   : > { %v1175_v10 = vadd.f32 %v6303_v62, %v6243_v58  ;;  %v1305_v6 = vpack.c.bf16 %v1126_v3, %v1124_v39  ;;  %v6379_v62 = vpop.eup %4610  ;;  %4622 = vtanh.f32 %v1349_v7 }
 0x213   : > { %v6307_v19 = vpop.f32.mrf.mxu3  ;;  %8077 = vst [vmem:[#allocation35_spill] sm:$0xff] %v6379_v62  ;;  %4624 = vtanh.f32 %v1353_v11 }
 0x214   : > { %v6381_v43 = vpack.c.bf16 %v1175_v10, %v1173_v9  ;;  %v1357_v34 = vunpack.c.l.bf16 %v1305_v6  ;;  %v1361_v39 = vunpack.c.h.bf16 %v1305_v6  ;;  %4626 = vtanh.f32 %v1350_v8 }
 0x216   : > { %v1358_v10 = vunpack.c.l.bf16 %v6381_v43 }
 0x217   : > { %v6317_v41 = vpop.f32.mrf.mxu0 }
 0x218   : > { %v1129_v13 = vadd.f32 %v6317_v41, %v6241_v22  ;;  %v6383_v41 = vpop.eup %4612 }
 0x219   : > { %v6323_v51 = vpop.f32.mrf.mxu2  ;;  %v6325_v46 = vpop.f32.mrf.mxu1  ;;  %8078 = vst [vmem:[#allocation36_spill] sm:$0xff] %v6383_v41 }
 0x21a   : > { %v6385_v12 = vpop.eup %4614  ;;  %v1178_v3 = vadd.f32 %v6325_v46, %v6241_v22 }
 0x21b   : > { %v6327_v27 = vpop.f32.mrf.mxu3  ;;  %v6391_v9 = vpop.eup %4616 }
 0x21f   : > { %v1130_v31 = vpop.f32.mrf.mxu0 }
 0x220   : > { %v1131_v45 = vadd.f32 %v1130_v31, %v6231_v56  ;;  %v1354_v31 = vunpack.c.h.bf16 %v1302_v59  ;;  %v6394_v59 = vpop.eup %4618 }
 0x221   : > { %v6342_v57 = vpop.f32.mrf.mxu2  ;;  %v1179_v17 = vpop.f32.mrf.mxu1 }
 0x222   : > { %v1309_v44 = vpack.c.bf16 %v1131_v45, %v1129_v13  ;;  %v1180_v35 = vadd.f32 %v1179_v17, %v6231_v56  ;;  %4628 = vtanh.f32 %v1354_v31  ;;  %v6398_v6 = vpop.eup %4620 }
 0x223   : > { %v6352_v33 = vpop.f32.mrf.mxu3  ;;  %4630 = vtanh.f32 %v1357_v34  ;;  %v6401_v8 = vpop.eup %4622 }
 0x224   : > { %v1365_v13 = vunpack.c.l.bf16 %v1309_v44  ;;  %v1369_v46 = vunpack.c.h.bf16 %v1309_v44  ;;  %4632 = vtanh.f32 %v1361_v39  ;;  %v1310_v62 = vpack.c.bf16 %v1180_v35, %v1178_v3  ;;  %v6404_v47 = vpop.eup %4624 }
 0x225   : > { %v6412_v44 = vadd.f32 %v6205_v5, %v6293_v16  ;;  %4634 = vtanh.f32 %v1358_v10 }
 0x226   : > { %4636 = vtanh.f32 %v1365_v13 }
 0x227   : > { %v1133_v20 = vpop.f32.mrf.mxu0  ;;  %4638 = vtanh.f32 %v1369_v46  ;;  %v6439_v46 = vadd.f32 %v6257_v25, %v6263_v2  ;;  %v1222_v25 = vadd.f32 %v6301_v14, %v6255_v60 }
 0x228   : > { %v1134_v61 = vadd.f32 %v1133_v20, %v6229_v63 }
 0x229   : > { %v1228_v32 = vpop.f32.mrf.mxu2  ;;  %v1182_v50 = vpop.f32.mrf.mxu1 }
 0x22a   : > { %v1183_v45 = vadd.f32 %v1182_v50, %v6229_v63  ;;  %v1229_v17 = vadd.f32 %v1228_v32, %v6231_v56  ;;  %v6408_v50 = vadd.f32 %v6199_v42, %v6291_v21  ;;  %v1227_v32 = vadd.f32 %v6342_v57, %v6241_v22 }
 0x22b   : > { %v1277_v38 = vpop.f32.mrf.mxu3  ;;  %v6424_v42 = vadd.f32 %v6219_v40, %v6311_v23  ;;  %v1366_v57 = vunpack.c.l.bf16 %v1310_v62 }
 0x22c   : > { %v1311_v5 = vpack.c.bf16 %v1229_v17, %v1227_v32  ;;  %v1217_v17 = vadd.f32 %v6269_v52, %v6245_v55 }
 0x22f   : > { %v1135_v7 = vpop.f32.mrf.mxu0 }
 0x230   : > { %v1136_v11 = vadd.f32 %v1135_v7, %v6223_v29 }
 0x231   : > { %v1231_v20 = vpop.f32.mrf.mxu2  ;;  %v1184_v41 = vpop.f32.mrf.mxu1 }
 0x232   : > { %v1313_v49 = vpack.c.bf16 %v1136_v11, %v1134_v61  ;;  %v1185_v31 = vadd.f32 %v1184_v41, %v6223_v29  ;;  %v6416_v41 = vpop.eup %4626  ;;  %v6420_v61 = vadd.f32 %v6213_v18, %v6279_v24  ;;  %v1370_v18 = vunpack.c.h.bf16 %v1310_v62 }
 0x233   : > { %v1280_v34 = vpop.f32.mrf.mxu3  ;;  %v6426_v10 = vpop.eup %4628  ;;  %v1278_v11 = vadd.f32 %v1277_v38, %v6231_v56  ;;  %v1276_v56 = vadd.f32 %v6352_v33, %v6241_v22  ;;  %v1367_v38 = vunpack.c.l.bf16 %v1311_v5  ;;  %v1232_v52 = vadd.f32 %v1231_v20, %v6229_v63 }
 0x234   : > { %v1373_v39 = vunpack.c.l.bf16 %v1313_v49  ;;  %v1377_v3 = vunpack.c.h.bf16 %v1313_v49  ;;  %v1314_v35 = vpack.c.bf16 %v1185_v31, %v1183_v45  ;;  %v6428_v49 = vpop.eup %4630  ;;  %v6432_v45 = vadd.f32 %v6225_v36, %v6289_v15 }
 0x235   : > { %v6435_v40 = vpop.eup %4632  ;;  %v1362_v31 = vunpack.c.h.bf16 %v6381_v43  ;;  %v1224_v36 = vadd.f32 %v6323_v51, %v6243_v58  ;;  %v1371_v51 = vunpack.c.h.bf16 %v1311_v5  ;;  %v1219_v20 = vadd.f32 %v6283_v4, %v6273_v37 }
 0x236   : > { %4640 = vtanh.f32 %v1373_v39  ;;  %v1374_v7 = vunpack.c.l.bf16 %v1314_v35  ;;  %v1378_v13 = vunpack.c.h.bf16 %v1314_v35  ;;  %v6444_v32 = vpop.eup %4634  ;;  %v1273_v35 = vadd.f32 %v6327_v27, %v6243_v58 }
 0x237   : > { %4642 = vtanh.f32 %v1377_v3  ;;  %v4637_v39 = vpop.eup %4636  ;;  %v6462_v53 = vpack.c.bf16 %v1224_v36, %v1222_v25 }
 0x238   : > { %4644 = vtanh.f32 %v1374_v7  ;;  %v4639_v3 = vpop.eup %4638  ;;  %v1312_v7 = vpack.c.bf16 %v1278_v11, %v1276_v56 }
 0x239   : > { %4646 = vtanh.f32 %v1378_v13  ;;  %v1233_v62 = vpop.f32.mrf.mxu2  ;;  %v1281_v13 = vadd.f32 %v1280_v34, %v6229_v63  ;;  %v1268_v63 = vadd.f32 %v6287_v48, %v6273_v37  ;;  %v1359_v37 = vunpack.c.l.bf16 %v6462_v53 }
 0x23a   : > { %4648 = vtanh.f32 %v1366_v57  ;;  %v1234_v43 = vadd.f32 %v1233_v62, %v6223_v29  ;;  %v1271_v62 = vadd.f32 %v6307_v19, %v6255_v60  ;;  %v1368_v34 = vunpack.c.l.bf16 %v1312_v7 }
 0x23b   : > { %4650 = vtanh.f32 %v1370_v18  ;;  %v1282_v22 = vpop.f32.mrf.mxu3  ;;  %v1469_v48 = vpack.c.bf16 %v4639_v3, %v4637_v39 }
 0x23c   : > { %v4641_v33 = vpop.eup %4640  ;;  %4652 = vtanh.f32 %v1362_v31  ;;  %v1315_v30 = vpack.c.bf16 %v1234_v43, %v1232_v52  ;;  %v1283_v14 = vadd.f32 %v1282_v22, %v6223_v29  ;;  %v6466_v29 = vpack.c.bf16 %v1273_v35, %v1271_v62  ;;  %v8079_v22 = vld [vmem:[#allocation25_spill] sm:$0xff] }
 0x23d   : > { %v4643_v57 = vpop.eup %4642  ;;  %4654 = vtanh.f32 %v1367_v38  ;;  %v1372_v38 = vunpack.c.h.bf16 %v1312_v7  ;;  %v6470_v52 = vpack.c.bf16 %v1219_v20, %v1217_v17  ;;  %v5433_v43 = vmov 4   ;;  %v6483_v17 = vld [vmem:[%s7954_s2 + $0x78] sm:$0xff]  ;;  %v8080_v7 = vld [vmem:[#allocation26_spill] sm:$0xff] }
 0x23e   : > { %v4645_v58 = vpop.eup %4644  ;;  %v1375_v27 = vunpack.c.l.bf16 %v1315_v30  ;;  %v1379_v5 = vunpack.c.h.bf16 %v1315_v30  ;;  %v1316_v18 = vpack.c.bf16 %v1283_v14, %v1281_v13  ;;  %v1473_v11 = vpack.c.bf16 %v4643_v57, %v4641_v33  ;;  %4457 = vset.pattern.permute.xlu0 %v5433_v43  ;;  %4456 = vset.pattern.permute.xlu2 %v5433_v43  ;;  %v8081_v33 = vld [vmem:[#allocation22_spill] sm:$0xff]  ;;  %v8082_v14 = vld [vmem:[#allocation24_spill] sm:$0xff] }
 0x23f   : > { %v4647_v31 = vpop.eup %4646  ;;  %4656 = vtanh.f32 %v1371_v51  ;;  %v1266_v30 = vadd.f32 %v6275_v54, %v6245_v55  ;;  %v1212_v51 = vadd.f32 %v6247_v0, %v6261_v1  ;;  %v1263_v55 = vadd.f32 %v8079_v22, %v6263_v2  ;;  %1555 = vperm.xlu0 %4457, %v6483_v17   ;;  %v6490_v2 = vld [vmem:[%s7954_s2 + $0x70] sm:$0xff]  ;;  %4458 = vset.pattern.permute.xlu1 %v5433_v43 }
 0x240   : > { %v4649_v4 = vpop.eup %4648  ;;  %4658 = vtanh.f32 %v1375_v27  ;;  %v1376_v56 = vunpack.c.l.bf16 %v1316_v18  ;;  %v1380_v19 = vunpack.c.h.bf16 %v1316_v18  ;;  %1606 = vmatpush.bf16.msrb.mxu0 %v1473_v11  ;;  %v1474_v60 = vpack.c.bf16 %v4647_v31, %v4645_v58  ;;  %1551 = vperm.xlu2 %4456, %v6490_v2   ;;  %v6505_v18 = vld [vmem:[%s7954_s2 + $0x60] sm:$0xff]  ;;  %v8083_v11 = vld [vmem:[#allocation23_spill] sm:$0xff] }
 0x241   : > { %v4651_v36 = vpop.eup %4650  ;;  %4660 = vtanh.f32 %v1379_v5  ;;  %v1363_v54 = vunpack.c.h.bf16 %v6462_v53  ;;  %v1304_v39 = vpack.c.bf16 %v1268_v63, %v1266_v30  ;;  %v1360_v3 = vunpack.c.l.bf16 %v6466_v29  ;;  %1543 = vperm.xlu1 %4458, %v6505_v18  }
 0x242   : > { %v4653_v25 = vpop.eup %4652  ;;  %4662 = vtanh.f32 %v1376_v56  ;;  %1655 = vmatpush.bf16.msrb.mxu1 %v1474_v60  ;;  %v1470_v0 = vpack.c.bf16 %v4651_v36, %v4649_v4  ;;  %v1209_v13 = vadd.f32 %v8081_v33, %v8080_v7  ;;  %v1261_v57 = vadd.f32 %v8082_v14, %v6261_v1  ;;  %v8084_v56 = vld [vmem:[#allocation21_spill] sm:$0xff] }
 0x243   : > { %v6473_v35 = vpop.eup %4654  ;;  %4664 = vtanh.f32 %v1380_v19  ;;  %v1364_v20 = vunpack.c.h.bf16 %v6466_v29  ;;  %v1299_v58 = vpack.c.bf16 %v6439_v46, %v1212_v51  ;;  %v1351_v27 = vunpack.c.l.bf16 %v6470_v52 }
 0x244   : > { %4666 = vtanh.f32 %v1368_v34  ;;  %1607 = vmatpush.bf16.msrb.mxu0 %v1469_v48  ;;  %v1465_v5 = vpack.c.bf16 %v6435_v40, %v6428_v49  ;;  %v1258_v31 = vadd.f32 %v8083_v11, %v8080_v7  ;;  %v6510_v63 = vpack.c.bf16 %v1263_v55, %v1261_v57 }
 0x245   : > { %v4657_v53 = vpop.eup %4656  ;;  %4668 = vtanh.f32 %v1372_v38  ;;  %v1355_v46 = vunpack.c.h.bf16 %v6470_v52  ;;  %v1352_v34 = vunpack.c.l.bf16 %v1304_v39  ;;  %v1466_v40 = vpack.c.bf16 %v4653_v25, %v6444_v32  ;;  %v8085_v32 = vld [vmem:[#allocation15_spill] sm:$0xff] }
 0x246   : > { %v4659_v62 = vpop.eup %4658  ;;  %4670 = vtanh.f32 %v1359_v37  ;;  %1656 = vmatpush.bf16.msrb.mxu1 %v1470_v0  ;;  %v1256_v19 = vadd.f32 %v8084_v56, %v6289_v15  ;;  %v6517_v60 = vpack.c.bf16 %v1209_v13, %v6432_v45  ;;  %v1356_v36 = vunpack.c.h.bf16 %v1304_v39  ;;  %v8086_v45 = vld [vmem:[#allocation20_spill] sm:$0xff]  ;;  %v6540_v0 = vld [vmem:[%s7954_s2 + $0x68] sm:$0xff] }
 0x247   : > { %v4661_v1 = vpop.eup %4660  ;;  %4672 = vtanh.f32 %v1363_v54  ;;  %v1343_v38 = vunpack.c.l.bf16 %v1299_v58  ;;  %v1461_v37 = vpack.c.bf16 %v6404_v47, %v6401_v8  ;;  %v1253_v25 = vadd.f32 %v8085_v32, %v6311_v23  ;;  %1527 = vperm.xlu0 %4457, %v8086_v45   ;;  %v8087_v23 = vld [vmem:[#allocation14_spill] sm:$0xff]  ;;  %v6552_v13 = vld [vmem:[%s7954_s2 + $0x50] sm:$0xff] }
 0x248   : > { %v4663_v29 = vpop.eup %4662  ;;  %4674 = vtanh.f32 %v1360_v3  ;;  %v1475_v49 = vpack.c.bf16 %v4661_v1, %v4659_v62  ;;  %1608 = vmatpush.bf16.msrb.mxu0 %v1465_v5  ;;  %v6523_v43 = vpack.c.bf16 %v1258_v31, %v1256_v19  ;;  %v1347_v15 = vunpack.c.h.bf16 %v1299_v58  ;;  %1547 = vperm.xlu2 %4456, %v6540_v0  }
 0x249   : > { %v4665_v4 = vpop.eup %4664  ;;  %4676 = vtanh.f32 %v1364_v20  ;;  %v1344_v22 = vunpack.c.l.bf16 %v6510_v63  ;;  %v1471_v55 = vpack.c.bf16 %v4657_v53, %v6473_v35  ;;  %v1462_v47 = vpack.c.bf16 %v6426_v10, %v6416_v41  ;;  %v8088_v10 = vld [vmem:[#allocation13_spill] sm:$0xff]  ;;  %1535 = vperm.xlu1 %4458, %v6552_v13   ;;  %v8089_v20 = vld [vmem:[#allocation19_spill] sm:$0xff] }
 0x24a   : > { %v4667_v30 = vpop.eup %4666  ;;  %4678 = vtanh.f32 %v1351_v27  ;;  %1704 = vmatpush.bf16.msrb.mxu2 %v1475_v49  ;;  %v1476_v52 = vpack.c.bf16 %v4665_v4, %v4663_v29  ;;  %1657 = vmatpush.bf16.msrb.mxu1 %v1466_v40  ;;  %v1251_v54 = vadd.f32 %v8087_v23, %v6279_v24  ;;  %v6534_v39 = vpack.c.bf16 %v6424_v42, %v6420_v61  ;;  %v8091_v29 = vld [vmem:[#allocation31_spill] sm:$0xff]  ;;  %v8098_v23 = vld [vmem:[#allocation28_spill] sm:$0xff] }
 0x24b   : > { %v4669_v48 = vpop.eup %4668  ;;  %4680 = vtanh.f32 %v1355_v46  ;;  %v1348_v3 = vunpack.c.h.bf16 %v6510_v63  ;;  %v1335_v41 = vunpack.c.l.bf16 %v6517_v60  ;;  %v1457_v61 = vpack.c.bf16 %v6391_v9, %v6385_v12  ;;  %v8090_v63 = vld [vmem:[#allocation16_spill] sm:$0xff] }
 0x24c   : > { %v4671_v51 = vpop.eup %4670  ;;  %4682 = vtanh.f32 %v1352_v34  ;;  %1753 = vmatpush.bf16.msrb.mxu3 %v1476_v52  ;;  %1609 = vmatpush.bf16.msrb.mxu0 %v1461_v37  ;;  %v1472_v24 = vpack.c.bf16 %v4669_v48, %v4667_v30  ;;  %v1248_v53 = vadd.f32 %v8088_v10, %v6293_v16  ;;  %v1292_v7 = vpack.c.bf16 %v1253_v25, %v1251_v54  ;;  %v8092_v34 = vld [vmem:[#allocation32_spill] sm:$0xff]  ;;  %v6581_v37 = vld [vmem:[%s7954_s2 + $0x48] sm:$0xff] }
 0x24d   : > { %v4673_v8 = vpop.eup %4672  ;;  %4684 = vtanh.f32 %v1356_v36  ;;  %v1339_v33 = vunpack.c.h.bf16 %v6517_v60  ;;  %v1336_v57 = vunpack.c.l.bf16 %v6523_v43  ;;  %v1458_v16 = vpack.c.bf16 %v6398_v6, %v6394_v59  ;;  %v8093_v60 = vld [vmem:[#allocation33_spill] sm:$0xff]  ;;  %v8094_v36 = vld [vmem:[#allocation34_spill] sm:$0xff] }
 0x24e   : > { %v4675_v35 = vpop.eup %4674  ;;  %4686 = vtanh.f32 %v1343_v38  ;;  %1705 = vmatpush.bf16.msrb.mxu2 %v1471_v55  ;;  %1658 = vmatpush.bf16.msrb.mxu1 %v1462_v47  ;;  %v1467_v12 = vpack.c.bf16 %v4673_v8, %v4671_v51  ;;  %v1246_v62 = vadd.f32 %v8089_v20, %v6291_v21  ;;  %v1287_v58 = vpack.c.bf16 %v6412_v44, %v6408_v50  ;;  %v8097_v8 = vld [vmem:[#allocation27_spill] sm:$0xff] }
 0x24f   : > { %v4677_v42 = vpop.eup %4676  ;;  %4688 = vtanh.f32 %v1347_v15  ;;  %v1340_v27 = vunpack.c.h.bf16 %v6523_v43  ;;  %v1327_v1 = vunpack.c.l.bf16 %v6534_v39  ;;  %v1453_v59 = vpack.c.bf16 %v6362_v26, %v6356_v28  ;;  %1523 = vperm.xlu0 %4457, %v8090_v63   ;;  %v6573_v28 = vld [vmem:[%s7954_s2 + $0x58] sm:$0xff]  ;;  %v8095_v43 = vld [vmem:[#allocation35_spill] sm:$0xff]  ;;  %v8096_v15 = vld [vmem:[#allocation36_spill] sm:$0xff] }
 0x250   : > { %v4679_v14 = vpop.eup %4678  ;;  %4690 = vtanh.f32 %v1344_v22  ;;  %1754 = vmatpush.bf16.msrb.mxu3 %v1472_v24  ;;  %1610 = vmatpush.bf16.msrb.mxu0 %v1457_v61  ;;  %v1468_v11 = vpack.c.bf16 %v4677_v42, %v4675_v35  ;;  %v1288_v31 = vpack.c.bf16 %v1248_v53, %v1246_v62  ;;  %v1331_v21 = vunpack.c.h.bf16 %v6534_v39  ;;  %v8099_v35 = vld [vmem:[#allocation17_spill] sm:$0xff]  ;;  %v8101_v42 = vld [vmem:[#allocation30_spill] sm:$0xff]  ;;  %v4334_v63 = vld [vmem:[#allocation2 + $0x50] sm:$0xff] }
 0x251   : > { %v4681_v9 = vpop.eup %4680  ;;  %4692 = vtanh.f32 %v1348_v3  ;;  %v1328_v44 = vunpack.c.l.bf16 %v1292_v7  ;;  %v1454_v49 = vpack.c.bf16 %v8092_v34, %v8091_v29  ;;  %v1332_v4 = vunpack.c.h.bf16 %v1292_v7  ;;  %1539 = vperm.xlu2 %4456, %v6573_v28   ;;  %1531 = vperm.xlu1 %4458, %v6581_v37   ;;  %v4332_v3 = vld [vmem:[#allocation2 + $0x40] sm:$0xff]  ;;  %v8100_v61 = vld [vmem:[#allocation29_spill] sm:$0xff]  ;;  %v6594_v7 = vld [vmem:[%s7954_s2 + $0x30] sm:$0xff] }
 0x252   : > { %v4683_v5 = vpop.eup %4682  ;;  %4694 = vtanh.f32 %v1335_v41  ;;  %1706 = vmatpush.bf16.msrb.mxu2 %v1467_v12  ;;  %1659 = vmatpush.bf16.msrb.mxu1 %v1458_v16  ;;  %v1463_v46 = vpack.c.bf16 %v4681_v9, %v4679_v14  ;;  %v1319_v56 = vunpack.c.l.bf16 %v1287_v58  ;;  %v1449_v30 = vpack.c.bf16 %v8094_v36, %v8093_v60  ;;  %8102 = vst [vmem:[#allocation25_spill] sm:$0xff] %v6594_v7  ;;  %v6600_v12 = vld [vmem:[%s7954_s2 + $0x20] sm:$0xff]  ;;  %v4338_v29 = vld [vmem:[#allocation2 + $0x70] sm:$0xff]  ;;  %v4339_v34 = vld [vmem:[#allocation2 + $0x78] sm:$0xff] }
 0x253   : > { %v4685_v6 = vpop.eup %4684  ;;  %4696 = vtanh.f32 %v1339_v33  ;;  %v1323_v52 = vunpack.c.h.bf16 %v1287_v58  ;;  %v1320_v32 = vunpack.c.l.bf16 %v1288_v31  ;;  %v1450_v45 = vpack.c.bf16 %v8096_v15, %v8095_v43 }
 0x254   : > { %v4687_v50 = vpop.eup %4686  ;;  %4698 = vtanh.f32 %v1336_v57  ;;  %1755 = vmatpush.bf16.msrb.mxu3 %v1468_v11  ;;  %1611 = vmatpush.bf16.msrb.mxu0 %v1453_v59  ;;  %v1464_v19 = vpack.c.bf16 %v4685_v6, %v4683_v5  ;;  %v1324_v22 = vunpack.c.h.bf16 %v1288_v31  ;;  %v1445_v54 = vpack.c.bf16 %v8098_v23, %v8097_v8  ;;  %v8103_v5 = vld [vmem:[#allocation18_spill] sm:$0xff]  ;;  %v6607_v11 = vld [vmem:[%s7954_s2 + $0x28] sm:$0xff]  ;;  %v6613_v6 = vld [vmem:[%s7954_s2 + $0x18] sm:$0xff] }
 0x255   : > { %v4689_v40 = vpop.eup %4688  ;;  %4700 = vtanh.f32 %v1340_v27  ;;  %v1446_v10 = vpack.c.bf16 %v8101_v42, %v8100_v61  ;;  %8104 = vst [vmem:[#allocation26_spill] sm:$0xff] %v6607_v11  ;;  %v4333_v31 = vld [vmem:[#allocation2 + $0x48] sm:$0xff] }
 0x256   : > { %v4691_v26 = vpop.eup %4690  ;;  %4702 = vtanh.f32 %v1327_v1  ;;  %1707 = vmatpush.bf16.msrb.mxu2 %v1463_v46  ;;  %1660 = vmatpush.bf16.msrb.mxu1 %v1454_v49  ;;  %v1459_v25 = vpack.c.bf16 %v4689_v40, %v4687_v50  ;;  %8105 = vst [vmem:[#allocation22_spill] sm:$0xff] %v6613_v6  ;;  %v4335_v50 = vld [vmem:[#allocation2 + $0x58] sm:$0xff]  ;;  %v4337_v46 = vld [vmem:[#allocation2 + $0x68] sm:$0xff] }
 0x257   : > { %v4693_v38 = vpop.eup %4692  ;;  %4704 = vtanh.f32 %v1331_v21  ;;  %1503 = vperm.xlu0 %4457, %v8099_v35   ;;  %v6619_v21 = vld [vmem:[%s7954_s2] sm:$0xff] }
 0x258   : > { %v4695_v48 = vpop.eup %4694  ;;  %4706 = vtanh.f32 %v1328_v44  ;;  %1756 = vmatpush.bf16.msrb.mxu3 %v1464_v19  ;;  %1612 = vmatpush.bf16.msrb.mxu0 %v1449_v30  ;;  %v1460_v47 = vpack.c.bf16 %v4693_v38, %v4691_v26  ;;  %8106 = vst [vmem:[#allocation24_spill] sm:$0xff] %v6619_v21  ;;  %v4336_v44 = vld [vmem:[#allocation2 + $0x60] sm:$0xff] }
 0x259   : > { %v4697_v51 = vpop.eup %4696  ;;  %4708 = vtanh.f32 %v1332_v4  ;;  %1519 = vperm.xlu2 %4456, %v6594_v7   ;;  %1511 = vperm.xlu1 %4458, %v6600_v12  }
 0x25a   : > { %v4699_v55 = vpop.eup %4698  ;;  %4710 = vtanh.f32 %v1319_v56  ;;  %1708 = vmatpush.bf16.msrb.mxu2 %v1459_v25  ;;  %1661 = vmatpush.bf16.msrb.mxu1 %v1450_v45  ;;  %v1455_v24 = vpack.c.bf16 %v4697_v51, %v4695_v48 }
 0x25b   : > { %v4701_v39 = vpop.eup %4700  ;;  %4712 = vtanh.f32 %v1323_v52 }
 0x25c   : > { %v4703_v41 = vpop.eup %4702  ;;  %4714 = vtanh.f32 %v1320_v32  ;;  %1757 = vmatpush.bf16.msrb.mxu3 %v1460_v47  ;;  %1613 = vmatpush.bf16.msrb.mxu0 %v1445_v54  ;;  %v1456_v14 = vpack.c.bf16 %v4701_v39, %v4699_v55 }
 0x25d   : > { %v4705_v53 = vpop.eup %4704  ;;  %4716 = vtanh.f32 %v1324_v22 }
 0x25e   : > { %v4707_v33 = vpop.eup %4706  ;;  %1709 = vmatpush.bf16.msrb.mxu2 %v1455_v24  ;;  %1662 = vmatpush.bf16.msrb.mxu1 %v1446_v10  ;;  %v1451_v9 = vpack.c.bf16 %v4705_v53, %v4703_v41 }
 0x25f   : > { %v4709_v57 = vpop.eup %4708  ;;  %1614 = vmatmul.bf16.vlgmr.msrb.gmra.mxu0 %v4332_v3  ;;  %1499 = vperm.xlu0 %4457, %v8103_v5  }
 0x260   : > { %v4711_v16 = vpop.eup %4710  ;;  %1758 = vmatpush.bf16.msrb.mxu3 %v1456_v14  ;;  %v1452_v58 = vpack.c.bf16 %v4709_v57, %v4707_v33 }
 0x261   : > { %v4713_v20 = vpop.eup %4712  ;;  %1663 = vmatmul.bf16.vlgmr.msrb.gmra.mxu1 %v4332_v3  ;;  %1515 = vperm.xlu2 %4456, %v6607_v11  }
 0x262   : > { %v4715_v62 = vpop.eup %4714  ;;  %1710 = vmatpush.bf16.msrb.mxu2 %v1451_v9  ;;  %v1447_v1 = vpack.c.bf16 %v4713_v20, %v4711_v16  ;;  %1507 = vperm.xlu1 %4458, %v6613_v6  }
 0x263   : > { %v4717_v27 = vpop.eup %4716 }
 0x264   : > { %1759 = vmatpush.bf16.msrb.mxu3 %v1452_v58  ;;  %v1448_v59 = vpack.c.bf16 %v4717_v27, %v4715_v62 }
 0x266   : > { %1711 = vmatpush.bf16.msrb.mxu2 %v1447_v1 }
 0x268   : > { %1760 = vmatpush.bf16.msrb.mxu3 %v1448_v59 }
 0x269   : > { %1712 = vmatmul.bf16.vlgmr.msrb.gmra.mxu2 %v4332_v3  ;;  %1495 = vperm.xlu2 %4456, %v6619_v21  }
 0x26b   : > { %1761 = vmatmul.bf16.vlgmr.msrb.gmra.mxu3 %v4332_v3 }
 0x26f   : > { %1619 = vmatmul.bf16.gmra.mxu0 %v4333_v31 }
 0x271   : > { %1668 = vmatmul.bf16.gmra.mxu1 %v4333_v31 }
 0x279   : > { %1717 = vmatmul.bf16.gmra.mxu2 %v4333_v31 }
 0x27b   : > { %1766 = vmatmul.bf16.gmra.mxu3 %v4333_v31 }
 0x27f   : > { %1624 = vmatmul.bf16.gmra.mxu0 %v4334_v63 }
 0x281   : > { %1673 = vmatmul.bf16.gmra.mxu1 %v4334_v63 }
 0x289   : > { %1722 = vmatmul.bf16.gmra.mxu2 %v4334_v63 }
 0x28b   : > { %1771 = vmatmul.bf16.gmra.mxu3 %v4334_v63 }
 0x28f   : > { %1629 = vmatmul.bf16.gmra.mxu0 %v4335_v50 }
 0x291   : > { %1678 = vmatmul.bf16.gmra.mxu1 %v4335_v50 }
 0x299   : > { %1727 = vmatmul.bf16.gmra.mxu2 %v4335_v50 }
 0x29a   : > { %v6638_v22 = vpop.permute.xlu2 %1551 }
 0x29b   : > { %1776 = vmatmul.bf16.gmra.mxu3 %v4335_v50 }
 0x29f   : > { %1634 = vmatmul.bf16.gmra.mxu0 %v4336_v44 }
 0x2a1   : > { %1683 = vmatmul.bf16.gmra.mxu1 %v4336_v44 }
 0x2a2   : > { %v6652_v3 = vpop.permute.xlu2 %1547 }
 0x2a9   : > { %1732 = vmatmul.bf16.gmra.mxu2 %v4336_v44 }
 0x2ab   : > { %1781 = vmatmul.bf16.gmra.mxu3 %v4336_v44  ;;  %v6666_v53 = vpop.permute.xlu2 %1539 }
 0x2af   : > { %1639 = vmatmul.bf16.gmra.mxu0 %v4337_v46 }
 0x2b1   : > { %1688 = vmatmul.bf16.gmra.mxu1 %v4337_v46  ;;  %v6654_v35 = vpop.permute.xlu0 %1555 }
 0x2b3   : > { %v6656_v41 = vpop.permute.xlu1 %1543  ;;  %v6680_v62 = vpop.permute.xlu2 %1519 }
 0x2b9   : > { %1737 = vmatmul.bf16.gmra.mxu2 %v4337_v46  ;;  %v6668_v33 = vpop.permute.xlu0 %1527 }
 0x2bb   : > { %1786 = vmatmul.bf16.gmra.mxu3 %v4337_v46  ;;  %v6674_v16 = vpop.permute.xlu1 %1535  ;;  %v6698_v44 = vpop.permute.xlu2 %1515 }
 0x2bf   : > { %1644 = vmatmul.bf16.gmra.mxu0 %v4338_v29 }
 0x2c1   : > { %1693 = vmatmul.bf16.gmra.mxu1 %v4338_v29  ;;  %v6682_v58 = vpop.permute.xlu0 %1523 }
 0x2c3   : > { %v6692_v31 = vpop.permute.xlu1 %1531 }
 0x2c9   : > { %1742 = vmatmul.bf16.gmra.mxu2 %v4338_v29  ;;  %v6700_v46 = vpop.permute.xlu0 %1503 }
 0x2cb   : > { %1791 = vmatmul.bf16.gmra.mxu3 %v4338_v29 }
 0x2cf   : > { %1649 = vmatmul.bf16.gmra.mxu0 %v4339_v34 }
 0x2d1   : > { %1698 = vmatmul.bf16.gmra.mxu1 %v4339_v34 }
 0x2d9   : > { %1747 = vmatmul.bf16.gmra.mxu2 %v4339_v34 }
 0x2db   : > { %1796 = vmatmul.bf16.gmra.mxu3 %v4339_v34 }
 0x2dc   : > { %v1615_v49 = vpop.f32.mrf.mxu0 }
 0x2de   : > { %v1664_v40 = vpop.f32.mrf.mxu1 }
 0x2e4   : > { %v1617_v4 = vpop.f32.mrf.mxu0 }
 0x2e6   : > { %v1666_v26 = vpop.f32.mrf.mxu1 }
 0x2ec   : > { %v6622_v56 = vpop.f32.mrf.mxu2  ;;  %v1620_v19 = vpop.f32.mrf.mxu0 }
 0x2ee   : > { %v6624_v60 = vpop.f32.mrf.mxu3  ;;  %v1669_v36 = vpop.f32.mrf.mxu1 }
 0x2ef   : > { %8107 = vst [vmem:[#allocation23_spill] sm:$0xff] %v6624_v60  ;;  %v6706_v60 = vpop.permute.xlu1 %1511 }
 0x2f4   : > { %v6626_v30 = vpop.f32.mrf.mxu2  ;;  %v1622_v38 = vpop.f32.mrf.mxu0 }
 0x2f6   : > { %v6628_v52 = vpop.f32.mrf.mxu3  ;;  %v1671_v48 = vpop.f32.mrf.mxu1 }
 0x2f7   : > { %8108 = vst [vmem:[#allocation21_spill] sm:$0xff] %v6628_v52 }
 0x2fc   : > { %v6630_v32 = vpop.f32.mrf.mxu2  ;;  %v1625_v25 = vpop.f32.mrf.mxu0 }
 0x2fe   : > { %v6632_v43 = vpop.f32.mrf.mxu3  ;;  %v6634_v15 = vpop.f32.mrf.mxu1 }
 0x2ff   : > { %8109 = vst [vmem:[#allocation15_spill] sm:$0xff] %v6632_v43 }
 0x304   : > { %v6636_v45 = vpop.f32.mrf.mxu2  ;;  %v1627_v51 = vpop.f32.mrf.mxu0 }
 0x305   : > { %8110 = vst [vmem:[#allocation20_spill] sm:$0xff] %v6636_v45 }
 0x306   : > { %v6640_v55 = vpop.f32.mrf.mxu3  ;;  %v6642_v47 = vpop.f32.mrf.mxu1 }
 0x307   : > { %8111 = vst [vmem:[#allocation14_spill] sm:$0xff] %v6640_v55 }
 0x30c   : > { %v6644_v8 = vpop.f32.mrf.mxu2  ;;  %v6646_v23 = vpop.f32.mrf.mxu0 }
 0x30d   : > { %8112 = vst [vmem:[#allocation13_spill] sm:$0xff] %v6644_v8  ;;  %v1626_v8 = vadd.f32 %v1625_v25, %v6706_v60  ;;  %v1631_v25 = vadd.f32 %v6646_v23, %v6680_v62 }
 0x30e   : > { %v6648_v54 = vpop.f32.mrf.mxu3  ;;  %v6650_v39 = vpop.f32.mrf.mxu1 }
 0x30f   : > { %8113 = vst [vmem:[#allocation19_spill] sm:$0xff] %v6648_v54  ;;  %v6716_v54 = vpop.permute.xlu2 %1495 }
 0x310   : > { %v1616_v11 = vadd.f32 %v1615_v49, %v6716_v54 }
 0x314   : > { %v6658_v24 = vpop.f32.mrf.mxu2  ;;  %v6660_v61 = vpop.f32.mrf.mxu0 }
 0x315   : > { %8114 = vst [vmem:[#allocation16_spill] sm:$0xff] %v6658_v24  ;;  %v1665_v24 = vadd.f32 %v1664_v40, %v6716_v54 }
 0x316   : > { %v6662_v42 = vpop.f32.mrf.mxu3  ;;  %v6664_v10 = vpop.f32.mrf.mxu1 }
 0x317   : > { %8115 = vst [vmem:[#allocation31_spill] sm:$0xff] %v6662_v42  ;;  %v6718_v42 = vpop.permute.xlu0 %1499  ;;  %v1682_v23 = vadd.f32 %v6664_v10, %v6682_v58 }
 0x31c   : > { %v6670_v14 = vpop.f32.mrf.mxu2  ;;  %v6672_v57 = vpop.f32.mrf.mxu0 }
 0x31d   : > { %8116 = vst [vmem:[#allocation32_spill] sm:$0xff] %v6670_v14  ;;  %v6724_v14 = vpop.permute.xlu1 %1507 }
 0x31e   : > { %v6676_v9 = vpop.f32.mrf.mxu3  ;;  %v6678_v20 = vpop.f32.mrf.mxu1  ;;  %8124 = vst [vmem:[#allocation29_spill] sm:$0xff] %v6724_v14  ;;  %v1623_v6 = vadd.f32 %v1622_v38, %v6724_v14  ;;  %v1672_v49 = vadd.f32 %v1671_v48, %v6724_v14  ;;  %v1677_v48 = vadd.f32 %v6642_v47, %v6698_v44 }
 0x31f   : > { %8117 = vst [vmem:[#allocation33_spill] sm:$0xff] %v6676_v9  ;;  %v1618_v9 = vadd.f32 %v1617_v4, %v6718_v42 }
 0x324   : > { %v6684_v27 = vpop.f32.mrf.mxu2  ;;  %v6686_v5 = vpop.f32.mrf.mxu0 }
 0x325   : > { %8118 = vst [vmem:[#allocation34_spill] sm:$0xff] %v6684_v27  ;;  %v1802_v27 = vpack.c.bf16 %v1618_v9, %v1616_v11  ;;  %v1628_v11 = vadd.f32 %v1627_v51, %v6698_v44 }
 0x326   : > { %v6688_v1 = vpop.f32.mrf.mxu3  ;;  %v6690_v59 = vpop.f32.mrf.mxu1 }
 0x327   : > { %8119 = vst [vmem:[#allocation35_spill] sm:$0xff] %v6688_v1  ;;  %v1667_v1 = vadd.f32 %v1666_v26, %v6718_v42  ;;  %v1834_v26 = vunpack.c.l.bf16 %v1802_v27  ;;  %v1838_v38 = vunpack.c.h.bf16 %v1802_v27 }
 0x329   : > { %v1803_v4 = vpack.c.bf16 %v1667_v1, %v1665_v24  ;;  %4718 = vtanh.f32 %v1834_v26  ;;  %v1810_v1 = vpack.c.bf16 %v1628_v11, %v1626_v8  ;;  %v1636_v26 = vadd.f32 %v6672_v57, %v6668_v33 }
 0x32a   : > { %4720 = vtanh.f32 %v1838_v38  ;;  %v1685_v57 = vadd.f32 %v6678_v20, %v6668_v33  ;;  %v5434_v20 = vmov 5  }
 0x32b   : > { %v1839_v45 = vunpack.c.h.bf16 %v1803_v4  ;;  %4459 = vset.pattern.permute.xlu1 %v5434_v20  ;;  %4460 = vset.pattern.permute.xlu2 %v5434_v20 }
 0x32c   : > { %v6694_v63 = vpop.f32.mrf.mxu2  ;;  %v6696_v50 = vpop.f32.mrf.mxu0  ;;  %2068 = vperm.xlu1 %4459, %v6490_v2   ;;  %2072 = vperm.xlu2 %4460, %v6483_v17  }
 0x32d   : > { %8120 = vst [vmem:[#allocation36_spill] sm:$0xff] %v6694_v63  ;;  %4461 = vset.pattern.permute.xlu0 %v5434_v20 }
 0x32e   : > { %v6702_v29 = vpop.f32.mrf.mxu3  ;;  %v6704_v34 = vpop.f32.mrf.mxu1  ;;  %2060 = vperm.xlu0 %4461, %v6505_v18  }
 0x32f   : > { %8121 = vst [vmem:[#allocation27_spill] sm:$0xff] %v6702_v29  ;;  %v1621_v29 = vadd.f32 %v1620_v19, %v6700_v46 }
 0x331   : > { %v1806_v19 = vpack.c.bf16 %v1623_v6, %v1621_v29  ;;  %v1850_v29 = vunpack.c.l.bf16 %v1810_v1 }
 0x333   : > { %v1842_v24 = vunpack.c.l.bf16 %v1806_v19  ;;  %v1846_v51 = vunpack.c.h.bf16 %v1806_v19 }
 0x334   : > { %v6708_v52 = vpop.f32.mrf.mxu2  ;;  %v6710_v21 = vpop.f32.mrf.mxu0  ;;  %2064 = vperm.xlu1 %4459, %v6540_v0   ;;  %2052 = vperm.xlu2 %4460, %v6552_v13  }
 0x335   : > { %8122 = vst [vmem:[#allocation28_spill] sm:$0xff] %v6708_v52  ;;  %v1670_v52 = vadd.f32 %v1669_v36, %v6700_v46  ;;  %v1675_v36 = vadd.f32 %v6634_v15, %v6706_v60 }
 0x336   : > { %v6712_v43 = vpop.f32.mrf.mxu3  ;;  %v6714_v55 = vpop.f32.mrf.mxu1  ;;  %2048 = vperm.xlu0 %4461, %v6581_v37  }
 0x337   : > { %8123 = vst [vmem:[#allocation17_spill] sm:$0xff] %v6712_v43  ;;  %v1807_v9 = vpack.c.bf16 %v1672_v49, %v1670_v52  ;;  %v1633_v52 = vadd.f32 %v6660_v61, %v6682_v58  ;;  %v1811_v8 = vpack.c.bf16 %v1677_v48, %v1675_v36  ;;  %v1680_v49 = vadd.f32 %v6650_v39, %v6680_v62 }
 0x339   : > { %v1843_v6 = vunpack.c.l.bf16 %v1807_v9  ;;  %v1847_v47 = vunpack.c.h.bf16 %v1807_v9  ;;  %v1814_v61 = vpack.c.bf16 %v1633_v52, %v1631_v25  ;;  %v1851_v11 = vunpack.c.l.bf16 %v1811_v8 }
 0x33a   : > { %v1855_v10 = vunpack.c.h.bf16 %v1811_v8  ;;  %v1815_v38 = vpack.c.bf16 %v1682_v23, %v1680_v49  ;;  %v1641_v25 = vadd.f32 %v6696_v50, %v6674_v16  ;;  %v1643_v52 = vadd.f32 %v6710_v21, %v6666_v53 }
 0x33c   : > { %v6728_v43 = vpop.f32.mrf.mxu2  ;;  %v6730_v7 = vpop.f32.mrf.mxu0  ;;  %v1859_v49 = vunpack.c.l.bf16 %v1815_v38  ;;  %v1863_v21 = vunpack.c.h.bf16 %v1815_v38  ;;  %2056 = vperm.xlu1 %4459, %v6573_v28   ;;  %v6856_v28 = vadd.f32 %v6630_v32, %v6700_v46 }
 0x33d   : > { %8125 = vst [vmem:[#allocation30_spill] sm:$0xff] %v6728_v43  ;;  %v1835_v43 = vunpack.c.l.bf16 %v1803_v4  ;;  %v1854_v4 = vunpack.c.h.bf16 %v1810_v1 }
 0x33e   : > { %v6734_v63 = vpop.f32.mrf.mxu3  ;;  %v6736_v40 = vpop.f32.mrf.mxu1  ;;  %2028 = vperm.xlu0 %4461, %v6600_v12  }
 0x33f   : > { %8126 = vst [vmem:[#allocation18_spill] sm:$0xff] %v6734_v63  ;;  %4722 = vtanh.f32 %v1835_v43  ;;  %v6758_v43 = vpop.eup %4718 }
 0x340   : > { %4724 = vtanh.f32 %v1839_v45  ;;  %8127 = vst [vmem:[#allocation37_spill] sm:$0xff] %v6758_v43  ;;  %v1638_v45 = vadd.f32 %v6686_v5, %v6692_v31  ;;  %v6764_v19 = vpop.eup %4720  ;;  %v1687_v5 = vadd.f32 %v6690_v59, %v6692_v31 }
 0x341   : > { %4726 = vtanh.f32 %v1842_v24  ;;  %8128 = vst [vmem:[#allocation38_spill] sm:$0xff] %v6764_v19  ;;  %v1858_v24 = vunpack.c.l.bf16 %v1814_v61 }
 0x342   : > { %4728 = vtanh.f32 %v1843_v6  ;;  %v1818_v6 = vpack.c.bf16 %v1638_v45, %v1636_v26  ;;  %v1819_v23 = vpack.c.bf16 %v1687_v5, %v1685_v57 }
 0x343   : > { %4730 = vtanh.f32 %v1846_v51 }
 0x344   : > { %v6744_v63 = vpop.f32.mrf.mxu2  ;;  %v1647_v14 = vpop.f32.mrf.mxu0  ;;  %4732 = vtanh.f32 %v1847_v47  ;;  %v1866_v45 = vunpack.c.l.bf16 %v1818_v6  ;;  %v1871_v18 = vunpack.c.h.bf16 %v1819_v23 }
 0x345   : > { %v6766_v39 = vpop.eup %4722  ;;  %4734 = vtanh.f32 %v1850_v29  ;;  %v1862_v29 = vunpack.c.h.bf16 %v1814_v61  ;;  %v1648_v61 = vadd.f32 %v1647_v14, %v6652_v3  ;;  %v1867_v14 = vunpack.c.l.bf16 %v1819_v23 }
 0x346   : > { %v6750_v15 = vpop.f32.mrf.mxu3  ;;  %v6752_v27 = vpop.f32.mrf.mxu1  ;;  %8129 = vst [vmem:[#allocation39_spill] sm:$0xff] %v6766_v39  ;;  %4736 = vtanh.f32 %v1854_v4  ;;  %v1646_v4 = vadd.f32 %v6730_v7, %v6656_v41 }
 0x347   : > { %v6770_v48 = vpop.eup %4724  ;;  %4738 = vtanh.f32 %v1851_v11  ;;  %v1822_v11 = vpack.c.bf16 %v1643_v52, %v1641_v25 }
 0x348   : > { %8130 = vst [vmem:[#allocation40_spill] sm:$0xff] %v6770_v48  ;;  %v6776_v1 = vpop.eup %4726  ;;  %4740 = vtanh.f32 %v1855_v10  ;;  %v1870_v10 = vunpack.c.h.bf16 %v1818_v6  ;;  %v1826_v5 = vpack.c.bf16 %v1648_v61, %v1646_v4  ;;  %v1695_v6 = vadd.f32 %v6736_v40, %v6656_v41 }
 0x349   : > { %v6784_v8 = vpop.eup %4728  ;;  %4742 = vtanh.f32 %v1858_v24  ;;  %v1874_v25 = vunpack.c.l.bf16 %v1822_v11  ;;  %v1690_v40 = vadd.f32 %v6704_v34, %v6674_v16 }
 0x34a   : > { %8131 = vst [vmem:[#allocation41_spill] sm:$0xff] %v6784_v8  ;;  %v6786_v59 = vpop.eup %4730  ;;  %4744 = vtanh.f32 %v1862_v29  ;;  %v1882_v23 = vunpack.c.l.bf16 %v1826_v5 }
 0x34b   : > { %8132 = vst [vmem:[#allocation42_spill] sm:$0xff] %v6786_v59  ;;  %v6790_v50 = vpop.eup %4732  ;;  %4746 = vtanh.f32 %v1859_v49  ;;  %v1697_v49 = vadd.f32 %v6752_v27, %v6652_v3  ;;  %v1692_v27 = vadd.f32 %v6714_v55, %v6666_v53 }
 0x34c   : > { %v6768_v9 = vpop.f32.mrf.mxu2  ;;  %v1650_v36 = vpop.f32.mrf.mxu0  ;;  %8133 = vst [vmem:[#allocation43_spill] sm:$0xff] %v6790_v50  ;;  %4748 = vtanh.f32 %v1863_v21 }
 0x34d   : > { %v6795_v26 = vpop.eup %4734  ;;  %v1651_v17 = vadd.f32 %v1650_v36, %v6638_v22  ;;  %4750 = vtanh.f32 %v1866_v45  ;;  %v1827_v13 = vpack.c.bf16 %v1697_v49, %v1695_v6  ;;  %v1744_v37 = vadd.f32 %v6768_v9, %v6656_v41 }
 0x34e   : > { %v6782_v51 = vpop.f32.mrf.mxu3  ;;  %v1699_v47 = vpop.f32.mrf.mxu1  ;;  %4752 = vtanh.f32 %v1870_v10  ;;  %v6846_v9 = vadd.f32 %v6622_v56, %v6716_v54 }
 0x34f   : > { %v6798_v2 = vpop.eup %4736  ;;  %v1700_v52 = vadd.f32 %v1699_v47, %v6638_v22  ;;  %4754 = vtanh.f32 %v1867_v14  ;;  %v1883_v6 = vunpack.c.l.bf16 %v1827_v13  ;;  %v1793_v12 = vadd.f32 %v6782_v51, %v6656_v41 }
 0x350   : > { %v6801_v7 = vpop.eup %4738  ;;  %4756 = vtanh.f32 %v1871_v18 }
 0x351   : > { %v6804_v20 = vpop.eup %4740  ;;  %4758 = vtanh.f32 %v1874_v25 }
 0x352   : > { %v6812_v61 = vpop.eup %4742 }
 0x353   : > { %v6816_v47 = vpop.eup %4744 }
 0x354   : > { %v1745_v38 = vpop.f32.mrf.mxu2  ;;  %v1652_v57 = vpop.f32.mrf.mxu0 }
 0x355   : > { %v1653_v24 = vadd.f32 %v1652_v57, %v6654_v35  ;;  %v1878_v57 = vunpack.c.h.bf16 %v1822_v11  ;;  %v6822_v45 = vpop.eup %4746  ;;  %v1746_v34 = vadd.f32 %v1745_v38, %v6652_v3  ;;  %v1887_v38 = vunpack.c.h.bf16 %v1827_v13  ;;  %v8134_v13 = vld [vmem:[#allocation29_spill] sm:$0xff] }
 0x356   : > { %v1794_v29 = vpop.f32.mrf.mxu3  ;;  %v1701_v36 = vpop.f32.mrf.mxu1 }
 0x357   : > { %v1830_v21 = vpack.c.bf16 %v1653_v24, %v1651_v17  ;;  %v1702_v4 = vadd.f32 %v1701_v36, %v6654_v35  ;;  %v1886_v17 = vunpack.c.h.bf16 %v1826_v5  ;;  %v6825_v0 = vpop.eup %4748  ;;  %4760 = vtanh.f32 %v1878_v57 }
 0x358   : > { %v6827_v14 = vpop.eup %4750  ;;  %v1823_v36 = vpack.c.bf16 %v1692_v27, %v1690_v40  ;;  %4762 = vtanh.f32 %v1882_v23  ;;  %v6850_v40 = vadd.f32 %v6626_v30, %v6718_v42  ;;  %v8136_v30 = vld [vmem:[#allocation13_spill] sm:$0xff] }
 0x359   : > { %v1831_v10 = vpack.c.bf16 %v1702_v4, %v1700_v52  ;;  %v1890_v11 = vunpack.c.l.bf16 %v1830_v21  ;;  %v1894_v24 = vunpack.c.h.bf16 %v1830_v21  ;;  %v6830_v18 = vpop.eup %4752  ;;  %4764 = vtanh.f32 %v1886_v17  ;;  %v5302_v4 = vld [vmem:[%s7954_s2 + $0x40] sm:$0xff] }
 0x35a   : > { %v6834_v52 = vpop.eup %4754  ;;  %v1828_v21 = vpack.c.bf16 %v1746_v34, %v1744_v37  ;;  %2044 = vperm.xlu2 %4460, %v5302_v4   ;;  %v1875_v27 = vunpack.c.l.bf16 %v1823_v36  ;;  %v1879_v17 = vunpack.c.h.bf16 %v1823_v36  ;;  %v8138_v4 = vld [vmem:[#allocation30_spill] sm:$0xff] }
 0x35b   : > { %v1891_v48 = vunpack.c.l.bf16 %v1831_v10  ;;  %v1895_v5 = vunpack.c.h.bf16 %v1831_v10  ;;  %4766 = vtanh.f32 %v1890_v11  ;;  %v6836_v49 = vpop.eup %4756  ;;  %v1795_v10 = vadd.f32 %v1794_v29, %v6652_v3  ;;  %v8135_v11 = vld [vmem:[#allocation20_spill] sm:$0xff] }
 0x35c   : > { %v1748_v55 = vpop.f32.mrf.mxu2  ;;  %4768 = vtanh.f32 %v1894_v24  ;;  %v6842_v57 = vpop.eup %4758  ;;  %v6862_v34 = vadd.f32 %v8135_v11, %v8134_v13  ;;  %v8137_v24 = vld [vmem:[#allocation36_spill] sm:$0xff]  ;;  %v1741_v3 = vadd.f32 %v6744_v63, %v6666_v53  ;;  %v1884_v29 = vunpack.c.l.bf16 %v1828_v21 }
 0x35d   : > { %4770 = vtanh.f32 %v1891_v48  ;;  %v6852_v23 = vpop.eup %4760  ;;  %v6866_v48 = vadd.f32 %v8136_v30, %v6706_v60  ;;  %v1734_v37 = vadd.f32 %v8137_v24, %v6668_v33  ;;  %v1739_v11 = vadd.f32 %v8138_v4, %v6674_v16 }
 0x35e   : > { %v1797_v25 = vpop.f32.mrf.mxu3  ;;  %4772 = vtanh.f32 %v1895_v5  ;;  %v4763_v56 = vpop.eup %4762  ;;  %v1749_v30 = vadd.f32 %v1748_v55, %v6638_v22  ;;  %v1790_v63 = vadd.f32 %v6750_v15, %v6666_v53  ;;  %v1829_v39 = vpack.c.bf16 %v1795_v10, %v1793_v12  ;;  %v8139_v55 = vld [vmem:[#allocation28_spill] sm:$0xff]  ;;  %v8141_v53 = vld [vmem:[#allocation25_spill] sm:$0xff] }
 0x35f   : > { %4774 = vtanh.f32 %v1883_v6  ;;  %v4765_v32 = vpop.eup %4764  ;;  %v1798_v51 = vadd.f32 %v1797_v25, %v6638_v22  ;;  %v1736_v8 = vadd.f32 %v8139_v55, %v6692_v31  ;;  %v1824_v59 = vpack.c.bf16 %v1741_v3, %v1739_v11  ;;  %2036 = vperm.xlu1 %4459, %v8141_v53   ;;  %v5303_v15 = vld [vmem:[%s7954_s2 + $0x38] sm:$0xff] }
 0x360   : > { %4776 = vtanh.f32 %v1887_v38  ;;  %v1888_v38 = vunpack.c.h.bf16 %v1828_v21  ;;  %v8142_v12 = vld [vmem:[#allocation17_spill] sm:$0xff]  ;;  %v1986_v3 = vpack.c.bf16 %v4765_v32, %v4763_v56 }
 0x361   : > { %v4767_v5 = vpop.eup %4766  ;;  %4778 = vtanh.f32 %v1875_v27  ;;  %v1880_v53 = vunpack.c.h.bf16 %v1824_v59 }
 0x362   : > { %v4769_v6 = vpop.eup %4768  ;;  %4780 = vtanh.f32 %v1879_v17  ;;  %2040 = vperm.xlu2 %4460, %v5303_v15  }
 0x363   : > { %v4771_v41 = vpop.eup %4770  ;;  %v1990_v50 = vpack.c.bf16 %v4769_v6, %v4767_v5  ;;  %4782 = vtanh.f32 %v1884_v29  ;;  %v1785_v5 = vadd.f32 %v8142_v12, %v6692_v31  ;;  %v8143_v29 = vld [vmem:[#allocation22_spill] sm:$0xff]  ;;  %v1820_v31 = vpack.c.bf16 %v1736_v8, %v1734_v37  ;;  %v8148_v8 = vld [vmem:[#allocation16_spill] sm:$0xff] }
 0x364   : > { %v1750_v36 = vpop.f32.mrf.mxu2  ;;  %v4773_v4 = vpop.eup %4772  ;;  %4784 = vtanh.f32 %v1888_v38  ;;  %2024 = vperm.xlu0 %4461, %v8143_v29   ;;  %v8146_v38 = vld [vmem:[#allocation32_spill] sm:$0xff]  ;;  %v1726_v37 = vadd.f32 %v8148_v8, %v6698_v44 }
 0x365   : > { %v1751_v24 = vadd.f32 %v1750_v36, %v6654_v35  ;;  %v8140_v36 = vld [vmem:[#allocation18_spill] sm:$0xff]  ;;  %v4775_v22 = vpop.eup %4774  ;;  %2123 = vmatpush.bf16.msra.mxu0 %v1990_v50  ;;  %v1991_v21 = vpack.c.bf16 %v4773_v4, %v4771_v41  ;;  %v8145_v41 = vld [vmem:[#allocation27_spill] sm:$0xff]  ;;  %v1729_v4 = vadd.f32 %v8146_v38, %v6680_v62  ;;  %v1868_v12 = vunpack.c.l.bf16 %v1820_v31 }
 0x366   : > { %v1799_v19 = vpop.f32.mrf.mxu3  ;;  %v1788_v17 = vadd.f32 %v8140_v36, %v6674_v16  ;;  %v4777_v10 = vpop.eup %4776  ;;  %v8147_v36 = vld [vmem:[#allocation35_spill] sm:$0xff] }
 0x367   : > { %v1832_v43 = vpack.c.bf16 %v1751_v24, %v1749_v30  ;;  %v1800_v27 = vadd.f32 %v1799_v19, %v6654_v35  ;;  %v4779_v11 = vpop.eup %4778  ;;  %v1885_v30 = vunpack.c.l.bf16 %v1829_v39  ;;  %2172 = vmatpush.bf16.msra.mxu1 %v1991_v21  ;;  %v1987_v56 = vpack.c.bf16 %v4777_v10, %v4775_v22  ;;  %v8149_v22 = vld [vmem:[#allocation33_spill] sm:$0xff]  ;;  %v8150_v21 = vld [vmem:[#allocation26_spill] sm:$0xff] }
 0x368   : > { %v1825_v16 = vpack.c.bf16 %v1790_v63, %v1788_v17  ;;  %v4781_v55 = vpop.eup %4780  ;;  %v1876_v63 = vunpack.c.l.bf16 %v1824_v59  ;;  %v1780_v17 = vadd.f32 %v8147_v36, %v6682_v58  ;;  %2032 = vperm.xlu1 %4459, %v8150_v21   ;;  %v8154_v36 = vld [vmem:[#allocation15_spill] sm:$0xff] }
 0x369   : > { %v1892_v25 = vunpack.c.l.bf16 %v1832_v43  ;;  %v1896_v35 = vunpack.c.h.bf16 %v1832_v43  ;;  %v1833_v19 = vpack.c.bf16 %v1800_v27, %v1798_v51  ;;  %v8144_v43 = vld [vmem:[#allocation34_spill] sm:$0xff]  ;;  %v1783_v51 = vadd.f32 %v8145_v41, %v6668_v33  ;;  %2124 = vmatpush.bf16.msra.mxu0 %v1986_v3  ;;  %v6897_v32 = vpop.eup %4782 }
 0x36a   : > { %v1731_v50 = vadd.f32 %v8144_v43, %v6682_v58  ;;  %v1889_v27 = vunpack.c.h.bf16 %v1829_v39  ;;  %v1982_v33 = vpack.c.bf16 %v6852_v23, %v6842_v57  ;;  %v4785_v39 = vpop.eup %4784  ;;  %v5304_v58 = vld [vmem:[%s7954_s2 + $0x10] sm:$0xff]  ;;  %v1983_v57 = vpack.c.bf16 %v4781_v55, %v4779_v11 }
 0x36b   : > { %4786 = vtanh.f32 %v1892_v25  ;;  %v1893_v24 = vunpack.c.l.bf16 %v1833_v19  ;;  %v1897_v6 = vunpack.c.h.bf16 %v1833_v19  ;;  %v1821_v15 = vpack.c.bf16 %v1785_v5, %v1783_v51  ;;  %2173 = vmatpush.bf16.msra.mxu1 %v1987_v56  ;;  %2020 = vperm.xlu2 %4460, %v5304_v58   ;;  %v8151_v5 = vld [vmem:[#allocation31_spill] sm:$0xff] }
 0x36c   : > { %4788 = vtanh.f32 %v1896_v35  ;;  %v1877_v25 = vunpack.c.l.bf16 %v1825_v16  ;;  %v1778_v35 = vadd.f32 %v8149_v22, %v6680_v62  ;;  %v1881_v19 = vunpack.c.h.bf16 %v1825_v16 }
 0x36d   : > { %4790 = vtanh.f32 %v1893_v24  ;;  %v1816_v10 = vpack.c.bf16 %v1731_v50, %v1729_v4  ;;  %2125 = vmatpush.bf16.msra.mxu0 %v1982_v33  ;;  %v1775_v3 = vadd.f32 %v8151_v5, %v6698_v44  ;;  %v1872_v16 = vunpack.c.h.bf16 %v1820_v31  ;;  %v8152_v50 = vld [vmem:[#allocation19_spill] sm:$0xff] }
 0x36e   : > { %4792 = vtanh.f32 %v1897_v6  ;;  %v6915_v62 = vpack.c.bf16 %v1780_v17, %v1778_v35  ;;  %v1978_v24 = vpack.c.bf16 %v6830_v18, %v6827_v14  ;;  %v1773_v11 = vadd.f32 %v8152_v50, %v6706_v60  ;;  %v8153_v18 = vld [vmem:[#allocation14_spill] sm:$0xff] }
 0x36f   : > { %4794 = vtanh.f32 %v1885_v30  ;;  %v1869_v30 = vunpack.c.l.bf16 %v1821_v15  ;;  %2174 = vmatpush.bf16.msra.mxu1 %v1983_v57  ;;  %v6922_v55 = vpack.c.bf16 %v1726_v37, %v6866_v48  ;;  %v1873_v44 = vunpack.c.h.bf16 %v1821_v15  ;;  %v8155_v15 = vld [vmem:[#allocation24_spill] sm:$0xff] }
 0x370   : > { %4796 = vtanh.f32 %v1889_v27  ;;  %v1860_v51 = vunpack.c.l.bf16 %v1816_v10  ;;  %v1979_v27 = vpack.c.bf16 %v6836_v49, %v6834_v52  ;;  %v1813_v56 = vpack.c.bf16 %v1775_v3, %v1773_v11  ;;  %2012 = vperm.xlu1 %4459, %v8155_v15  }
 0x371   : > { %v4787_v59 = vpop.eup %4786  ;;  %4798 = vtanh.f32 %v1876_v63  ;;  %2126 = vmatpush.bf16.msra.mxu0 %v1978_v24  ;;  %v1770_v63 = vadd.f32 %v8153_v18, %v8134_v13  ;;  %v1864_v60 = vunpack.c.h.bf16 %v1816_v10  ;;  %v1861_v38 = vunpack.c.l.bf16 %v6915_v62 }
 0x372   : > { %v4789_v23 = vpop.eup %4788  ;;  %4800 = vtanh.f32 %v1880_v53  ;;  %v1974_v4 = vpack.c.bf16 %v6816_v47, %v6812_v61  ;;  %v1988_v52 = vpack.c.bf16 %v4785_v39, %v6897_v32  ;;  %v1768_v17 = vadd.f32 %v8154_v36, %v6700_v46  ;;  %v8156_v32 = vld [vmem:[#allocation21_spill] sm:$0xff] }
 0x373   : > { %v4791_v29 = vpop.eup %4790  ;;  %4802 = vtanh.f32 %v1877_v25  ;;  %v1992_v6 = vpack.c.bf16 %v4789_v23, %v4787_v59  ;;  %2175 = vmatpush.bf16.msra.mxu1 %v1979_v27  ;;  %v1808_v13 = vpack.c.bf16 %v6862_v34, %v6856_v28  ;;  %v1865_v53 = vunpack.c.h.bf16 %v6915_v62  ;;  %v5305_v25 = vld [vmem:[%s7954_s2 + $0x8] sm:$0xff] }
 0x374   : > { %v4793_v43 = vpop.eup %4792  ;;  %4804 = vtanh.f32 %v1881_v19  ;;  %2016 = vperm.xlu2 %4460, %v5305_v25   ;;  %v1852_v47 = vunpack.c.l.bf16 %v6922_v55  ;;  %v1975_v46 = vpack.c.bf16 %v6825_v0, %v6822_v45  ;;  %v1765_v33 = vadd.f32 %v8156_v32, %v6718_v42  ;;  %v8157_v0 = vld [vmem:[#allocation23_spill] sm:$0xff] }
 0x375   : > { %v4795_v41 = vpop.eup %4794  ;;  %4806 = vtanh.f32 %v1868_v12  ;;  %2221 = vmatpush.bf16.msra.mxu2 %v1992_v6  ;;  %v1993_v31 = vpack.c.bf16 %v4793_v43, %v4791_v29  ;;  %2127 = vmatpush.bf16.msra.mxu0 %v1974_v4  ;;  %v1809_v39 = vpack.c.bf16 %v1770_v63, %v1768_v17  ;;  %v1856_v8 = vunpack.c.h.bf16 %v6922_v55  ;;  %v8163_v63 = vld [vmem:[#allocation39_spill] sm:$0xff] }
 0x376   : > { %v4797_v14 = vpop.eup %4796  ;;  %4808 = vtanh.f32 %v1872_v16  ;;  %v1853_v22 = vunpack.c.l.bf16 %v1813_v56  ;;  %v1970_v35 = vpack.c.bf16 %v6798_v2, %v6795_v26  ;;  %v1763_v21 = vadd.f32 %v8157_v0, %v6716_v54  ;;  %v4341_v32 = vld [vmem:[#allocation2 + $0x88] sm:$0xff] }
 0x377   : > { %v4799_v48 = vpop.eup %4798  ;;  %4810 = vtanh.f32 %v1869_v30  ;;  %2270 = vmatpush.bf16.msra.mxu3 %v1993_v31  ;;  %v1989_v28 = vpack.c.bf16 %v4797_v14, %v4795_v41  ;;  %2176 = vmatpush.bf16.msra.mxu1 %v1975_v46  ;;  %v1804_v42 = vpack.c.bf16 %v6850_v40, %v6846_v9  ;;  %v1857_v58 = vunpack.c.h.bf16 %v1813_v56  ;;  %v8158_v9 = vld [vmem:[#allocation42_spill] sm:$0xff]  ;;  %v8160_v30 = vld [vmem:[#allocation43_spill] sm:$0xff]  ;;  %v8164_v56 = vld [vmem:[#allocation40_spill] sm:$0xff] }
 0x378   : > { %v4801_v49 = vpop.eup %4800  ;;  %4812 = vtanh.f32 %v1873_v44  ;;  %v1844_v10 = vunpack.c.l.bf16 %v1808_v13  ;;  %v1971_v12 = vpack.c.bf16 %v6804_v20, %v6801_v7  ;;  %v1805_v2 = vpack.c.bf16 %v1765_v33, %v1763_v21  ;;  %v8159_v20 = vld [vmem:[#allocation41_spill] sm:$0xff]  ;;  %v8162_v44 = vld [vmem:[#allocation38_spill] sm:$0xff]  ;;  %v4342_v33 = vld [vmem:[#allocation2 + $0x90] sm:$0xff] }
 0x379   : > { %v4803_v61 = vpop.eup %4802  ;;  %4814 = vtanh.f32 %v1860_v51  ;;  %2222 = vmatpush.bf16.msra.mxu2 %v1988_v52  ;;  %v1984_v19 = vpack.c.bf16 %v4801_v49, %v4799_v48  ;;  %2128 = vmatpush.bf16.msra.mxu0 %v1970_v35  ;;  %v1848_v23 = vunpack.c.h.bf16 %v1808_v13  ;;  %v1845_v54 = vunpack.c.l.bf16 %v1809_v39  ;;  %v4340_v14 = vld [vmem:[#allocation2 + $0x80] sm:$0xff] }
 0x37a   : > { %v4805_v34 = vpop.eup %4804  ;;  %4816 = vtanh.f32 %v1864_v60  ;;  %v1966_v40 = vpack.c.bf16 %v8158_v9, %v6776_v1  ;;  %v1849_v16 = vunpack.c.h.bf16 %v1809_v39  ;;  %v1836_v7 = vunpack.c.l.bf16 %v1804_v42  ;;  %v8161_v1 = vld [vmem:[#allocation37_spill] sm:$0xff] }
 0x37b   : > { %v4807_v37 = vpop.eup %4806  ;;  %4818 = vtanh.f32 %v1861_v38  ;;  %2271 = vmatpush.bf16.msra.mxu3 %v1989_v28  ;;  %v1985_v57 = vpack.c.bf16 %v4805_v34, %v4803_v61  ;;  %2177 = vmatpush.bf16.msra.mxu1 %v1971_v12  ;;  %v1967_v24 = vpack.c.bf16 %v8160_v30, %v8159_v20  ;;  %v1840_v50 = vunpack.c.h.bf16 %v1804_v42  ;;  %v4343_v39 = vld [vmem:[#allocation2 + $0x98] sm:$0xff] }
 0x37c   : > { %v4809_v45 = vpop.eup %4808  ;;  %4820 = vtanh.f32 %v1865_v53  ;;  %v1837_v55 = vunpack.c.l.bf16 %v1805_v2  ;;  %v1962_v41 = vpack.c.bf16 %v8162_v44, %v8161_v1  ;;  %v1841_v31 = vunpack.c.h.bf16 %v1805_v2 }
 0x37d   : > { %v4811_v59 = vpop.eup %4810  ;;  %4822 = vtanh.f32 %v1852_v47  ;;  %2223 = vmatpush.bf16.msra.mxu2 %v1984_v19  ;;  %v1980_v3 = vpack.c.bf16 %v4809_v45, %v4807_v37  ;;  %2129 = vmatpush.bf16.msra.mxu0 %v1966_v40  ;;  %v1963_v60 = vpack.c.bf16 %v8164_v56, %v8163_v63  ;;  %v4346_v45 = vld [vmem:[#allocation2 + $0xb0] sm:$0xff] }
 0x37e   : > { %v4813_v26 = vpop.eup %4812  ;;  %4824 = vtanh.f32 %v1856_v8  ;;  %v4344_v8 = vld [vmem:[#allocation2 + $0xa0] sm:$0xff] }
 0x37f   : > { %v4815_v5 = vpop.eup %4814  ;;  %4826 = vtanh.f32 %v1853_v22  ;;  %2272 = vmatpush.bf16.msra.mxu3 %v1985_v57  ;;  %v1981_v6 = vpack.c.bf16 %v4813_v26, %v4811_v59  ;;  %2178 = vmatpush.bf16.msra.mxu1 %v1967_v24  ;;  %v4345_v22 = vld [vmem:[#allocation2 + $0xa8] sm:$0xff]  ;;  %v4347_v59 = vld [vmem:[#allocation2 + $0xb8] sm:$0xff] }
 0x380   : > { %v4817_v62 = vpop.eup %4816  ;;  %4828 = vtanh.f32 %v1857_v58 }
 0x381   : > { %v4819_v29 = vpop.eup %4818  ;;  %4830 = vtanh.f32 %v1844_v10  ;;  %2224 = vmatpush.bf16.msra.mxu2 %v1980_v3  ;;  %v1976_v51 = vpack.c.bf16 %v4817_v62, %v4815_v5  ;;  %2130 = vmatpush.bf16.msra.mxu0 %v1962_v41 }
 0x382   : > { %v4821_v43 = vpop.eup %4820  ;;  %4832 = vtanh.f32 %v1848_v23 }
 0x383   : > { %v4823_v11 = vpop.eup %4822  ;;  %4834 = vtanh.f32 %v1845_v54  ;;  %2273 = vmatpush.bf16.msra.mxu3 %v1981_v6  ;;  %v1977_v48 = vpack.c.bf16 %v4821_v43, %v4819_v29  ;;  %2179 = vmatpush.bf16.msra.mxu1 %v1963_v60 }
 0x384   : > { %v4825_v27 = vpop.eup %4824  ;;  %4836 = vtanh.f32 %v1849_v16  ;;  %2131 = vmatmul.bf16.vlgmr.msra.gmra.mxu0 %v4340_v14 }
 0x385   : > { %v4827_v18 = vpop.eup %4826  ;;  %4838 = vtanh.f32 %v1836_v7  ;;  %2225 = vmatpush.bf16.msra.mxu2 %v1976_v51  ;;  %v1972_v52 = vpack.c.bf16 %v4825_v27, %v4823_v11 }
 0x386   : > { %v4829_v38 = vpop.eup %4828  ;;  %4840 = vtanh.f32 %v1840_v50  ;;  %2180 = vmatmul.bf16.vlgmr.msra.gmra.mxu1 %v4340_v14  ;;  %v6965_v35 = vpop.permute.xlu2 %2072 }
 0x387   : > { %v4831_v4 = vpop.eup %4830  ;;  %4842 = vtanh.f32 %v1837_v55  ;;  %2274 = vmatpush.bf16.msra.mxu3 %v1977_v48  ;;  %v1973_v17 = vpack.c.bf16 %v4829_v38, %v4827_v18 }
 0x388   : > { %v4833_v49 = vpop.eup %4832  ;;  %4844 = vtanh.f32 %v1841_v31 }
 0x389   : > { %v4835_v36 = vpop.eup %4834  ;;  %2226 = vmatpush.bf16.msra.mxu2 %v1972_v52  ;;  %v1968_v15 = vpack.c.bf16 %v4833_v49, %v4831_v4 }
 0x38a   : > { %v4837_v13 = vpop.eup %4836 }
 0x38b   : > { %v4839_v53 = vpop.eup %4838  ;;  %2275 = vmatpush.bf16.msra.mxu3 %v1973_v17  ;;  %v1969_v47 = vpack.c.bf16 %v4837_v13, %v4835_v36 }
 0x38c   : > { %v4841_v25 = vpop.eup %4840 }
 0x38d   : > { %v4843_v61 = vpop.eup %4842  ;;  %2227 = vmatpush.bf16.msra.mxu2 %v1968_v15  ;;  %v1964_v28 = vpack.c.bf16 %v4841_v25, %v4839_v53 }
 0x38e   : > { %v4845_v46 = vpop.eup %4844  ;;  %v6969_v0 = vpop.permute.xlu2 %2052 }
 0x38f   : > { %2276 = vmatpush.bf16.msra.mxu3 %v1969_v47  ;;  %v1965_v34 = vpack.c.bf16 %v4845_v46, %v4843_v61 }
 0x391   : > { %2228 = vmatpush.bf16.msra.mxu2 %v1964_v28 }
 0x393   : > { %2277 = vmatpush.bf16.msra.mxu3 %v1965_v34 }
 0x394   : > { %2229 = vmatmul.bf16.vlgmr.msra.gmra.mxu2 %v4340_v14  ;;  %2136 = vmatmul.bf16.gmra.mxu0 %v4341_v32 }
 0x396   : > { %2278 = vmatmul.bf16.vlgmr.msra.gmra.mxu3 %v4340_v14  ;;  %2185 = vmatmul.bf16.gmra.mxu1 %v4341_v32 }
 0x39e   : > { %v6963_v37 = vpop.permute.xlu1 %2068 }
 0x3a0   : > { %v6983_v2 = vpop.permute.xlu0 %2060 }
 0x3a4   : > { %2234 = vmatmul.bf16.gmra.mxu2 %v4341_v32  ;;  %2141 = vmatmul.bf16.gmra.mxu0 %v4342_v33 }
 0x3a6   : > { %2283 = vmatmul.bf16.gmra.mxu3 %v4341_v32  ;;  %2190 = vmatmul.bf16.gmra.mxu1 %v4342_v33  ;;  %v6967_v19 = vpop.permute.xlu1 %2064 }
 0x3a8   : > { %v6987_v20 = vpop.permute.xlu0 %2048 }
 0x3ae   : > { %v6971_v21 = vpop.permute.xlu1 %2056 }
 0x3b0   : > { %v6996_v52 = vpop.permute.xlu0 %2028 }
 0x3b4   : > { %2239 = vmatmul.bf16.gmra.mxu2 %v4342_v33  ;;  %2146 = vmatmul.bf16.gmra.mxu0 %v4343_v39  ;;  %v6973_v42 = vpop.permute.xlu2 %2044 }
 0x3b6   : > { %2288 = vmatmul.bf16.gmra.mxu3 %v4342_v33  ;;  %2195 = vmatmul.bf16.gmra.mxu1 %v4343_v39 }
 0x3bc   : > { %v6977_v10 = vpop.permute.xlu2 %2040 }
 0x3c4   : > { %2244 = vmatmul.bf16.gmra.mxu2 %v4343_v39  ;;  %2151 = vmatmul.bf16.gmra.mxu0 %v4344_v8 }
 0x3c5   : > { %v6981_v57 = vpop.permute.xlu2 %2020 }
 0x3c6   : > { %2293 = vmatmul.bf16.gmra.mxu3 %v4343_v39  ;;  %2200 = vmatmul.bf16.gmra.mxu1 %v4344_v8 }
 0x3ce   : > { %v6985_v62 = vpop.permute.xlu2 %2016 }
 0x3d1   : > { %v6975_v58 = vpop.permute.xlu1 %2036 }
 0x3d4   : > { %2249 = vmatmul.bf16.gmra.mxu2 %v4344_v8  ;;  %2156 = vmatmul.bf16.gmra.mxu0 %v4345_v22 }
 0x3d6   : > { %2298 = vmatmul.bf16.gmra.mxu3 %v4344_v8  ;;  %2205 = vmatmul.bf16.gmra.mxu1 %v4345_v22 }
 0x3da   : > { %v6979_v12 = vpop.permute.xlu1 %2032 }
 0x3e2   : > { %v2013_v26 = vpop.permute.xlu1 %2012 }
 0x3e4   : > { %2254 = vmatmul.bf16.gmra.mxu2 %v4345_v22  ;;  %2161 = vmatmul.bf16.gmra.mxu0 %v4346_v45 }
 0x3e6   : > { %2303 = vmatmul.bf16.gmra.mxu3 %v4345_v22  ;;  %2210 = vmatmul.bf16.gmra.mxu1 %v4346_v45 }
 0x3f4   : > { %2259 = vmatmul.bf16.gmra.mxu2 %v4346_v45  ;;  %2166 = vmatmul.bf16.gmra.mxu0 %v4347_v59 }
 0x3f6   : > { %2308 = vmatmul.bf16.gmra.mxu3 %v4346_v45  ;;  %2215 = vmatmul.bf16.gmra.mxu1 %v4347_v59 }
 0x401   : > { %v2132_v23 = vpop.f32.mrf.mxu0 }
 0x402   : > { %v2133_v5 = vadd.f32 %v2132_v23, %v2013_v26 }
 0x403   : > { %v2181_v54 = vpop.f32.mrf.mxu1 }
 0x404   : > { %2264 = vmatmul.bf16.gmra.mxu2 %v4347_v59  ;;  %v2182_v9 = vadd.f32 %v2181_v54, %v2013_v26 }
 0x406   : > { %2313 = vmatmul.bf16.gmra.mxu3 %v4347_v59  ;;  %v2319_v40 = vpack.c.bf16 %v2182_v9, %v2133_v5 }
 0x408   : > { %v2640_v3 = vand.u32 2147450879, %v2319_v40  ;;  %v2384_v27 = vunpack.c.l.bf16 %v2319_v40  ;;  %v2385_v31 = vunpack.c.h.bf16 %v2319_v40 }
 0x409   : > { %v2134_v16 = vpop.f32.mrf.mxu0 }
 0x40a   : > { %v2672_v29 = vunpack.c.l.bf16 %v2640_v3  ;;  %v2673_v7 = vunpack.c.h.bf16 %v2640_v3  ;;  %v2135_v30 = vadd.f32 %v2134_v16, %v6985_v62  ;;  %v2544_v47 = vmax.f32 %v2384_v27, 0.0 }
 0x40b   : > { %v2183_v24 = vpop.f32.mrf.mxu1  ;;  %v2545_v46 = vmax.f32 %v2385_v31, 0.0  ;;  %4846 = vtanh.f32 %v2384_v27 }
 0x40c   : > { %v2736_v6 = vsub.f32 0.0, %v2672_v29  ;;  %v2184_v43 = vadd.f32 %v2183_v24, %v6985_v62  ;;  %v2737_v50 = vsub.f32 0.0, %v2673_v7 }
 0x40d   : > { %v7007_v54 = vpack.c.bf16 %v2545_v46, %v2544_v47 }
 0x40e   : > { %v6991_v11 = vpack.c.bf16 %v2184_v43, %v2135_v30  ;;  %v2800_v55 = vpack.c.bf16 %v2737_v50, %v2736_v6  ;;  %v7014_v43 = vpop.permute.xlu0 %2024 }
 0x40f   : > { %8165 = vst [vmem:[#allocation29_spill] sm:$0xff] %v7007_v54 }
 0x410   : > { %v2642_v1 = vand.u32 2147450879, %v6991_v11  ;;  %v2832_v41 = vunpack.c.l.bf16 %v2800_v55  ;;  %v2833_v56 = vunpack.c.h.bf16 %v2800_v55  ;;  %v2388_v13 = vunpack.c.l.bf16 %v6991_v11 }
 0x411   : > { %v2137_v44 = vpop.f32.mrf.mxu0  ;;  %v2389_v53 = vunpack.c.h.bf16 %v6991_v11  ;;  %v7012_v7 = vpop.eup %4846 }
 0x412   : > { %v2676_v51 = vunpack.c.l.bf16 %v2642_v1  ;;  %v2677_v14 = vunpack.c.h.bf16 %v2642_v1  ;;  %v2138_v48 = vadd.f32 %v2137_v44, %v6981_v57  ;;  %v2896_v17 = vmul.f32 1.442695, %v2832_v41  ;;  %8167 = vst [vmem:[#allocation13_spill] sm:$0xff] %v7012_v7 }
 0x413   : > { %v2186_v18 = vpop.f32.mrf.mxu1  ;;  %v2898_v28 = vmul.f32 1.442695, %v2833_v56  ;;  %v2548_v8 = vmax.f32 %v2388_v13, 0.0  ;;  %v2549_v22 = vmax.f32 %v2389_v53, 0.0 }
 0x414   : > { %v2740_v60 = vsub.f32 0.0, %v2676_v51  ;;  %v2187_v38 = vadd.f32 %v2186_v18, %v6981_v57  ;;  %v2741_v4 = vsub.f32 0.0, %v2677_v14  ;;  %4848 = vpow2.f32 %v2896_v17 }
 0x415   : > { %4850 = vpow2.f32 %v2898_v28  ;;  %v7010_v29 = vpack.c.bf16 %v2549_v22, %v2548_v8 }
 0x416   : > { %v7000_v15 = vpack.c.bf16 %v2187_v38, %v2138_v48  ;;  %v2802_v25 = vpack.c.bf16 %v2741_v4, %v2740_v60  ;;  %4852 = vtanh.f32 %v2385_v31 }
 0x417   : > { %v2230_v63 = vpop.f32.mrf.mxu2  ;;  %4854 = vtanh.f32 %v2388_v13  ;;  %8166 = vst [vmem:[#allocation20_spill] sm:$0xff] %v7010_v29 }
 0x418   : > { %v2231_v49 = vadd.f32 %v2230_v63, %v2013_v26  ;;  %v2644_v34 = vand.u32 2147450879, %v7000_v15  ;;  %v2836_v32 = vunpack.c.l.bf16 %v2802_v25  ;;  %v2837_v33 = vunpack.c.h.bf16 %v2802_v25 }
 0x419   : > { %v2279_v36 = vpop.f32.mrf.mxu3  ;;  %v2392_v23 = vunpack.c.l.bf16 %v7000_v15  ;;  %v2393_v5 = vunpack.c.h.bf16 %v7000_v15  ;;  %v2139_v50 = vpop.f32.mrf.mxu0 }
 0x41a   : > { %v2280_v61 = vadd.f32 %v2279_v36, %v2013_v26  ;;  %v2680_v45 = vunpack.c.l.bf16 %v2644_v34  ;;  %v2904_v59 = vmul.f32 1.442695, %v2836_v32  ;;  %v2681_v26 = vunpack.c.h.bf16 %v2644_v34  ;;  %v4849_v11 = vpop.eup %4848 }
 0x41b   : > { %v2906_v9 = vmul.f32 1.442695, %v2837_v33  ;;  %v2552_v30 = vmax.f32 %v2392_v23, 0.0  ;;  %v2553_v24 = vmax.f32 %v2393_v5, 0.0  ;;  %v2188_v41 = vpop.f32.mrf.mxu1  ;;  %v4851_v63 = vpop.eup %4850  ;;  %v2140_v38 = vadd.f32 %v2139_v50, %v7014_v43 }
 0x41c   : > { %v7003_v39 = vpack.c.bf16 %v2280_v61, %v2231_v49  ;;  %v2744_v40 = vsub.f32 0.0, %v2680_v45  ;;  %v2745_v3 = vsub.f32 0.0, %v2681_v26  ;;  %4856 = vpow2.f32 %v2904_v59  ;;  %v7020_v4 = vpop.eup %4852 }
 0x41d   : > { %4858 = vpow2.f32 %v2906_v9  ;;  %8168 = vst [vmem:[#allocation36_spill] sm:$0xff] %v7020_v4  ;;  %v7022_v49 = vpack.c.bf16 %v2553_v24, %v2552_v30  ;;  %v2189_v17 = vadd.f32 %v2188_v41, %v7014_v43  ;;  %v3024_v28 = vpack.c.bf16 %v4851_v63, %v4849_v11 }
 0x41e   : > { %v2641_v16 = vand.u32 2147450879, %v7003_v39  ;;  %v2804_v6 = vpack.c.bf16 %v2745_v3, %v2744_v40  ;;  %4860 = vtanh.f32 %v2389_v53  ;;  %v2386_v36 = vunpack.c.l.bf16 %v7003_v39  ;;  %v7027_v53 = vpop.eup %4854 }
 0x41f   : > { %v2232_v51 = vpop.f32.mrf.mxu2  ;;  %8169 = vst [vmem:[#allocation30_spill] sm:$0xff] %v7022_v49  ;;  %4862 = vtanh.f32 %v2392_v23  ;;  %v2325_v32 = vpack.c.bf16 %v2189_v17, %v2140_v38  ;;  %v2387_v40 = vunpack.c.h.bf16 %v7003_v39  ;;  %v3057_v30 = vunpack.c.h.bf16 %v3024_v28 }
 0x420   : > { %v2674_v1 = vunpack.c.l.bf16 %v2641_v16  ;;  %v2675_v44 = vunpack.c.h.bf16 %v2641_v16  ;;  %v2840_v31 = vunpack.c.l.bf16 %v2804_v6  ;;  %v2841_v14 = vunpack.c.h.bf16 %v2804_v6  ;;  %8170 = vst [vmem:[#allocation28_spill] sm:$0xff] %v7027_v53 }
 0x421   : > { %v2281_v18 = vpop.f32.mrf.mxu3  ;;  %v2233_v13 = vadd.f32 %v2232_v51, %v6985_v62  ;;  %4864 = vtanh.f32 %v2393_v5  ;;  %v2646_v3 = vand.u32 2147450879, %v2325_v32  ;;  %v3056_v16 = vunpack.c.l.bf16 %v3024_v28  ;;  %v2142_v24 = vpop.f32.mrf.mxu0 }
 0x422   : > { %v2738_v60 = vsub.f32 0.0, %v2674_v1  ;;  %v2739_v48 = vsub.f32 0.0, %v2675_v44  ;;  %v2912_v25 = vmul.f32 1.442695, %v2840_v31  ;;  %v2282_v47 = vadd.f32 %v2281_v18, %v6985_v62  ;;  %v4857_v46 = vpop.eup %4856 }
 0x423   : > { %v2914_v34 = vmul.f32 1.442695, %v2841_v14  ;;  %v4859_v33 = vpop.eup %4858  ;;  %4866 = vtanh.f32 %v2386_v36  ;;  %v2546_v6 = vmax.f32 %v2386_v36, 0.0  ;;  %v2684_v50 = vunpack.c.l.bf16 %v2646_v3  ;;  %v2191_v63 = vpop.f32.mrf.mxu1 }
 0x424   : > { %v2801_v61 = vpack.c.bf16 %v2739_v48, %v2738_v60  ;;  %v7031_v45 = vpack.c.bf16 %v2282_v47, %v2233_v13  ;;  %v7033_v59 = vpop.eup %4860  ;;  %4868 = vpow2.f32 %v2912_v25  ;;  %v3026_v5 = vpack.c.bf16 %v4859_v33, %v4857_v46 }
 0x425   : > { %8171 = vst [vmem:[#allocation18_spill] sm:$0xff] %v7033_v59  ;;  %4870 = vpow2.f32 %v2914_v34  ;;  %v2685_v11 = vunpack.c.h.bf16 %v2646_v3  ;;  %v7038_v1 = vpop.eup %4862  ;;  %v2396_v44 = vunpack.c.l.bf16 %v2325_v32  ;;  %v2397_v41 = vunpack.c.h.bf16 %v2325_v32 }
 0x426   : > { %v2834_v8 = vunpack.c.l.bf16 %v2801_v61  ;;  %v2835_v22 = vunpack.c.h.bf16 %v2801_v61  ;;  %8172 = vst [vmem:[#allocation25_spill] sm:$0xff] %v7038_v1  ;;  %v2643_v39 = vand.u32 2147450879, %v7031_v45  ;;  %v2547_v31 = vmax.f32 %v2387_v40, 0.0 }
 0x427   : > { %v7041_v51 = vpop.eup %4864  ;;  %v2748_v14 = vsub.f32 0.0, %v2684_v50  ;;  %v2749_v18 = vsub.f32 0.0, %v2685_v11  ;;  %v7045_v48 = vadd.f32 1.0, %v3056_v16  ;;  %v7047_v38 = vadd.f32 1.0, %v3057_v30 }
 0x428   : > { %v2900_v62 = vmul.f32 1.442695, %v2834_v8  ;;  %v2902_v23 = vmul.f32 1.442695, %v2835_v22  ;;  %8173 = vst [vmem:[#allocation17_spill] sm:$0xff] %v7041_v51  ;;  %v3060_v36 = vunpack.c.l.bf16 %v3026_v5  ;;  %v2678_v17 = vunpack.c.l.bf16 %v2643_v39 }
 0x429   : > { %v7043_v60 = vpop.eup %4866  ;;  %8175 = vst [vmem:[#allocation34_spill] sm:$0xff] %v7045_v48  ;;  %v3061_v25 = vunpack.c.h.bf16 %v3026_v5  ;;  %v2806_v61 = vpack.c.bf16 %v2749_v18, %v2748_v14  ;;  %v2390_v47 = vunpack.c.l.bf16 %v7031_v45  ;;  %v2143_v46 = vadd.f32 %v2142_v24, %v6996_v52  ;;  %v2235_v14 = vpop.f32.mrf.mxu2 }
 0x42a   : > { %4872 = vpow2.f32 %v2900_v62  ;;  %8174 = vst [vmem:[#allocation22_spill] sm:$0xff] %v7043_v60  ;;  %v4869_v13 = vpop.eup %4868  ;;  %v2556_v34 = vmax.f32 %v2396_v44, 0.0  ;;  %v2557_v32 = vmax.f32 %v2397_v41, 0.0  ;;  %v2391_v33 = vunpack.c.h.bf16 %v7031_v45  ;;  %v2284_v18 = vpop.f32.mrf.mxu3 }
 0x42b   : > { %4874 = vpow2.f32 %v2902_v23  ;;  %8176 = vst [vmem:[#allocation27_spill] sm:$0xff] %v7047_v38  ;;  %v4871_v28 = vpop.eup %4870  ;;  %v2679_v8 = vunpack.c.h.bf16 %v2643_v39  ;;  %v2845_v62 = vunpack.c.h.bf16 %v2806_v61  ;;  %v2742_v23 = vsub.f32 0.0, %v2678_v17  ;;  %v2144_v15 = vpop.f32.mrf.mxu0 }
 0x42c   : > { %4876 = vtanh.f32 %v2387_v40  ;;  %v2844_v40 = vunpack.c.l.bf16 %v2806_v61  ;;  %v2192_v3 = vadd.f32 %v2191_v63, %v6996_v52  ;;  %v7053_v30 = vadd.f32 1.0, %v3060_v36 }
 0x42d   : > { %v7055_v5 = vpack.c.bf16 %v2547_v31, %v2546_v6  ;;  %4878 = vtanh.f32 %v2396_v44  ;;  %v2743_v50 = vsub.f32 0.0, %v2679_v8  ;;  %v7059_v11 = vadd.f32 1.0, %v3061_v25 }
 0x42e   : > { %8177 = vst [vmem:[#allocation32_spill] sm:$0xff] %v7053_v30  ;;  %4880 = vtanh.f32 %v2397_v41  ;;  %v2920_v45 = vmul.f32 1.442695, %v2844_v40  ;;  %v7061_v39 = vmax.f32 %v2390_v47, 0.0  ;;  %v7063_v17 = vpack.c.bf16 %v2557_v32, %v2556_v34  ;;  %v2193_v32 = vpop.f32.mrf.mxu1 }
 0x42f   : > { %8178 = vst [vmem:[#allocation35_spill] sm:$0xff] %v7055_v5  ;;  %v2922_v63 = vmul.f32 1.442695, %v2845_v62  ;;  %v2803_v61 = vpack.c.bf16 %v2743_v50, %v2742_v23  ;;  %v2327_v36 = vpack.c.bf16 %v2192_v3, %v2143_v46  ;;  %v3028_v6 = vpack.c.bf16 %v4871_v28, %v4869_v13 }
 0x430   : > { %v4873_v22 = vpop.eup %4872  ;;  %8180 = vst [vmem:[#allocation33_spill] sm:$0xff] %v7059_v11  ;;  %4882 = vtanh.f32 %v2390_v47  ;;  %v7065_v44 = vmax.f32 %v2391_v33, 0.0  ;;  %v2236_v41 = vadd.f32 %v2235_v14, %v6981_v57  ;;  %v2285_v40 = vadd.f32 %v2284_v18, %v6981_v57 }
 0x431   : > { %v4875_v16 = vpop.eup %4874  ;;  %8181 = vst [vmem:[#allocation26_spill] sm:$0xff] %v7061_v39  ;;  %v2838_v8 = vunpack.c.l.bf16 %v2803_v61  ;;  %v2839_v25 = vunpack.c.h.bf16 %v2803_v61  ;;  %4884 = vpow2.f32 %v2920_v45  ;;  %v2400_v56 = vunpack.c.l.bf16 %v2327_v36 }
 0x432   : > { %v7057_v24 = vpop.eup %4876  ;;  %8182 = vst [vmem:[#allocation31_spill] sm:$0xff] %v7063_v17  ;;  %v3025_v31 = vpack.c.bf16 %v4875_v16, %v4873_v22  ;;  %v2648_v27 = vand.u32 2147450879, %v2327_v36  ;;  %v2145_v34 = vadd.f32 %v2144_v15, %v6979_v12  ;;  %4886 = vpow2.f32 %v2922_v63 }
 0x433   : > { %8179 = vst [vmem:[#allocation16_spill] sm:$0xff] %v7057_v24  ;;  %v7070_v62 = vpop.eup %4878  ;;  %v2908_v13 = vmul.f32 1.442695, %v2838_v8  ;;  %v2910_v46 = vmul.f32 1.442695, %v2839_v25  ;;  %v2401_v47 = vunpack.c.h.bf16 %v2327_v36  ;;  %v3064_v22 = vunpack.c.l.bf16 %v3028_v6 }
 0x434   : > { %8183 = vst [vmem:[#allocation19_spill] sm:$0xff] %v7065_v44  ;;  %v7072_v28 = vpop.eup %4880  ;;  %v2688_v3 = vunpack.c.l.bf16 %v2648_v27  ;;  %v2689_v16 = vunpack.c.h.bf16 %v2648_v27  ;;  %v3065_v57 = vunpack.c.h.bf16 %v3028_v6  ;;  %v3058_v50 = vunpack.c.l.bf16 %v3025_v31 }
 0x435   : > { %8184 = vst [vmem:[#allocation14_spill] sm:$0xff] %v7070_v62  ;;  %v2324_v45 = vpack.c.bf16 %v2285_v40, %v2236_v41  ;;  %v2194_v14 = vadd.f32 %v2193_v32, %v6979_v12  ;;  %4888 = vpow2.f32 %v2908_v13  ;;  %v2560_v18 = vmax.f32 %v2400_v56, 0.0  ;;  %v2237_v41 = vpop.f32.mrf.mxu2  ;;  %v2286_v40 = vpop.f32.mrf.mxu3 }
 0x436   : > { %8185 = vst [vmem:[#allocation15_spill] sm:$0xff] %v7072_v28  ;;  %v7076_v15 = vpop.eup %4882  ;;  %v2752_v63 = vsub.f32 0.0, %v2688_v3  ;;  %v2753_v61 = vsub.f32 0.0, %v2689_v16  ;;  %4890 = vpow2.f32 %v2910_v46  ;;  %v2561_v36 = vmax.f32 %v2401_v47, 0.0 }
 0x437   : > { %8186 = vst [vmem:[#allocation24_spill] sm:$0xff] %v7076_v15  ;;  %v2645_v8 = vand.u32 2147450879, %v2324_v45  ;;  %v7078_v25 = vpack.c.bf16 %v2194_v14, %v2145_v34  ;;  %v4885_v55 = vpop.eup %4884  ;;  %v7080_v23 = vadd.f32 1.0, %v3064_v22  ;;  %4892 = vtanh.f32 %v2391_v33 }
 0x438   : > { %v2808_v6 = vpack.c.bf16 %v2753_v61, %v2752_v63  ;;  %v4887_v32 = vpop.eup %4886  ;;  %v7083_v9 = vadd.f32 1.0, %v3065_v57  ;;  %v3059_v13 = vunpack.c.h.bf16 %v3025_v31  ;;  %v2394_v3 = vunpack.c.l.bf16 %v2324_v45 }
 0x439   : > { %8187 = vst [vmem:[#allocation21_spill] sm:$0xff] %v7080_v23  ;;  %v2682_v16 = vunpack.c.l.bf16 %v2645_v8  ;;  %v7085_v46 = vadd.f32 1.0, %v3058_v50  ;;  %v2395_v14 = vunpack.c.h.bf16 %v2324_v45  ;;  %4894 = vtanh.f32 %v2400_v56 }
 0x43a   : > { %8188 = vst [vmem:[#allocation23_spill] sm:$0xff] %v7083_v9  ;;  %v2848_v26 = vunpack.c.l.bf16 %v2808_v6  ;;  %v2849_v34 = vunpack.c.h.bf16 %v2808_v6  ;;  %v7087_v22 = vpack.c.bf16 %v2561_v36, %v2560_v18  ;;  %v2683_v15 = vunpack.c.h.bf16 %v2645_v8 }
 0x43b   : > { %8189 = vst [vmem:[#allocation42_spill] sm:$0xff] %v7085_v46  ;;  %v2746_v27 = vsub.f32 0.0, %v2682_v16  ;;  %v4889_v33 = vpop.eup %4888  ;;  %v3030_v63 = vpack.c.bf16 %v4887_v32, %v4885_v55  ;;  %4896 = vtanh.f32 %v2401_v47  ;;  %v7089_v60 = vadd.f32 1.0, %v3059_v13 }
 0x43c   : > { %8190 = vst [vmem:[#allocation41_spill] sm:$0xff] %v7087_v22  ;;  %v2928_v61 = vmul.f32 1.442695, %v2848_v26  ;;  %v2930_v24 = vmul.f32 1.442695, %v2849_v34  ;;  %v4891_v57 = vpop.eup %4890  ;;  %4898 = vtanh.f32 %v2394_v3  ;;  %v2747_v31 = vsub.f32 0.0, %v2683_v15  ;;  %v2196_v34 = vpop.f32.mrf.mxu1 }
 0x43d   : > { %8191 = vst [vmem:[#allocation43_spill] sm:$0xff] %v7089_v60  ;;  %v2238_v50 = vadd.f32 %v2237_v41, %v7014_v43  ;;  %v7092_v5 = vpop.eup %4892  ;;  %v2554_v56 = vmax.f32 %v2394_v3, 0.0  ;;  %v2555_v45 = vmax.f32 %v2395_v14, 0.0  ;;  %v2650_v18 = vand.u32 2147450879, %v7078_v25  ;;  %v2147_v41 = vpop.f32.mrf.mxu0 }
 0x43e   : > { %8192 = vst [vmem:[#allocation37_spill] sm:$0xff] %v7092_v5  ;;  %4900 = vpow2.f32 %v2928_v61  ;;  %v2805_v47 = vpack.c.bf16 %v2747_v31, %v2746_v27  ;;  %v3068_v36 = vunpack.c.l.bf16 %v3030_v63  ;;  %v7097_v8 = vpack.c.bf16 %v4891_v57, %v4889_v33  ;;  %v2240_v57 = vpop.f32.mrf.mxu2  ;;  %v2289_v26 = vpop.f32.mrf.mxu3 }
 0x43f   : > { %4902 = vpow2.f32 %v2930_v24  ;;  %v2404_v15 = vunpack.c.l.bf16 %v7078_v25  ;;  %v2692_v6 = vunpack.c.l.bf16 %v2650_v18  ;;  %v7100_v32 = vpop.eup %4894  ;;  %v3069_v13 = vunpack.c.h.bf16 %v3030_v63 }
 0x440   : > { %8193 = vst [vmem:[#allocation38_spill] sm:$0xff] %v7100_v32  ;;  %4904 = vtanh.f32 %v2395_v14  ;;  %v2842_v3 = vunpack.c.l.bf16 %v2805_v47  ;;  %v2843_v16 = vunpack.c.h.bf16 %v2805_v47  ;;  %v7104_v61 = vpack.c.bf16 %v2555_v45, %v2554_v56 }
 0x441   : > { %v7102_v24 = vpop.eup %4896  ;;  %v2405_v27 = vunpack.c.h.bf16 %v7078_v25  ;;  %v2693_v31 = vunpack.c.h.bf16 %v2650_v18  ;;  %v2756_v33 = vsub.f32 0.0, %v2692_v6  ;;  %v2287_v63 = vadd.f32 %v2286_v40, %v7014_v43 }
 0x442   : > { %8194 = vst [vmem:[#allocation39_spill] sm:$0xff] %v7102_v24  ;;  %v7107_v55 = vpop.eup %4898  ;;  %v2916_v5 = vmul.f32 1.442695, %v2842_v3  ;;  %v2918_v44 = vmul.f32 1.442695, %v2843_v16  ;;  %v2148_v14 = vadd.f32 %v2147_v41, %v6975_v58  ;;  %v3062_v39 = vunpack.c.l.bf16 %v7097_v8 }
 0x443   : > { %8195 = vst [vmem:[#allocation40_spill] sm:$0xff] %v7104_v61  ;;  %v2564_v60 = vmax.f32 %v2404_v15, 0.0  ;;  %v2757_v56 = vsub.f32 0.0, %v2693_v31  ;;  %v2197_v45 = vadd.f32 %v2196_v34, %v6975_v58  ;;  %v2326_v18 = vpack.c.bf16 %v2287_v63, %v2238_v50 }
 0x444   : > { %8196 = vst [vmem:[#allocation44_spill] sm:$0xff] %v7107_v55  ;;  %v4901_v47 = vpop.eup %4900  ;;  %4906 = vpow2.f32 %v2916_v5  ;;  %v2241_v6 = vadd.f32 %v2240_v57, %v6996_v52  ;;  %v2290_v55 = vadd.f32 %v2289_v26, %v6996_v52  ;;  %v2565_v3 = vmax.f32 %v2405_v27, 0.0 }
 0x445   : > { %v4903_v25 = vpop.eup %4902  ;;  %4908 = vpow2.f32 %v2918_v44  ;;  %v2810_v16 = vpack.c.bf16 %v2757_v56, %v2756_v33  ;;  %v2331_v43 = vpack.c.bf16 %v2197_v45, %v2148_v14  ;;  %v7117_v41 = vadd.f32 1.0, %v3068_v36 }
 0x446   : > { %v7115_v40 = vpop.eup %4904  ;;  %v3032_v61 = vpack.c.bf16 %v4903_v25, %v4901_v47  ;;  %v2647_v46 = vand.u32 2147450879, %v2326_v18  ;;  %v7119_v31 = vpack.c.bf16 %v2290_v55, %v2241_v6  ;;  %v7121_v34 = vadd.f32 1.0, %v3069_v13 }
 0x447   : > { %8197 = vst [vmem:[#allocation45_spill] sm:$0xff] %v7115_v40  ;;  %4910 = vtanh.f32 %v2404_v15  ;;  %v2852_v5 = vunpack.c.l.bf16 %v2810_v16  ;;  %v2853_v50 = vunpack.c.h.bf16 %v2810_v16  ;;  %v3063_v57 = vunpack.c.h.bf16 %v7097_v8 }
 0x448   : > { %8198 = vst [vmem:[#allocation46_spill] sm:$0xff] %v7117_v41  ;;  %v7124_v52 = vadd.f32 1.0, %v3062_v39  ;;  %4912 = vtanh.f32 %v2405_v27  ;;  %v2686_v44 = vunpack.c.l.bf16 %v2647_v46  ;;  %v7126_v26 = vpack.c.bf16 %v2565_v3, %v2564_v60 }
 0x449   : > { %8199 = vst [vmem:[#allocation47_spill] sm:$0xff] %v7121_v34  ;;  %v2936_v33 = vmul.f32 1.442695, %v2852_v5  ;;  %v2938_v36 = vmul.f32 1.442695, %v2853_v50  ;;  %v2398_v63 = vunpack.c.l.bf16 %v2326_v18  ;;  %v3072_v47 = vunpack.c.l.bf16 %v3032_v61 }
 0x44a   : > { %8200 = vst [vmem:[#allocation48_spill] sm:$0xff] %v7124_v52  ;;  %v4907_v14 = vpop.eup %4906  ;;  %v2399_v55 = vunpack.c.h.bf16 %v2326_v18  ;;  %v2687_v56 = vunpack.c.h.bf16 %v2647_v46  ;;  %v2750_v13 = vsub.f32 0.0, %v2686_v44  ;;  %v2408_v15 = vunpack.c.l.bf16 %v2331_v43  ;;  %v2149_v46 = vpop.f32.mrf.mxu0 }
 0x44b   : > { %8201 = vst [vmem:[#allocation49_spill] sm:$0xff] %v7126_v26  ;;  %v4909_v45 = vpop.eup %4908  ;;  %4914 = vpow2.f32 %v2936_v33  ;;  %v2409_v25 = vunpack.c.h.bf16 %v2331_v43  ;;  %v2652_v6 = vand.u32 2147450879, %v2331_v43  ;;  %v7128_v8 = vadd.f32 1.0, %v3063_v57  ;;  %v2198_v18 = vpop.f32.mrf.mxu1 }
 0x44c   : > { %v3073_v39 = vunpack.c.h.bf16 %v3032_v61  ;;  %4916 = vpow2.f32 %v2938_v36  ;;  %v2751_v27 = vsub.f32 0.0, %v2687_v56  ;;  %v3029_v3 = vpack.c.bf16 %v4909_v45, %v4907_v14 }
 0x44d   : > { %8202 = vst [vmem:[#allocation50_spill] sm:$0xff] %v7128_v8  ;;  %v7130_v60 = vpop.eup %4910  ;;  %4918 = vtanh.f32 %v2398_v63  ;;  %v7136_v44 = vadd.f32 1.0, %v3072_v47  ;;  %v2558_v43 = vmax.f32 %v2398_v63, 0.0  ;;  %v2559_v57 = vmax.f32 %v2399_v55, 0.0 }
 0x44e   : > { %8203 = vst [vmem:[#allocation51_spill] sm:$0xff] %v7130_v60  ;;  %v7134_v50 = vpop.eup %4912  ;;  %v2807_v33 = vpack.c.bf16 %v2751_v27, %v2750_v13  ;;  %v2568_v61 = vmax.f32 %v2408_v15, 0.0  ;;  %v2569_v36 = vmax.f32 %v2409_v25, 0.0  ;;  %v2696_v56 = vunpack.c.l.bf16 %v2652_v6 }
 0x44f   : > { %8204 = vst [vmem:[#allocation52_spill] sm:$0xff] %v7134_v50  ;;  %v2697_v40 = vunpack.c.h.bf16 %v2652_v6  ;;  %v7138_v8 = vadd.f32 1.0, %v3073_v39  ;;  %4920 = vtanh.f32 %v2399_v55  ;;  %v3066_v16 = vunpack.c.l.bf16 %v3029_v3 }
 0x450   : > { %8205 = vst [vmem:[#allocation53_spill] sm:$0xff] %v7136_v44  ;;  %v2846_v14 = vunpack.c.l.bf16 %v2807_v33  ;;  %v2847_v45 = vunpack.c.h.bf16 %v2807_v33  ;;  %4922 = vtanh.f32 %v2408_v15  ;;  %v2760_v52 = vsub.f32 0.0, %v2696_v56 }
 0x451   : > { %8206 = vst [vmem:[#allocation54_spill] sm:$0xff] %v7138_v8  ;;  %v4915_v5 = vpop.eup %4914  ;;  %v2761_v29 = vsub.f32 0.0, %v2697_v40  ;;  %v3067_v47 = vunpack.c.h.bf16 %v3029_v3  ;;  %4924 = vtanh.f32 %v2409_v25  ;;  %v7142_v27 = vpack.c.bf16 %v2569_v36, %v2568_v61 }
 0x452   : > { %v4917_v54 = vpop.eup %4916  ;;  %v2924_v59 = vmul.f32 1.442695, %v2846_v14  ;;  %v2926_v63 = vmul.f32 1.442695, %v2847_v45  ;;  %v2402_v39 = vunpack.c.l.bf16 %v7119_v31  ;;  %v2649_v55 = vand.u32 2147450879, %v7119_v31 }
 0x453   : > { %v7140_v13 = vpop.eup %4918  ;;  %8208 = vst [vmem:[#allocation56_spill] sm:$0xff] %v7142_v27  ;;  %v2812_v6 = vpack.c.bf16 %v2761_v29, %v2760_v52  ;;  %v3034_v33 = vpack.c.bf16 %v4917_v54, %v4915_v5  ;;  %v7146_v53 = vpack.c.bf16 %v2559_v57, %v2558_v43  ;;  %v2403_v40 = vunpack.c.h.bf16 %v7119_v31  ;;  %v2242_v54 = vpop.f32.mrf.mxu2 }
 0x454   : > { %8207 = vst [vmem:[#allocation55_spill] sm:$0xff] %v7140_v13  ;;  %4926 = vpow2.f32 %v2924_v59  ;;  %v2150_v3 = vadd.f32 %v2149_v46, %v6977_v10  ;;  %v2199_v25 = vadd.f32 %v2198_v18, %v6977_v10  ;;  %v7153_v61 = vadd.f32 1.0, %v3066_v16  ;;  %v2291_v5 = vpop.f32.mrf.mxu3  ;;  %v2152_v46 = vpop.f32.mrf.mxu0 }
 0x455   : > { %8209 = vst [vmem:[#allocation57_spill] sm:$0xff] %v7146_v53  ;;  %4928 = vpow2.f32 %v2926_v63  ;;  %v2856_v15 = vunpack.c.l.bf16 %v2812_v6  ;;  %v7151_v56 = vpop.eup %4920  ;;  %v7155_v29 = vadd.f32 1.0, %v3067_v47  ;;  %v2857_v52 = vunpack.c.h.bf16 %v2812_v6  ;;  %v2201_v45 = vpop.f32.mrf.mxu1 }
 0x456   : > { %8210 = vst [vmem:[#allocation58_spill] sm:$0xff] %v7151_v56  ;;  %v2690_v36 = vunpack.c.l.bf16 %v2649_v55  ;;  %v7157_v43 = vpop.eup %4922  ;;  %v2562_v57 = vmax.f32 %v2402_v39, 0.0  ;;  %v2691_v14 = vunpack.c.h.bf16 %v2649_v55  ;;  %v3076_v63 = vunpack.c.l.bf16 %v3034_v33 }
 0x457   : > { %8211 = vst [vmem:[#allocation59_spill] sm:$0xff] %v7153_v61  ;;  %v2944_v59 = vmul.f32 1.442695, %v2856_v15  ;;  %v7160_v18 = vpop.eup %4924  ;;  %v2946_v16 = vmul.f32 1.442695, %v2857_v52  ;;  %v2563_v56 = vmax.f32 %v2403_v40, 0.0  ;;  %v2333_v13 = vpack.c.bf16 %v2199_v25, %v2150_v3 }
 0x458   : > { %8212 = vst [vmem:[#allocation60_spill] sm:$0xff] %v7155_v29  ;;  %v2754_v47 = vsub.f32 0.0, %v2690_v36  ;;  %v2755_v6 = vsub.f32 0.0, %v2691_v14  ;;  %v2243_v53 = vadd.f32 %v2242_v54, %v6979_v12  ;;  %v2292_v15 = vadd.f32 %v2291_v5, %v6979_v12 }
 0x459   : > { %8213 = vst [vmem:[#allocation61_spill] sm:$0xff] %v7157_v43  ;;  %4930 = vpow2.f32 %v2944_v59  ;;  %v2153_v31 = vadd.f32 %v2152_v46, %v6973_v42  ;;  %v2202_v55 = vadd.f32 %v2201_v45, %v6973_v42  ;;  %v2412_v7 = vunpack.c.l.bf16 %v2333_v13 }
 0x45a   : > { %8214 = vst [vmem:[#allocation62_spill] sm:$0xff] %v7160_v18  ;;  %v4927_v29 = vpop.eup %4926  ;;  %4932 = vpow2.f32 %v2946_v16  ;;  %v2809_v4 = vpack.c.bf16 %v2755_v6, %v2754_v47  ;;  %v2413_v11 = vunpack.c.h.bf16 %v2333_v13  ;;  %v2654_v52 = vand.u32 2147450879, %v2333_v13 }
 0x45b   : > { %v4929_v61 = vpop.eup %4928  ;;  %v3077_v30 = vunpack.c.h.bf16 %v3034_v33  ;;  %v7166_v59 = vpack.c.bf16 %v2292_v15, %v2243_v53  ;;  %v7168_v3 = vpack.c.bf16 %v2202_v55, %v2153_v31  ;;  %4934 = vtanh.f32 %v2402_v39 }
 0x45c   : > { %v3031_v36 = vpack.c.bf16 %v4929_v61, %v4927_v29  ;;  %v2850_v25 = vunpack.c.l.bf16 %v2809_v4  ;;  %v2851_v54 = vunpack.c.h.bf16 %v2809_v4  ;;  %v2572_v14 = vmax.f32 %v2412_v7, 0.0  ;;  %v2245_v4 = vpop.f32.mrf.mxu2  ;;  %v2154_v38 = vpop.f32.mrf.mxu0 }
 0x45d   : > { %4936 = vtanh.f32 %v2403_v40  ;;  %v7171_v5 = vpack.c.bf16 %v2563_v56, %v2562_v57  ;;  %v2573_v46 = vmax.f32 %v2413_v11, 0.0  ;;  %v2700_v13 = vunpack.c.l.bf16 %v2654_v52 }
 0x45e   : > { %v2932_v16 = vmul.f32 1.442695, %v2850_v25  ;;  %v2934_v47 = vmul.f32 1.442695, %v2851_v54  ;;  %v2701_v33 = vunpack.c.h.bf16 %v2654_v52  ;;  %v7173_v53 = vadd.f32 1.0, %v3076_v63 }
 0x45f   : > { %8215 = vst [vmem:[#allocation63_spill] sm:$0xff] %v7171_v5  ;;  %v4931_v45 = vpop.eup %4930  ;;  %v7175_v29 = vadd.f32 1.0, %v3077_v30  ;;  %v3070_v39 = vunpack.c.l.bf16 %v3031_v36  ;;  %v3071_v31 = vunpack.c.h.bf16 %v3031_v36  ;;  %v7177_v6 = vpack.c.bf16 %v2573_v46, %v2572_v14 }
 0x460   : > { %v4933_v61 = vpop.eup %4932  ;;  %8216 = vst [vmem:[#allocation64_spill] sm:$0xff] %v7173_v53  ;;  %4938 = vpow2.f32 %v2932_v16  ;;  %v2764_v40 = vsub.f32 0.0, %v2700_v13  ;;  %v2765_v56 = vsub.f32 0.0, %v2701_v33  ;;  %v2406_v55 = vunpack.c.l.bf16 %v7166_v59 }
 0x461   : > { %8217 = vst [vmem:[#allocation65_spill] sm:$0xff] %v7175_v29  ;;  %v3036_v57 = vpack.c.bf16 %v4933_v61, %v4931_v45  ;;  %4940 = vpow2.f32 %v2934_v47  ;;  %v7181_v52 = vpop.eup %4934  ;;  %v7185_v36 = vadd.f32 %v2245_v4, %v6975_v58  ;;  %v7189_v54 = vadd.f32 1.0, %v3070_v39  ;;  %v2294_v4 = vpop.f32.mrf.mxu3 }
 0x462   : > { %8218 = vst [vmem:[#allocation66_spill] sm:$0xff] %v7177_v6  ;;  %4942 = vtanh.f32 %v2412_v7  ;;  %v2814_v30 = vpack.c.bf16 %v2765_v56, %v2764_v40  ;;  %v2407_v14 = vunpack.c.h.bf16 %v7166_v59  ;;  %v2651_v46 = vand.u32 2147450879, %v7166_v59 }
 0x463   : > { %8219 = vst [vmem:[#allocation67_spill] sm:$0xff] %v7181_v52  ;;  %v7187_v25 = vpop.eup %4936  ;;  %4944 = vtanh.f32 %v2413_v11  ;;  %v7193_v45 = vadd.f32 1.0, %v3071_v31  ;;  %v3080_v7 = vunpack.c.l.bf16 %v3036_v57  ;;  %v2416_v11 = vunpack.c.l.bf16 %v7168_v3 }
 0x464   : > { %8220 = vst [vmem:[#allocation68_spill] sm:$0xff] %v7187_v25  ;;  %v2860_v16 = vunpack.c.l.bf16 %v2814_v30  ;;  %v2861_v47 = vunpack.c.h.bf16 %v2814_v30  ;;  %4946 = vtanh.f32 %v2406_v55  ;;  %v2694_v33 = vunpack.c.l.bf16 %v2651_v46  ;;  %v2247_v62 = vpop.f32.mrf.mxu2 }
 0x465   : > { %8221 = vst [vmem:[#allocation69_spill] sm:$0xff] %v7189_v54  ;;  %v2695_v61 = vunpack.c.h.bf16 %v2651_v46  ;;  %v2656_v63 = vand.u32 2147450879, %v7168_v3  ;;  %4948 = vtanh.f32 %v2407_v14  ;;  %v2417_v30 = vunpack.c.h.bf16 %v7168_v3 }
 0x466   : > { %8222 = vst [vmem:[#allocation70_spill] sm:$0xff] %v7193_v45  ;;  %v4939_v40 = vpop.eup %4938  ;;  %v2952_v56 = vmul.f32 1.442695, %v2860_v16  ;;  %v2954_v39 = vmul.f32 1.442695, %v2861_v47  ;;  %v2758_v59 = vsub.f32 0.0, %v2694_v33  ;;  %v3081_v13 = vunpack.c.h.bf16 %v3036_v57 }
 0x467   : > { %v4941_v15 = vpop.eup %4940  ;;  %v2759_v31 = vsub.f32 0.0, %v2695_v61  ;;  %v2704_v47 = vunpack.c.l.bf16 %v2656_v63  ;;  %v2705_v5 = vunpack.c.h.bf16 %v2656_v63  ;;  %v7204_v45 = vadd.f32 1.0, %v3080_v7 }
 0x468   : > { %v7199_v12 = vpop.eup %4942  ;;  %v3033_v25 = vpack.c.bf16 %v4941_v15, %v4939_v40  ;;  %4950 = vpow2.f32 %v2952_v56  ;;  %v2566_v54 = vmax.f32 %v2406_v55, 0.0  ;;  %v2567_v33 = vmax.f32 %v2407_v14, 0.0  ;;  %v2203_v56 = vpop.f32.mrf.mxu1 }
 0x469   : > { %8223 = vst [vmem:[#allocation71_spill] sm:$0xff] %v7199_v12  ;;  %v7202_v52 = vpop.eup %4944  ;;  %4952 = vpow2.f32 %v2954_v39  ;;  %v2811_v16 = vpack.c.bf16 %v2759_v31, %v2758_v59  ;;  %v2576_v61 = vmax.f32 %v2416_v11, 0.0  ;;  %v2577_v15 = vmax.f32 %v2417_v30, 0.0 }
 0x46a   : > { %8224 = vst [vmem:[#allocation72_spill] sm:$0xff] %v7202_v52  ;;  %v7206_v3 = vpop.eup %4946  ;;  %v2768_v40 = vsub.f32 0.0, %v2704_v47  ;;  %v7208_v46 = vadd.f32 1.0, %v3081_v13  ;;  %v3074_v28 = vunpack.c.l.bf16 %v3033_v25  ;;  %v3075_v39 = vunpack.c.h.bf16 %v3033_v25  ;;  %v2296_v25 = vpop.f32.mrf.mxu3 }
 0x46b   : > { %8225 = vst [vmem:[#allocation73_spill] sm:$0xff] %v7206_v3  ;;  %v2854_v48 = vunpack.c.l.bf16 %v2811_v16  ;;  %v2855_v57 = vunpack.c.h.bf16 %v2811_v16  ;;  %v2769_v59 = vsub.f32 0.0, %v2705_v5  ;;  %v7210_v31 = vpop.eup %4948  ;;  %4954 = vtanh.f32 %v2416_v11 }
 0x46c   : > { %8226 = vst [vmem:[#allocation74_spill] sm:$0xff] %v7210_v31  ;;  %v2295_v55 = vadd.f32 %v2294_v4, %v6975_v58  ;;  %4956 = vtanh.f32 %v2417_v30  ;;  %v2155_v16 = vadd.f32 %v2154_v38, %v6987_v20  ;;  %v2204_v47 = vadd.f32 %v2203_v56, %v6987_v20 }
 0x46d   : > { %v2940_v63 = vmul.f32 1.442695, %v2854_v48  ;;  %v2942_v7 = vmul.f32 1.442695, %v2855_v57  ;;  %v2816_v3 = vpack.c.bf16 %v2769_v59, %v2768_v40  ;;  %v7215_v17 = vpack.c.bf16 %v2567_v33, %v2566_v54 }
 0x46e   : > { %v4951_v14 = vpop.eup %4950  ;;  %v7217_v5 = vpack.c.bf16 %v2577_v15, %v2576_v61  ;;  %v2332_v48 = vpack.c.bf16 %v2295_v55, %v7185_v36  ;;  %v2337_v40 = vpack.c.bf16 %v2204_v47, %v2155_v16  ;;  %v7222_v56 = vadd.f32 1.0, %v3074_v28 }
 0x46f   : > { %v4953_v13 = vpop.eup %4952  ;;  %8227 = vst [vmem:[#allocation75_spill] sm:$0xff] %v7215_v17  ;;  %4958 = vpow2.f32 %v2940_v63  ;;  %v2864_v58 = vunpack.c.l.bf16 %v2816_v3  ;;  %v2865_v4 = vunpack.c.h.bf16 %v2816_v3  ;;  %v7224_v59 = vadd.f32 1.0, %v3075_v39  ;;  %v2157_v39 = vpop.f32.mrf.mxu0 }
 0x470   : > { %8228 = vst [vmem:[#allocation76_spill] sm:$0xff] %v7217_v5  ;;  %v7220_v11 = vpack.c.bf16 %v4953_v13, %v4951_v14  ;;  %4960 = vpow2.f32 %v2942_v7  ;;  %v2410_v30 = vunpack.c.l.bf16 %v2332_v48  ;;  %v2411_v57 = vunpack.c.h.bf16 %v2332_v48 }
 0x471   : > { %v2653_v38 = vand.u32 2147450879, %v2332_v48  ;;  %8229 = vst [vmem:[#allocation77_spill] sm:$0xff] %v7222_v56  ;;  %v2960_v54 = vmul.f32 1.442695, %v2864_v58  ;;  %v7226_v61 = vpop.eup %4954  ;;  %v2248_v7 = vadd.f32 %v2247_v62, %v6977_v10  ;;  %v2420_v48 = vunpack.c.l.bf16 %v2337_v40 }
 0x472   : > { %8230 = vst [vmem:[#allocation78_spill] sm:$0xff] %v7224_v59  ;;  %v2962_v33 = vmul.f32 1.442695, %v2865_v4  ;;  %v7231_v3 = vpop.eup %4956  ;;  %v3084_v55 = vunpack.c.l.bf16 %v7220_v11  ;;  %v2570_v28 = vmax.f32 %v2410_v30, 0.0  ;;  %v2571_v47 = vmax.f32 %v2411_v57, 0.0  ;;  %v2299_v1 = vpop.f32.mrf.mxu3 }
 0x473   : > { %v2698_v63 = vunpack.c.l.bf16 %v2653_v38  ;;  %4962 = vpow2.f32 %v2960_v54  ;;  %v2699_v14 = vunpack.c.h.bf16 %v2653_v38  ;;  %v2421_v36 = vunpack.c.h.bf16 %v2337_v40 }
 0x474   : > { %4964 = vpow2.f32 %v2962_v33  ;;  %v2658_v15 = vand.u32 2147450879, %v2337_v40  ;;  %v2297_v31 = vadd.f32 %v2296_v25, %v6977_v10  ;;  %v3085_v62 = vunpack.c.h.bf16 %v7220_v11 }
 0x475   : > { %v4959_v16 = vpop.eup %4958  ;;  %v2762_v13 = vsub.f32 0.0, %v2698_v63  ;;  %v2763_v4 = vsub.f32 0.0, %v2699_v14  ;;  %4966 = vtanh.f32 %v2410_v30  ;;  %v7237_v54 = vadd.f32 %v2157_v39, %v6969_v0  ;;  %v2250_v63 = vpop.f32.mrf.mxu2 }
 0x476   : > { %v4961_v58 = vpop.eup %4960  ;;  %v7239_v38 = vadd.f32 1.0, %v3084_v55  ;;  %v2580_v33 = vmax.f32 %v2420_v48, 0.0  ;;  %v2581_v56 = vmax.f32 %v2421_v36, 0.0  ;;  %4968 = vtanh.f32 %v2411_v57  ;;  %v2206_v57 = vpop.f32.mrf.mxu1 }
 0x477   : > { %v3035_v17 = vpack.c.bf16 %v4961_v58, %v4959_v16  ;;  %v2813_v59 = vpack.c.bf16 %v2763_v4, %v2762_v13  ;;  %v7241_v51 = vpack.c.bf16 %v2571_v47, %v2570_v28  ;;  %v2708_v14 = vunpack.c.l.bf16 %v2658_v15 }
 0x478   : > { %v2709_v40 = vunpack.c.h.bf16 %v2658_v15  ;;  %v2334_v30 = vpack.c.bf16 %v2297_v31, %v2248_v7  ;;  %4970 = vtanh.f32 %v2420_v48  ;;  %v7243_v22 = vpack.c.bf16 %v2581_v56, %v2580_v33 }
 0x479   : > { %8231 = vst [vmem:[#allocation79_spill] sm:$0xff] %v7241_v51  ;;  %v4963_v10 = vpop.eup %4962  ;;  %v3078_v25 = vunpack.c.l.bf16 %v3035_v17  ;;  %v2858_v11 = vunpack.c.l.bf16 %v2813_v59  ;;  %v2859_v16 = vunpack.c.h.bf16 %v2813_v59  ;;  %v3079_v39 = vunpack.c.h.bf16 %v3035_v17 }
 0x47a   : > { %v4965_v58 = vpop.eup %4964  ;;  %v2772_v55 = vsub.f32 0.0, %v2708_v14  ;;  %v2773_v49 = vsub.f32 0.0, %v2709_v40  ;;  %8232 = vst [vmem:[#allocation80_spill] sm:$0xff] %v7243_v22  ;;  %v7247_v15 = vadd.f32 1.0, %v3085_v62  ;;  %4972 = vtanh.f32 %v2421_v36  ;;  %v2159_v36 = vpop.f32.mrf.mxu0 }
 0x47b   : > { %v3040_v13 = vpack.c.bf16 %v4965_v58, %v4963_v10  ;;  %v2948_v4 = vmul.f32 1.442695, %v2858_v11  ;;  %v2950_v26 = vmul.f32 1.442695, %v2859_v16  ;;  %v7245_v28 = vpop.eup %4966  ;;  %v7250_v31 = vadd.f32 1.0, %v3078_v25 }
 0x47c   : > { %8233 = vst [vmem:[#allocation81_spill] sm:$0xff] %v7245_v28  ;;  %v2818_v59 = vpack.c.bf16 %v2773_v49, %v2772_v55  ;;  %v2655_v7 = vand.u32 2147450879, %v2334_v30  ;;  %v7253_v48 = vpop.eup %4968  ;;  %v2414_v14 = vunpack.c.l.bf16 %v2334_v30  ;;  %v7255_v40 = vadd.f32 1.0, %v3079_v39  ;;  %v2301_v28 = vpop.f32.mrf.mxu3 }
 0x47d   : > { %8234 = vst [vmem:[#allocation82_spill] sm:$0xff] %v7247_v15  ;;  %4974 = vpow2.f32 %v2948_v4  ;;  %v3088_v62 = vunpack.c.l.bf16 %v3040_v13  ;;  %v2415_v11 = vunpack.c.h.bf16 %v2334_v30  ;;  %v3089_v25 = vunpack.c.h.bf16 %v3040_v13  ;;  %v2252_v39 = vpop.f32.mrf.mxu2 }
 0x47e   : > { %8235 = vst [vmem:[#allocation83_spill] sm:$0xff] %v7250_v31  ;;  %4976 = vpow2.f32 %v2950_v26  ;;  %v2868_v56 = vunpack.c.l.bf16 %v2818_v59  ;;  %v2869_v33 = vunpack.c.h.bf16 %v2818_v59  ;;  %v7258_v49 = vpop.eup %4970  ;;  %v2702_v55 = vunpack.c.l.bf16 %v2655_v7 }
 0x47f   : > { %8236 = vst [vmem:[#allocation84_spill] sm:$0xff] %v7253_v48  ;;  %v2703_v17 = vunpack.c.h.bf16 %v2655_v7  ;;  %v2207_v26 = vadd.f32 %v2206_v57, %v6969_v0  ;;  %v2251_v59 = vadd.f32 %v2250_v63, %v6973_v42  ;;  %v2574_v10 = vmax.f32 %v2414_v14, 0.0 }
 0x480   : > { %8237 = vst [vmem:[#allocation85_spill] sm:$0xff] %v7255_v40  ;;  %v2968_v16 = vmul.f32 1.442695, %v2868_v56  ;;  %v2970_v58 = vmul.f32 1.442695, %v2869_v33  ;;  %v7263_v47 = vpop.eup %4972  ;;  %v2766_v30 = vsub.f32 0.0, %v2702_v55  ;;  %v2300_v48 = vadd.f32 %v2299_v1, %v6973_v42  ;;  %v2208_v42 = vpop.f32.mrf.mxu1 }
 0x481   : > { %v7266_v56 = vadd.f32 1.0, %v3088_v62  ;;  %v2575_v33 = vmax.f32 %v2415_v11, 0.0  ;;  %v2767_v4 = vsub.f32 0.0, %v2703_v17  ;;  %v7268_v51 = vadd.f32 1.0, %v3089_v25 }
 0x482   : > { %4978 = vpow2.f32 %v2968_v16  ;;  %v2339_v63 = vpack.c.bf16 %v2207_v26, %v7237_v54  ;;  %v7271_v57 = vpack.c.bf16 %v2300_v48, %v2251_v59  ;;  %v2253_v16 = vadd.f32 %v2252_v39, %v6987_v20 }
 0x483   : > { %v4975_v13 = vpop.eup %4974  ;;  %4980 = vpow2.f32 %v2970_v58  ;;  %v2815_v55 = vpack.c.bf16 %v2767_v4, %v2766_v30  ;;  %v2302_v1 = vadd.f32 %v2301_v28, %v6987_v20  ;;  %v7275_v17 = vpack.c.bf16 %v2575_v33, %v2574_v10 }
 0x484   : > { %v4977_v7 = vpop.eup %4976  ;;  %4982 = vtanh.f32 %v2414_v14  ;;  %v2424_v62 = vunpack.c.l.bf16 %v2339_v63  ;;  %v2425_v58 = vunpack.c.h.bf16 %v2339_v63  ;;  %v2660_v31 = vand.u32 2147450879, %v2339_v63 }
 0x485   : > { %v3037_v40 = vpack.c.bf16 %v4977_v7, %v4975_v13  ;;  %4984 = vtanh.f32 %v2415_v11  ;;  %8238 = vst [vmem:[#allocation86_spill] sm:$0xff] %v7275_v17  ;;  %v2862_v25 = vunpack.c.l.bf16 %v2815_v55  ;;  %v2863_v34 = vunpack.c.h.bf16 %v2815_v55  ;;  %v2162_v11 = vpop.f32.mrf.mxu0 }
 0x486   : > { %v2160_v54 = vadd.f32 %v2159_v36, %v6971_v21  ;;  %v2584_v26 = vmax.f32 %v2424_v62, 0.0  ;;  %v2585_v59 = vmax.f32 %v2425_v58, 0.0  ;;  %v2712_v39 = vunpack.c.l.bf16 %v2660_v31 }
 0x487   : > { %v2209_v14 = vadd.f32 %v2208_v42, %v6971_v21  ;;  %v3082_v30 = vunpack.c.l.bf16 %v3037_v40  ;;  %v2956_v13 = vmul.f32 1.442695, %v2862_v25  ;;  %v2958_v20 = vmul.f32 1.442695, %v2863_v34 }
 0x488   : > { %v4979_v48 = vpop.eup %4978  ;;  %v2418_v28 = vunpack.c.l.bf16 %v7271_v57  ;;  %v3083_v7 = vunpack.c.h.bf16 %v3037_v40  ;;  %4986 = vtanh.f32 %v2424_v62  ;;  %v2713_v33 = vunpack.c.h.bf16 %v2660_v31 }
 0x489   : > { %v4981_v4 = vpop.eup %4980  ;;  %4988 = vpow2.f32 %v2956_v13  ;;  %v7282_v36 = vpack.c.bf16 %v2585_v59, %v2584_v26  ;;  %v2776_v55 = vsub.f32 0.0, %v2712_v39  ;;  %v2419_v41 = vunpack.c.h.bf16 %v7271_v57 }
 0x48a   : > { %v3042_v10 = vpack.c.bf16 %v4981_v4, %v4979_v48  ;;  %v7280_v63 = vpop.eup %4982  ;;  %4990 = vpow2.f32 %v2958_v20  ;;  %v2777_v25 = vsub.f32 0.0, %v2713_v33  ;;  %v7289_v9 = vadd.f32 %v2162_v11, %v6983_v2 }
 0x48b   : > { %8239 = vst [vmem:[#allocation87_spill] sm:$0xff] %v7280_v63  ;;  %v7285_v42 = vpop.eup %4984  ;;  %v7291_v40 = vadd.f32 1.0, %v3082_v30  ;;  %v2578_v62 = vmax.f32 %v2418_v28, 0.0  ;;  %v2579_v48 = vmax.f32 %v2419_v41, 0.0  ;;  %v7293_v4 = vadd.f32 1.0, %v3083_v7 }
 0x48c   : > { %8240 = vst [vmem:[#allocation88_spill] sm:$0xff] %v7285_v42  ;;  %v3092_v31 = vunpack.c.l.bf16 %v3042_v10  ;;  %v3093_v26 = vunpack.c.h.bf16 %v3042_v10  ;;  %4992 = vtanh.f32 %v2425_v58  ;;  %v2820_v59 = vpack.c.bf16 %v2777_v25, %v2776_v55  ;;  %v2211_v25 = vpop.f32.mrf.mxu1 }
 0x48d   : > { %8241 = vst [vmem:[#allocation89_spill] sm:$0xff] %v7291_v40  ;;  %v2657_v13 = vand.u32 2147450879, %v7271_v57  ;;  %v2341_v20 = vpack.c.bf16 %v2209_v14, %v2160_v54  ;;  %v7297_v34 = vpack.c.bf16 %v2302_v1, %v2253_v16  ;;  %4994 = vtanh.f32 %v2418_v28  ;;  %v2255_v1 = vpop.f32.mrf.mxu2 }
 0x48e   : > { %8242 = vst [vmem:[#allocation90_spill] sm:$0xff] %v7293_v4  ;;  %v7299_v33 = vpop.eup %4986  ;;  %v2872_v11 = vunpack.c.l.bf16 %v2820_v59  ;;  %v2873_v30 = vunpack.c.h.bf16 %v2820_v59  ;;  %v7302_v7 = vadd.f32 1.0, %v3092_v31  ;;  %v7304_v10 = vpack.c.bf16 %v2579_v48, %v2578_v62 }
 0x48f   : > { %v4989_v63 = vpop.eup %4988  ;;  %v2706_v58 = vunpack.c.l.bf16 %v2657_v13  ;;  %v2707_v55 = vunpack.c.h.bf16 %v2657_v13  ;;  %4996 = vtanh.f32 %v2419_v41  ;;  %v2428_v16 = vunpack.c.l.bf16 %v2341_v20 }
 0x490   : > { %8243 = vst [vmem:[#allocation91_spill] sm:$0xff] %v7304_v10  ;;  %v4991_v39 = vpop.eup %4990  ;;  %v2976_v57 = vmul.f32 1.442695, %v2872_v11  ;;  %v2978_v54 = vmul.f32 1.442695, %v2873_v30  ;;  %v2429_v59 = vunpack.c.h.bf16 %v2341_v20  ;;  %v7308_v28 = vadd.f32 1.0, %v3093_v26 }
 0x491   : > { %v2770_v14 = vsub.f32 0.0, %v2706_v58  ;;  %v2771_v17 = vsub.f32 0.0, %v2707_v55  ;;  %v2662_v4 = vand.u32 2147450879, %v2341_v20  ;;  %v3039_v31 = vpack.c.bf16 %v4991_v39, %v4989_v63 }
 0x492   : > { %v7306_v42 = vpop.eup %4992  ;;  %4998 = vpow2.f32 %v2976_v57  ;;  %v2212_v62 = vadd.f32 %v2211_v25, %v6983_v2  ;;  %v2256_v41 = vadd.f32 %v2255_v1, %v6969_v0  ;;  %v2422_v55 = vunpack.c.l.bf16 %v7297_v34 }
 0x493   : > { %5000 = vpow2.f32 %v2978_v54  ;;  %v2817_v48 = vpack.c.bf16 %v2771_v17, %v2770_v14  ;;  %v7313_v11 = vpop.eup %4994  ;;  %v2716_v58 = vunpack.c.l.bf16 %v2662_v4  ;;  %v2717_v20 = vunpack.c.h.bf16 %v2662_v4 }
 0x494   : > { %8244 = vst [vmem:[#allocation92_spill] sm:$0xff] %v7313_v11  ;;  %v2588_v63 = vmax.f32 %v2428_v16, 0.0  ;;  %v2589_v39 = vmax.f32 %v2429_v59, 0.0  ;;  %v3086_v25 = vunpack.c.l.bf16 %v3039_v31  ;;  %5002 = vtanh.f32 %v2428_v16 }
 0x495   : > { %v2866_v26 = vunpack.c.l.bf16 %v2817_v48  ;;  %v2867_v40 = vunpack.c.h.bf16 %v2817_v48  ;;  %v7317_v57 = vpop.eup %4996  ;;  %v2780_v17 = vsub.f32 0.0, %v2716_v58  ;;  %v2781_v54 = vsub.f32 0.0, %v2717_v20  ;;  %v2304_v48 = vpop.f32.mrf.mxu3 }
 0x496   : > { %8245 = vst [vmem:[#allocation93_spill] sm:$0xff] %v7317_v57  ;;  %5004 = vtanh.f32 %v2429_v59  ;;  %v2423_v13 = vunpack.c.h.bf16 %v7297_v34  ;;  %v2582_v4 = vmax.f32 %v2422_v55, 0.0  ;;  %v2659_v11 = vand.u32 2147450879, %v7297_v34 }
 0x497   : > { %v2964_v14 = vmul.f32 1.442695, %v2866_v26  ;;  %v2966_v1 = vmul.f32 1.442695, %v2867_v40  ;;  %v2822_v10 = vpack.c.bf16 %v2781_v54, %v2780_v17  ;;  %5006 = vtanh.f32 %v2422_v55 }
 0x498   : > { %v4999_v30 = vpop.eup %4998  ;;  %v3087_v50 = vunpack.c.h.bf16 %v3039_v31  ;;  %v7321_v57 = vpack.c.bf16 %v2589_v39, %v2588_v63  ;;  %v2583_v16 = vmax.f32 %v2423_v13, 0.0  ;;  %v7323_v58 = vadd.f32 1.0, %v3086_v25 }
 0x499   : > { %v5001_v23 = vpop.eup %5000  ;;  %5008 = vpow2.f32 %v2964_v14  ;;  %v2876_v40 = vunpack.c.l.bf16 %v2822_v10  ;;  %v2877_v59 = vunpack.c.h.bf16 %v2822_v10  ;;  %v2710_v20 = vunpack.c.l.bf16 %v2659_v11 }
 0x49a   : > { %8246 = vst [vmem:[#allocation94_spill] sm:$0xff] %v7323_v58  ;;  %5010 = vpow2.f32 %v2966_v1  ;;  %v2711_v26 = vunpack.c.h.bf16 %v2659_v11  ;;  %v2343_v17 = vpack.c.bf16 %v2212_v62, %v7289_v9  ;;  %v2305_v55 = vadd.f32 %v2304_v48, %v6969_v0  ;;  %v7327_v54 = vpop.eup %5002 }
 0x49b   : > { %v3044_v34 = vpack.c.bf16 %v5001_v23, %v4999_v30  ;;  %v2984_v60 = vmul.f32 1.442695, %v2876_v40  ;;  %v2986_v31 = vmul.f32 1.442695, %v2877_v59  ;;  %v7329_v14 = vpack.c.bf16 %v2583_v16, %v2582_v4 }
 0x49c   : > { %v7331_v63 = vpop.eup %5004  ;;  %v7333_v39 = vadd.f32 1.0, %v3087_v50  ;;  %5012 = vtanh.f32 %v2423_v13  ;;  %v2774_v25 = vsub.f32 0.0, %v2710_v20  ;;  %v2775_v10 = vsub.f32 0.0, %v2711_v26 }
 0x49d   : > { %8247 = vst [vmem:[#allocation95_spill] sm:$0xff] %v7329_v14  ;;  %v7335_v1 = vpop.eup %5006  ;;  %5014 = vpow2.f32 %v2984_v60  ;;  %v2432_v62 = vunpack.c.l.bf16 %v2343_v17  ;;  %v2433_v30 = vunpack.c.h.bf16 %v2343_v17  ;;  %v2664_v4 = vand.u32 2147450879, %v2343_v17 }
 0x49e   : > { %8248 = vst [vmem:[#allocation96_spill] sm:$0xff] %v7333_v39  ;;  %5016 = vpow2.f32 %v2986_v31  ;;  %v2819_v11 = vpack.c.bf16 %v2775_v10, %v2774_v25  ;;  %v3096_v16 = vunpack.c.l.bf16 %v3044_v34  ;;  %v3097_v50 = vunpack.c.h.bf16 %v3044_v34 }
 0x49f   : > { %8249 = vst [vmem:[#allocation97_spill] sm:$0xff] %v7335_v1  ;;  %v5009_v23 = vpop.eup %5008  ;;  %v7340_v40 = vpack.c.bf16 %v2305_v55, %v2256_v41  ;;  %v2592_v26 = vmax.f32 %v2432_v62, 0.0  ;;  %v2593_v0 = vmax.f32 %v2433_v30, 0.0  ;;  %v2720_v1 = vunpack.c.l.bf16 %v2664_v4 }
 0x4a0   : > { %v5011_v48 = vpop.eup %5010  ;;  %v2870_v20 = vunpack.c.l.bf16 %v2819_v11  ;;  %v2871_v60 = vunpack.c.h.bf16 %v2819_v11  ;;  %v2721_v39 = vunpack.c.h.bf16 %v2664_v4  ;;  %5018 = vtanh.f32 %v2432_v62  ;;  %v2164_v11 = vpop.f32.mrf.mxu0 }
 0x4a1   : > { %v3041_v59 = vpack.c.bf16 %v5011_v48, %v5009_v23  ;;  %v2426_v34 = vunpack.c.l.bf16 %v7340_v40  ;;  %v2784_v41 = vsub.f32 0.0, %v2720_v1  ;;  %v2427_v23 = vunpack.c.h.bf16 %v7340_v40 }
 0x4a2   : > { %v7343_v31 = vpop.eup %5012  ;;  %v2972_v25 = vmul.f32 1.442695, %v2870_v20  ;;  %v2974_v17 = vmul.f32 1.442695, %v2871_v60  ;;  %v2785_v55 = vsub.f32 0.0, %v2721_v39  ;;  %v7347_v58 = vadd.f32 1.0, %v3096_v16 }
 0x4a3   : > { %8250 = vst [vmem:[#allocation98_spill] sm:$0xff] %v7343_v31  ;;  %v5015_v10 = vpop.eup %5014  ;;  %v3090_v13 = vunpack.c.l.bf16 %v3041_v59  ;;  %v3091_v9 = vunpack.c.h.bf16 %v3041_v59  ;;  %v7349_v4 = vpack.c.bf16 %v2593_v0, %v2592_v26  ;;  %v7351_v31 = vadd.f32 1.0, %v3097_v50  ;;  %v2213_v59 = vpop.f32.mrf.mxu1 }
 0x4a4   : > { %v5017_v48 = vpop.eup %5016  ;;  %5020 = vpow2.f32 %v2972_v25  ;;  %v2824_v62 = vpack.c.bf16 %v2785_v55, %v2784_v41  ;;  %v2586_v60 = vmax.f32 %v2426_v34, 0.0  ;;  %v2587_v14 = vmax.f32 %v2427_v23, 0.0  ;;  %v2257_v25 = vpop.f32.mrf.mxu2 }
 0x4a5   : > { %v3046_v20 = vpack.c.bf16 %v5017_v48, %v5015_v10  ;;  %5022 = vpow2.f32 %v2974_v17  ;;  %v2661_v1 = vand.u32 2147450879, %v7340_v40  ;;  %v2165_v39 = vadd.f32 %v2164_v11, %v6967_v19  ;;  %v2306_v41 = vpop.f32.mrf.mxu3 }
 0x4a6   : > { %v7355_v6 = vadd.f32 1.0, %v3090_v13  ;;  %5024 = vtanh.f32 %v2433_v30  ;;  %v2880_v16 = vunpack.c.l.bf16 %v2824_v62  ;;  %v2881_v27 = vunpack.c.h.bf16 %v2824_v62  ;;  %v7357_v0 = vpop.eup %5018 }
 0x4a7   : > { %v7359_v50 = vadd.f32 1.0, %v3091_v9  ;;  %v2714_v17 = vunpack.c.l.bf16 %v2661_v1  ;;  %v2715_v10 = vunpack.c.h.bf16 %v2661_v1  ;;  %v3100_v55 = vunpack.c.l.bf16 %v3046_v20 }
 0x4a8   : > { %8251 = vst [vmem:[#allocation99_spill] sm:$0xff] %v7355_v6  ;;  %v2992_v40 = vmul.f32 1.442695, %v2880_v16  ;;  %v2994_v48 = vmul.f32 1.442695, %v2881_v27  ;;  %5026 = vtanh.f32 %v2426_v34  ;;  %v3101_v11 = vunpack.c.h.bf16 %v3046_v20 }
 0x4a9   : > { %8252 = vst [vmem:[#allocation100_spill] sm:$0xff] %v7359_v50  ;;  %v7362_v30 = vpack.c.bf16 %v2587_v14, %v2586_v60  ;;  %v2778_v62 = vsub.f32 0.0, %v2714_v17  ;;  %v2779_v6 = vsub.f32 0.0, %v2715_v10  ;;  %v2214_v9 = vadd.f32 %v2213_v59, %v6967_v19 }
 0x4aa   : > { %v5021_v13 = vpop.eup %5020  ;;  %5028 = vpow2.f32 %v2992_v40  ;;  %v2258_v50 = vadd.f32 %v2257_v25, %v6971_v21  ;;  %v2307_v26 = vadd.f32 %v2306_v41, %v6971_v21  ;;  %v7370_v20 = vadd.f32 1.0, %v3100_v55 }
 0x4ab   : > { %8253 = vst [vmem:[#allocation101_spill] sm:$0xff] %v7362_v30  ;;  %v5023_v24 = vpop.eup %5022  ;;  %5030 = vpow2.f32 %v2994_v48  ;;  %v2821_v27 = vpack.c.bf16 %v2779_v6, %v2778_v62  ;;  %v2345_v14 = vpack.c.bf16 %v2214_v9, %v2165_v39  ;;  %v7374_v17 = vadd.f32 1.0, %v3101_v11  ;;  %v2167_v48 = vpop.f32.mrf.mxu0 }
 0x4ac   : > { %v3043_v1 = vpack.c.bf16 %v5023_v24, %v5021_v13  ;;  %v7368_v34 = vpop.eup %5024  ;;  %5032 = vtanh.f32 %v2427_v23  ;;  %v7372_v60 = vpack.c.bf16 %v2307_v26, %v2258_v50  ;;  %v2260_v25 = vpop.f32.mrf.mxu2 }
 0x4ad   : > { %v2874_v59 = vunpack.c.l.bf16 %v2821_v27  ;;  %v2875_v10 = vunpack.c.h.bf16 %v2821_v27  ;;  %v2436_v41 = vunpack.c.l.bf16 %v2345_v14  ;;  %v2437_v6 = vunpack.c.h.bf16 %v2345_v14  ;;  %v2216_v27 = vpop.f32.mrf.mxu1 }
 0x4ae   : > { %v7377_v21 = vpop.eup %5026  ;;  %v2666_v40 = vand.u32 2147450879, %v2345_v14  ;;  %v3094_v55 = vunpack.c.l.bf16 %v3043_v1  ;;  %v3095_v13 = vunpack.c.h.bf16 %v3043_v1  ;;  %v2430_v9 = vunpack.c.l.bf16 %v7372_v60 }
 0x4af   : > { %8254 = vst [vmem:[#allocation102_spill] sm:$0xff] %v7377_v21  ;;  %v2980_v23 = vmul.f32 1.442695, %v2874_v59  ;;  %v2982_v39 = vmul.f32 1.442695, %v2875_v10  ;;  %v2596_v26 = vmax.f32 %v2436_v41, 0.0  ;;  %v2431_v24 = vunpack.c.h.bf16 %v7372_v60 }
 0x4b0   : > { %v5029_v50 = vpop.eup %5028  ;;  %v2597_v11 = vmax.f32 %v2437_v6, 0.0  ;;  %v2724_v62 = vunpack.c.l.bf16 %v2666_v40  ;;  %v2725_v21 = vunpack.c.h.bf16 %v2666_v40  ;;  %v2168_v14 = vadd.f32 %v2167_v48, %v6963_v37 }
 0x4b1   : > { %v5031_v16 = vpop.eup %5030  ;;  %5034 = vpow2.f32 %v2980_v23  ;;  %v2663_v52 = vand.u32 2147450879, %v7372_v60  ;;  %v2217_v12 = vadd.f32 %v2216_v27, %v6963_v37  ;;  %v2261_v22 = vadd.f32 %v2260_v25, %v6983_v2 }
 0x4b2   : > { %v7383_v30 = vpop.eup %5032  ;;  %v3048_v1 = vpack.c.bf16 %v5031_v16, %v5029_v50  ;;  %5036 = vpow2.f32 %v2982_v39  ;;  %v7385_v59 = vpack.c.bf16 %v2597_v11, %v2596_v26  ;;  %v2788_v10 = vsub.f32 0.0, %v2724_v62  ;;  %v2309_v50 = vpop.f32.mrf.mxu3 }
 0x4b3   : > { %8255 = vst [vmem:[#allocation103_spill] sm:$0xff] %v7383_v30  ;;  %v2789_v32 = vsub.f32 0.0, %v2725_v21  ;;  %v7390_v23 = vadd.f32 1.0, %v3094_v55  ;;  %v7392_v40 = vadd.f32 1.0, %v3095_v13  ;;  %5038 = vtanh.f32 %v2436_v41 }
 0x4b4   : > { %v2590_v48 = vmax.f32 %v2430_v9, 0.0  ;;  %5040 = vtanh.f32 %v2437_v6  ;;  %v2591_v16 = vmax.f32 %v2431_v24, 0.0  ;;  %v2718_v39 = vunpack.c.l.bf16 %v2663_v52 }
 0x4b5   : > { %8256 = vst [vmem:[#allocation104_spill] sm:$0xff] %v7390_v23  ;;  %v2826_v30 = vpack.c.bf16 %v2789_v32, %v2788_v10  ;;  %v3104_v26 = vunpack.c.l.bf16 %v3048_v1  ;;  %v3105_v11 = vunpack.c.h.bf16 %v3048_v1  ;;  %v2719_v60 = vunpack.c.h.bf16 %v2663_v52 }
 0x4b6   : > { %8257 = vst [vmem:[#allocation105_spill] sm:$0xff] %v7392_v40  ;;  %v2782_v55 = vsub.f32 0.0, %v2718_v39  ;;  %5042 = vtanh.f32 %v2430_v9  ;;  %v2347_v40 = vpack.c.bf16 %v2217_v12, %v2168_v14  ;;  %v2310_v32 = vadd.f32 %v2309_v50, %v6983_v2  ;;  %v2169_v2 = vpop.f32.mrf.mxu0 }
 0x4b7   : > { %v5035_v62 = vpop.eup %5034  ;;  %v2884_v27 = vunpack.c.l.bf16 %v2826_v30  ;;  %v2885_v29 = vunpack.c.h.bf16 %v2826_v30  ;;  %v2783_v41 = vsub.f32 0.0, %v2719_v60  ;;  %v7397_v53 = vpack.c.bf16 %v2591_v16, %v2590_v48 }
 0x4b8   : > { %v5037_v13 = vpop.eup %5036  ;;  %v2440_v21 = vunpack.c.l.bf16 %v2347_v40  ;;  %v2441_v8 = vunpack.c.h.bf16 %v2347_v40  ;;  %v2668_v30 = vand.u32 2147450879, %v2347_v40  ;;  %v7403_v39 = vadd.f32 1.0, %v3104_v26 }
 0x4b9   : > { %v3045_v6 = vpack.c.bf16 %v5037_v13, %v5035_v62  ;;  %v3000_v10 = vmul.f32 1.442695, %v2884_v27  ;;  %v3002_v23 = vmul.f32 1.442695, %v2885_v29  ;;  %8258 = vst [vmem:[#allocation106_spill] sm:$0xff] %v7397_v53  ;;  %v7399_v1 = vpop.eup %5038  ;;  %v2823_v52 = vpack.c.bf16 %v2783_v41, %v2782_v55  ;;  %v2218_v62 = vpop.f32.mrf.mxu1 }
 0x4ba   : > { %v7401_v44 = vpop.eup %5040  ;;  %v7405_v9 = vadd.f32 1.0, %v3105_v11  ;;  %v2344_v12 = vpack.c.bf16 %v2310_v32, %v2261_v22  ;;  %v2600_v48 = vmax.f32 %v2440_v21, 0.0  ;;  %v2601_v60 = vmax.f32 %v2441_v8, 0.0 }
 0x4bb   : > { %5044 = vpow2.f32 %v3000_v10  ;;  %v2878_v14 = vunpack.c.l.bf16 %v2823_v52  ;;  %v2879_v29 = vunpack.c.h.bf16 %v2823_v52  ;;  %v3098_v16 = vunpack.c.l.bf16 %v3045_v6 }
 0x4bc   : > { %5046 = vpow2.f32 %v3002_v23  ;;  %v3099_v50 = vunpack.c.h.bf16 %v3045_v6  ;;  %v7407_v27 = vpop.eup %5042  ;;  %v2728_v26 = vunpack.c.l.bf16 %v2668_v30  ;;  %v2170_v11 = vadd.f32 %v2169_v2, %v6965_v35 }
 0x4bd   : > { %5048 = vtanh.f32 %v2431_v24  ;;  %8259 = vst [vmem:[#allocation107_spill] sm:$0xff] %v7407_v27  ;;  %v2988_v40 = vmul.f32 1.442695, %v2878_v14  ;;  %v2990_v55 = vmul.f32 1.442695, %v2879_v29  ;;  %v7410_v13 = vpack.c.bf16 %v2601_v60, %v2600_v48  ;;  %v2262_v29 = vpop.f32.mrf.mxu2  ;;  %v2311_v27 = vpop.f32.mrf.mxu3 }
 0x4be   : > { %v2729_v22 = vunpack.c.h.bf16 %v2668_v30  ;;  %v2434_v41 = vunpack.c.l.bf16 %v2344_v12  ;;  %v2435_v23 = vunpack.c.h.bf16 %v2344_v12  ;;  %v2792_v32 = vsub.f32 0.0, %v2728_v26 }
 0x4bf   : > { %5050 = vpow2.f32 %v2988_v40  ;;  %v2665_v10 = vand.u32 2147450879, %v2344_v12  ;;  %v2219_v6 = vadd.f32 %v2218_v62, %v6965_v35  ;;  %v7413_v52 = vadd.f32 1.0, %v3098_v16 }
 0x4c0   : > { %v7415_v25 = vadd.f32 1.0, %v3099_v50  ;;  %5052 = vpow2.f32 %v2990_v55  ;;  %v2793_v14 = vsub.f32 0.0, %v2729_v22  ;;  %v2594_v48 = vmax.f32 %v2434_v41, 0.0 }
 0x4c1   : > { %v5045_v24 = vpop.eup %5044  ;;  %8260 = vst [vmem:[#allocation108_spill] sm:$0xff] %v7413_v52  ;;  %5054 = vtanh.f32 %v2440_v21  ;;  %v2595_v30 = vmax.f32 %v2435_v23, 0.0  ;;  %v2722_v60 = vunpack.c.l.bf16 %v2665_v10  ;;  %v2723_v62 = vunpack.c.h.bf16 %v2665_v10 }
 0x4c2   : > { %8261 = vst [vmem:[#allocation109_spill] sm:$0xff] %v7415_v25  ;;  %v5047_v2 = vpop.eup %5046  ;;  %5056 = vtanh.f32 %v2441_v8  ;;  %v2828_v12 = vpack.c.bf16 %v2793_v14, %v2792_v32  ;;  %v2349_v55 = vpack.c.bf16 %v2219_v6, %v2170_v11  ;;  %v2263_v14 = vadd.f32 %v2262_v29, %v6967_v19 }
 0x4c3   : > { %v7417_v53 = vpop.eup %5048  ;;  %v3050_v40 = vpack.c.bf16 %v5047_v2, %v5045_v24  ;;  %v2786_v26 = vsub.f32 0.0, %v2722_v60  ;;  %5058 = vtanh.f32 %v2434_v41  ;;  %v7421_v52 = vpack.c.bf16 %v2595_v30, %v2594_v48 }
 0x4c4   : > { %8262 = vst [vmem:[#allocation110_spill] sm:$0xff] %v7417_v53  ;;  %v2888_v22 = vunpack.c.l.bf16 %v2828_v12  ;;  %v2889_v25 = vunpack.c.h.bf16 %v2828_v12  ;;  %5060 = vtanh.f32 %v2435_v23  ;;  %v2787_v18 = vsub.f32 0.0, %v2723_v62 }
 0x4c5   : > { %8263 = vst [vmem:[#allocation111_spill] sm:$0xff] %v7421_v52  ;;  %v5051_v21 = vpop.eup %5050  ;;  %v3108_v5 = vunpack.c.l.bf16 %v3050_v40  ;;  %v2444_v53 = vunpack.c.l.bf16 %v2349_v55  ;;  %v3109_v8 = vunpack.c.h.bf16 %v3050_v40  ;;  %v2445_v6 = vunpack.c.h.bf16 %v2349_v55 }
 0x4c6   : > { %v5053_v24 = vpop.eup %5052  ;;  %v3008_v32 = vmul.f32 1.442695, %v2888_v22  ;;  %v3010_v10 = vmul.f32 1.442695, %v2889_v25  ;;  %v2825_v11 = vpack.c.bf16 %v2787_v18, %v2786_v26  ;;  %v2670_v23 = vand.u32 2147450879, %v2349_v55 }
 0x4c7   : > { %v7424_v2 = vpop.eup %5054  ;;  %v3047_v60 = vpack.c.bf16 %v5053_v24, %v5051_v21  ;;  %5062 = vtanh.f32 %v2444_v53  ;;  %v2312_v30 = vadd.f32 %v2311_v27, %v6967_v19  ;;  %v7430_v12 = vadd.f32 1.0, %v3108_v5  ;;  %v2265_v21 = vpop.f32.mrf.mxu2 }
 0x4c8   : > { %v7426_v41 = vpop.eup %5056  ;;  %5064 = vpow2.f32 %v3008_v32  ;;  %v2882_v25 = vunpack.c.l.bf16 %v2825_v11  ;;  %v2883_v18 = vunpack.c.h.bf16 %v2825_v11  ;;  %v2604_v26 = vmax.f32 %v2444_v53, 0.0  ;;  %v2314_v24 = vpop.f32.mrf.mxu3 }
 0x4c9   : > { %5066 = vpow2.f32 %v3010_v10  ;;  %v7433_v40 = vpop.eup %5058  ;;  %v3102_v62 = vunpack.c.l.bf16 %v3047_v60  ;;  %v2732_v22 = vunpack.c.l.bf16 %v2670_v23  ;;  %v3103_v48 = vunpack.c.h.bf16 %v3047_v60 }
 0x4ca   : > { %8264 = vst [vmem:[#allocation112_spill] sm:$0xff] %v7433_v40  ;;  %v7435_v32 = vpop.eup %5060  ;;  %v2996_v55 = vmul.f32 1.442695, %v2882_v25  ;;  %5068 = vtanh.f32 %v2445_v6  ;;  %v2733_v19 = vunpack.c.h.bf16 %v2670_v23  ;;  %v2998_v5 = vmul.f32 1.442695, %v2883_v18 }
 0x4cb   : > { %8265 = vst [vmem:[#allocation113_spill] sm:$0xff] %v7435_v32  ;;  %v2605_v27 = vmax.f32 %v2445_v6, 0.0  ;;  %v2796_v10 = vsub.f32 0.0, %v2732_v22  ;;  %v2346_v50 = vpack.c.bf16 %v2312_v30, %v2263_v14  ;;  %v2266_v11 = vadd.f32 %v2265_v21, %v6963_v37 }
 0x4cc   : > { %5070 = vpow2.f32 %v2996_v55  ;;  %v2797_v29 = vsub.f32 0.0, %v2733_v19  ;;  %v2315_v53 = vadd.f32 %v2314_v24, %v6963_v37  ;;  %v7441_v40 = vadd.f32 1.0, %v3109_v8 }
 0x4cd   : > { %v7437_v16 = vpop.eup %5062  ;;  %v7443_v32 = vadd.f32 1.0, %v3102_v62  ;;  %5072 = vpow2.f32 %v2998_v5  ;;  %v2438_v60 = vunpack.c.l.bf16 %v2346_v50  ;;  %v2439_v6 = vunpack.c.h.bf16 %v2346_v50 }
 0x4ce   : > { %v5065_v52 = vpop.eup %5064  ;;  %v2830_v25 = vpack.c.bf16 %v2797_v29, %v2796_v10  ;;  %v2667_v18 = vand.u32 2147450879, %v2346_v50  ;;  %v2348_v14 = vpack.c.bf16 %v2315_v53, %v2266_v11  ;;  %v7445_v30 = vadd.f32 1.0, %v3103_v48 }
 0x4cf   : > { %8266 = vst [vmem:[#allocation114_spill] sm:$0xff] %v7443_v32  ;;  %v5067_v23 = vpop.eup %5066  ;;  %v7447_v55 = vpack.c.bf16 %v2605_v27, %v2604_v26  ;;  %5074 = vtanh.f32 %v2438_v60  ;;  %v2598_v62 = vmax.f32 %v2438_v60, 0.0  ;;  %v2599_v11 = vmax.f32 %v2439_v6, 0.0 }
 0x4d0   : > { %8267 = vst [vmem:[#allocation115_spill] sm:$0xff] %v7445_v30  ;;  %v3052_v22 = vpack.c.bf16 %v5067_v23, %v5065_v52  ;;  %v7449_v21 = vpop.eup %5068  ;;  %v2892_v37 = vunpack.c.l.bf16 %v2830_v25  ;;  %v2893_v8 = vunpack.c.h.bf16 %v2830_v25  ;;  %5076 = vtanh.f32 %v2439_v6  ;;  %v2267_v30 = vpop.f32.mrf.mxu2 }
 0x4d1   : > { %v2726_v5 = vunpack.c.l.bf16 %v2667_v18  ;;  %v2727_v32 = vunpack.c.h.bf16 %v2667_v18  ;;  %v2442_v48 = vunpack.c.l.bf16 %v2348_v14  ;;  %v7457_v15 = vpack.c.bf16 %v2599_v11, %v2598_v62 }
 0x4d2   : > { %v3112_v24 = vunpack.c.l.bf16 %v3052_v22  ;;  %v3113_v19 = vunpack.c.h.bf16 %v3052_v22  ;;  %v5071_v29 = vpop.eup %5070  ;;  %v3016_v10 = vmul.f32 1.442695, %v2892_v37  ;;  %v3018_v50 = vmul.f32 1.442695, %v2893_v8 }
 0x4d3   : > { %v5073_v53 = vpop.eup %5072  ;;  %v2790_v27 = vsub.f32 0.0, %v2726_v5  ;;  %v2791_v23 = vsub.f32 0.0, %v2727_v32  ;;  %v2443_v8 = vunpack.c.h.bf16 %v2348_v14  ;;  %8270 = vst [vmem:[#allocation118_spill] sm:$0xff] %v7457_v15  ;;  %v2268_v32 = vadd.f32 %v2267_v30, %v6965_v35 }
 0x4d4   : > { %v3176_v52 = vadd.f32 1.0, %v3112_v24  ;;  %v3177_v26 = vadd.f32 1.0, %v3113_v19  ;;  %v3049_v43 = vpack.c.bf16 %v5073_v53, %v5071_v29  ;;  %5078 = vpow2.f32 %v3016_v10  ;;  %v2316_v53 = vpop.f32.mrf.mxu3 }
 0x4d5   : > { %v7453_v22 = vpop.eup %5074  ;;  %5080 = vpow2.f32 %v3018_v50  ;;  %v2827_v37 = vpack.c.bf16 %v2791_v23, %v2790_v27  ;;  %v2602_v24 = vmax.f32 %v2442_v48, 0.0  ;;  %v2669_v27 = vand.u32 2147450879, %v2348_v14 }
 0x4d6   : > { %8268 = vst [vmem:[#allocation116_spill] sm:$0xff] %v7453_v22  ;;  %v3212_v18 = vpack.c.bf16 %v3177_v26, %v3176_v52  ;;  %v7455_v6 = vpop.eup %5076  ;;  %5082 = vtanh.f32 %v2442_v48  ;;  %v3106_v60 = vunpack.c.l.bf16 %v3049_v43  ;;  %v3107_v25 = vunpack.c.h.bf16 %v3049_v43 }
 0x4d7   : > { %8269 = vst [vmem:[#allocation117_spill] sm:$0xff] %v7455_v6  ;;  %v2886_v29 = vunpack.c.l.bf16 %v2827_v37  ;;  %v2887_v10 = vunpack.c.h.bf16 %v2827_v37  ;;  %5084 = vtanh.f32 %v2443_v8  ;;  %v2603_v52 = vmax.f32 %v2443_v8, 0.0 }
 0x4d8   : > { %v3272_v19 = vunpack.c.l.bf16 %v3212_v18  ;;  %v3273_v5 = vunpack.c.h.bf16 %v3212_v18  ;;  %v2317_v30 = vadd.f32 %v2316_v53, %v6965_v35  ;;  %v2730_v37 = vunpack.c.l.bf16 %v2669_v27 }
 0x4d9   : > { %v3004_v50 = vmul.f32 1.442695, %v2886_v29  ;;  %v3006_v26 = vmul.f32 1.442695, %v2887_v10  ;;  %v7461_v11 = vpack.c.bf16 %v2603_v52, %v2602_v24  ;;  %v2731_v43 = vunpack.c.h.bf16 %v2669_v27 }
 0x4da   : > { %5086 = vlog2.f32 %v3272_v19  ;;  %v5079_v23 = vpop.eup %5078  ;;  %v7467_v8 = vadd.f32 1.0, %v3106_v60  ;;  %v7469_v19 = vadd.f32 1.0, %v3107_v25  ;;  %v2350_v24 = vpack.c.bf16 %v2317_v30, %v2268_v32 }
 0x4db   : > { %5088 = vlog2.f32 %v3273_v5  ;;  %v5081_v48 = vpop.eup %5080  ;;  %v2794_v5 = vsub.f32 0.0, %v2730_v37  ;;  %v2795_v29 = vsub.f32 0.0, %v2731_v43 }
 0x4dc   : > { %5090 = vpow2.f32 %v3004_v50  ;;  %v7465_v6 = vpop.eup %5082  ;;  %8272 = vst [vmem:[#allocation120_spill] sm:$0xff] %v7467_v8  ;;  %v3054_v14 = vpack.c.bf16 %v5081_v48, %v5079_v23  ;;  %v2447_v48 = vunpack.c.h.bf16 %v2350_v24  ;;  %v2671_v18 = vand.u32 2147450879, %v2350_v24 }
 0x4dd   : > { %8271 = vst [vmem:[#allocation119_spill] sm:$0xff] %v7465_v6  ;;  %5092 = vpow2.f32 %v3006_v26  ;;  %v7473_v10 = vpop.eup %5084  ;;  %v2829_v25 = vpack.c.bf16 %v2795_v29, %v2794_v5  ;;  %v2446_v26 = vunpack.c.l.bf16 %v2350_v24  ;;  %v3208_v50 = vpack.c.bf16 %v7405_v9, %v7403_v39 }
 0x4de   : > { %8273 = vst [vmem:[#allocation121_spill] sm:$0xff] %v7469_v19  ;;  %v3116_v53 = vunpack.c.l.bf16 %v3054_v14  ;;  %v3117_v52 = vunpack.c.h.bf16 %v3054_v14  ;;  %v2607_v29 = vmax.f32 %v2447_v48, 0.0  ;;  %v2734_v24 = vunpack.c.l.bf16 %v2671_v18 }
 0x4df   : > { %8274 = vst [vmem:[#allocation122_spill] sm:$0xff] %v7473_v10  ;;  %v2890_v15 = vunpack.c.l.bf16 %v2829_v25  ;;  %v2891_v14 = vunpack.c.h.bf16 %v2829_v25  ;;  %5094 = vtanh.f32 %v2446_v26  ;;  %v2606_v5 = vmax.f32 %v2446_v26, 0.0 }
 0x4e0   : > { %v5087_v27 = vpop.eup %5086  ;;  %v3180_v30 = vadd.f32 1.0, %v3116_v53  ;;  %v3181_v43 = vadd.f32 1.0, %v3117_v52  ;;  %5096 = vtanh.f32 %v2447_v48  ;;  %v2735_v9 = vunpack.c.h.bf16 %v2671_v18 }
 0x4e1   : > { %v5089_v37 = vpop.eup %5088  ;;  %v3393_v32 = vmul.f32 0.6931472, %v5087_v27  ;;  %v3012_v8 = vmul.f32 1.442695, %v2890_v15  ;;  %v3014_v52 = vmul.f32 1.442695, %v2891_v14  ;;  %v7481_v25 = vpack.c.bf16 %v2607_v29, %v2606_v5 }
 0x4e2   : > { %v5091_v62 = vpop.eup %5090  ;;  %v3395_v35 = vmul.f32 0.6931472, %v5089_v37  ;;  %v3214_v60 = vpack.c.bf16 %v3181_v43, %v3180_v30  ;;  %v2798_v30 = vsub.f32 0.0, %v2734_v24  ;;  %v2538_v15 = vpack.c.bf16 %v7401_v44, %v7399_v1 }
 0x4e3   : > { %v5093_v22 = vpop.eup %5092  ;;  %v2799_v48 = vsub.f32 0.0, %v2735_v9  ;;  %v3264_v43 = vunpack.c.l.bf16 %v3208_v50  ;;  %v8287_v44 = vunpack.c.l.bf16 %v7282_v36 }
 0x4e4   : > { %v3436_v23 = vpack.c.bf16 %v3395_v35, %v3393_v32  ;;  %v3051_v19 = vpack.c.bf16 %v5093_v22, %v5091_v62  ;;  %v3276_v27 = vunpack.c.l.bf16 %v3214_v60  ;;  %v3277_v53 = vunpack.c.h.bf16 %v3214_v60 }
 0x4e5   : > { %v2536_v35 = vpack.c.bf16 %v7368_v34, %v7357_v0  ;;  %v7487_v22 = vpop.eup %5094  ;;  %v8275_v62 = vunpack.c.l.bf16 %v7410_v13  ;;  %v3210_v32 = vpack.c.bf16 %v7441_v40, %v7430_v12  ;;  %v2831_v29 = vpack.c.bf16 %v2799_v48, %v2798_v30 }
 0x4e6   : > { %v3560_v10 = vunpack.c.l.bf16 %v3436_v23  ;;  %v3561_v37 = vunpack.c.h.bf16 %v3436_v23  ;;  %v3110_v6 = vunpack.c.l.bf16 %v3051_v19  ;;  %5098 = vlog2.f32 %v3276_v27 }
 0x4e7   : > { %v3111_v39 = vunpack.c.h.bf16 %v3051_v19  ;;  %5100 = vlog2.f32 %v3277_v53  ;;  %v8276_v23 = vunpack.c.h.bf16 %v7410_v13  ;;  %v7493_v19 = vpop.eup %5096  ;;  %v3268_v27 = vunpack.c.l.bf16 %v3210_v32 }
 0x4e8   : > { %v3624_v60 = vadd.f32 %v3560_v10, %v8275_v62  ;;  %5102 = vpow2.f32 %v3012_v8  ;;  %v7498_v14 = vadd.f32 1.0, %v3110_v6  ;;  %v3265_v10 = vunpack.c.h.bf16 %v3208_v50 }
 0x4e9   : > { %v3625_v26 = vadd.f32 %v3561_v37, %v8276_v23  ;;  %5104 = vpow2.f32 %v3014_v52  ;;  %v7500_v5 = vadd.f32 1.0, %v3111_v39  ;;  %v3269_v13 = vunpack.c.h.bf16 %v3210_v32 }
 0x4ea   : > { %5106 = vlog2.f32 %v3264_v43  ;;  %v3204_v8 = vpack.c.bf16 %v7351_v31, %v7347_v58  ;;  %v2894_v52 = vunpack.c.l.bf16 %v2831_v29  ;;  %v2895_v24 = vunpack.c.h.bf16 %v2831_v29 }
 0x4eb   : > { %v3660_v37 = vpack.c.bf16 %v3625_v26, %v3624_v60  ;;  %5108 = vlog2.f32 %v3265_v10  ;;  %v3206_v40 = vpack.c.bf16 %v7374_v17, %v7370_v20  ;;  %v2532_v60 = vpack.c.bf16 %v7306_v42, %v7299_v33 }
 0x4ec   : > { %v5099_v53 = vpop.eup %5098  ;;  %5110 = vlog2.f32 %v3268_v27  ;;  %v3256_v6 = vunpack.c.l.bf16 %v3204_v8  ;;  %v3020_v30 = vmul.f32 1.442695, %v2894_v52  ;;  %v3022_v62 = vmul.f32 1.442695, %v2895_v24 }
 0x4ed   : > { %v5101_v9 = vpop.eup %5100  ;;  %v3401_v12 = vmul.f32 0.6931472, %v5099_v53  ;;  %5112 = vlog2.f32 %v3269_v13  ;;  %v3257_v26 = vunpack.c.h.bf16 %v3204_v8  ;;  %v8279_v48 = vpack.c.bf16 %v7426_v41, %v7424_v2 }
 0x4ee   : > { %v5103_v39 = vpop.eup %5102  ;;  %v3403_v50 = vmul.f32 0.6931472, %v5101_v9  ;;  %5114 = vlog2.f32 %v3256_v6  ;;  %v3260_v10 = vunpack.c.l.bf16 %v3206_v40  ;;  %v3261_v27 = vunpack.c.h.bf16 %v3206_v40 }
 0x4ef   : > { %v5105_v23 = vpop.eup %5104  ;;  %5116 = vpow2.f32 %v3020_v30  ;;  %v3708_v32 = vsel %vm7507_vm1, %v8279_v48, %v3660_v37  ;;  %v8280_v2 = vunpack.c.l.bf16 %v7447_v55  ;;  %v8281_v37 = vunpack.c.h.bf16 %v7447_v55 }
 0x4f0   : > { %v3438_v20 = vpack.c.bf16 %v3403_v50, %v3401_v12  ;;  %v3053_v17 = vpack.c.bf16 %v5105_v23, %v5103_v39  ;;  %v5107_v43 = vpop.eup %5106  ;;  %5118 = vpow2.f32 %v3022_v62  ;;  %v3801_v29 = vunpack.c.l.b16 %v3708_v32 }
 0x4f1   : > { %v5109_v13 = vpop.eup %5108  ;;  %v3802_v12 = vunpack.c.h.b16 %v3708_v32  ;;  %v3377_v6 = vmul.f32 0.6931472, %v5107_v43  ;;  %5120 = vlog2.f32 %v3257_v26  ;;  %v7524_v26 = vpack.c.bf16 %v7268_v51, %v7266_v56 }
 0x4f2   : > { %v3564_v53 = vunpack.c.l.bf16 %v3438_v20  ;;  %v3565_v52 = vunpack.c.h.bf16 %v3438_v20  ;;  %v3114_v24 = vunpack.c.l.bf16 %v3053_v17  ;;  %v3115_v8 = vunpack.c.h.bf16 %v3053_v17  ;;  %v5111_v9 = vpop.eup %5110 }
 0x4f3   : > { %v3379_v39 = vmul.f32 0.6931472, %v5109_v13  ;;  %v5113_v50 = vpop.eup %5112  ;;  %v3385_v48 = vmul.f32 0.6931472, %v5111_v9  ;;  %5122 = vlog2.f32 %v3260_v10  ;;  %v8282_v9 = vpack.c.bf16 %v7449_v21, %v7437_v16 }
 0x4f4   : > { %v3628_v41 = vadd.f32 %v3564_v53, %v8280_v2  ;;  %v3629_v30 = vadd.f32 %v3565_v52, %v8281_v37  ;;  %v3178_v62 = vadd.f32 1.0, %v3114_v24  ;;  %v3179_v23 = vadd.f32 1.0, %v3115_v8  ;;  %v5115_v40 = vpop.eup %5114 }
 0x4f5   : > { %v3387_v58 = vmul.f32 0.6931472, %v5113_v50  ;;  %v3432_v20 = vpack.c.bf16 %v3379_v39, %v3377_v6  ;;  %v5117_v17 = vpop.eup %5116  ;;  %5124 = vlog2.f32 %v3261_v27  ;;  %v3361_v52 = vmul.f32 0.6931472, %v5115_v40 }
 0x4f6   : > { %v3213_v18 = vpack.c.bf16 %v3179_v23, %v3178_v62  ;;  %v3662_v32 = vpack.c.bf16 %v3629_v30, %v3628_v41  ;;  %v5119_v43 = vpop.eup %5118  ;;  %v8283_v41 = vunpack.c.l.bf16 %v7349_v4  ;;  %v8284_v16 = vunpack.c.h.bf16 %v7349_v4 }
 0x4f7   : > { %v3434_v13 = vpack.c.bf16 %v3387_v58, %v3385_v48  ;;  %v3552_v53 = vunpack.c.l.bf16 %v3432_v20  ;;  %v3553_v55 = vunpack.c.h.bf16 %v3432_v20  ;;  %v3055_v2 = vpack.c.bf16 %v5119_v43, %v5117_v17  ;;  %v5121_v6 = vpop.eup %5120 }
 0x4f8   : > { %v3274_v24 = vunpack.c.l.bf16 %v3213_v18  ;;  %v3275_v8 = vunpack.c.h.bf16 %v3213_v18  ;;  %v3710_v10 = vsel %vm7507_vm1, %v8282_v9, %v3662_v32  ;;  %v8285_v20 = vunpack.c.l.bf16 %v7385_v59 }
 0x4f9   : > { %v3805_v27 = vunpack.c.l.b16 %v3710_v10  ;;  %v3806_v39 = vunpack.c.h.b16 %v3710_v10  ;;  %v3556_v50 = vunpack.c.l.bf16 %v3434_v13  ;;  %v3557_v51 = vunpack.c.h.bf16 %v3434_v13  ;;  %v5123_v30 = vpop.eup %5122 }
 0x4fa   : > { %5126 = vlog2.f32 %v3274_v24  ;;  %v3118_v56 = vunpack.c.l.bf16 %v3055_v2  ;;  %v3119_v58 = vunpack.c.h.bf16 %v3055_v2  ;;  %v3616_v37 = vadd.f32 %v3552_v53, %v8283_v41 }
 0x4fb   : > { %5128 = vlog2.f32 %v3275_v8  ;;  %v3837_v18 = vpack.c.b16 %v3805_v27, %v3801_v29  ;;  %v3838_v62 = vpack.c.b16 %v3806_v39, %v3802_v12  ;;  %v3617_v21 = vadd.f32 %v3553_v55, %v8284_v16  ;;  %v5125_v23 = vpop.eup %5124 }
 0x4fc   : > { %v3182_v40 = vadd.f32 1.0, %v3118_v56  ;;  %v3183_v48 = vadd.f32 1.0, %v3119_v58  ;;  %v3620_v17 = vadd.f32 %v3556_v50, %v8285_v20  ;;  %v8286_v32 = vunpack.c.h.bf16 %v7385_v59 }
 0x4fd   : > { %3873 = vmatpush.bf16.msrb.mxu0 %v3837_v18  ;;  %3886 = vmatpush.bf16.msrb.mxu1 %v3838_v62  ;;  %v3656_v13 = vpack.c.bf16 %v3617_v21, %v3616_v37  ;;  %v3363_v53 = vmul.f32 0.6931472, %v5121_v6  ;;  %v3369_v24 = vmul.f32 0.6931472, %v5123_v30  ;;  %v3371_v8 = vmul.f32 0.6931472, %v5125_v23 }
 0x4fe   : > { %v3621_v43 = vadd.f32 %v3557_v51, %v8286_v32  ;;  %v3215_v29 = vpack.c.bf16 %v3183_v48, %v3182_v40  ;;  %v3202_v4 = vpack.c.bf16 %v7308_v28, %v7302_v7  ;;  %v3248_v55 = vunpack.c.l.bf16 %v7524_v26 }
 0x4ff   : > { %v3704_v59 = vsel %vm7507_vm1, %v2536_v35, %v3656_v13  ;;  %v3428_v2 = vpack.c.bf16 %v3363_v53, %v3361_v52  ;;  %v3430_v9 = vpack.c.bf16 %v3371_v8, %v3369_v24  ;;  %v3249_v10 = vunpack.c.h.bf16 %v7524_v26 }
 0x500   : > { %v3658_v12 = vpack.c.bf16 %v3621_v43, %v3620_v17  ;;  %v5127_v6 = vpop.eup %5126  ;;  %v3278_v27 = vunpack.c.l.bf16 %v3215_v29  ;;  %v3279_v39 = vunpack.c.h.bf16 %v3215_v29  ;;  %v3793_v28 = vunpack.c.l.b16 %v3704_v59 }
 0x501   : > { %v5129_v50 = vpop.eup %5128  ;;  %v3397_v51 = vmul.f32 0.6931472, %v5127_v6  ;;  %v3794_v34 = vunpack.c.h.b16 %v3704_v59  ;;  %v3544_v52 = vunpack.c.l.bf16 %v3428_v2  ;;  %v3545_v58 = vunpack.c.h.bf16 %v3428_v2 }
 0x502   : > { %v3706_v7 = vsel %vm7507_vm1, %v2538_v15, %v3658_v12  ;;  %v3399_v35 = vmul.f32 0.6931472, %v5129_v50  ;;  %5130 = vlog2.f32 %v3278_v27  ;;  %v3548_v37 = vunpack.c.l.bf16 %v3430_v9 }
 0x503   : > { %v3797_v0 = vunpack.c.l.b16 %v3706_v7  ;;  %v3798_v56 = vunpack.c.h.b16 %v3706_v7  ;;  %5132 = vlog2.f32 %v3279_v39  ;;  %v3549_v18 = vunpack.c.h.bf16 %v3430_v9 }
 0x504   : > { %v3437_v30 = vpack.c.bf16 %v3399_v35, %v3397_v51  ;;  %v3608_v1 = vadd.f32 %v3544_v52, %v8287_v44  ;;  %v8288_v15 = vunpack.c.h.bf16 %v7282_v36  ;;  %v8289_v16 = vunpack.c.l.bf16 %v7321_v57  ;;  %v8294_v51 = vld [vmem:[#allocation61_spill] sm:$0xff]  ;;  %v8297_v44 = vld [vmem:[#allocation122_spill] sm:$0xff] }
 0x505   : > { %v3833_v26 = vpack.c.b16 %v3797_v0, %v3793_v28  ;;  %v3834_v41 = vpack.c.b16 %v3798_v56, %v3794_v34  ;;  %v3252_v23 = vunpack.c.l.bf16 %v3202_v4  ;;  %v3253_v40 = vunpack.c.h.bf16 %v3202_v4  ;;  %v8295_v0 = vld [vmem:[#allocation62_spill] sm:$0xff] }
 0x506   : > { %v3609_v62 = vadd.f32 %v3545_v58, %v8288_v15  ;;  %v3612_v21 = vadd.f32 %v3548_v37, %v8289_v16  ;;  %5134 = vlog2.f32 %v3248_v55  ;;  %v3562_v48 = vunpack.c.l.bf16 %v3437_v30 }
 0x507   : > { %3874 = vmatpush.bf16.msrb.mxu0 %v3833_v26  ;;  %3887 = vmatpush.bf16.msrb.mxu1 %v3834_v41  ;;  %v3563_v20 = vunpack.c.h.bf16 %v3437_v30  ;;  %v8290_v17 = vunpack.c.h.bf16 %v7321_v57  ;;  %v2534_v13 = vpack.c.bf16 %v7331_v63, %v7327_v54  ;;  %v2528_v36 = vpack.c.bf16 %v7231_v3, %v7226_v61 }
 0x508   : > { %v3652_v43 = vpack.c.bf16 %v3609_v62, %v3608_v1  ;;  %v2530_v53 = vpack.c.bf16 %v7263_v47, %v7258_v49  ;;  %5136 = vlog2.f32 %v3249_v10  ;;  %v5131_v24 = vpop.eup %5130  ;;  %v8291_v8 = vunpack.c.l.bf16 %v7461_v11 }
 0x509   : > { %v3613_v32 = vadd.f32 %v3549_v18, %v8290_v17  ;;  %v2351_v4 = vlaneseq  ;;  %v5133_v54 = vpop.eup %5132  ;;  %v8292_v63 = vunpack.c.h.bf16 %v7461_v11  ;;  %v3405_v59 = vmul.f32 0.6931472, %v5131_v24 }
 0x50a   : > { %v3626_v29 = vadd.f32 %v3562_v48, %v8291_v8  ;;  %v3700_v57 = vsel %vm7507_vm1, %v2532_v60, %v3652_v43  ;;  %5138 = vlog2.f32 %v3252_v23  ;;  %v3407_v9 = vmul.f32 0.6931472, %v5133_v54  ;;  %v8293_v60 = vld [vmem:[#allocation82_spill] sm:$0xff] }
 0x50b   : > { %v3654_v12 = vpack.c.bf16 %v3613_v32, %v3612_v21  ;;  %v3627_v55 = vadd.f32 %v3563_v20, %v8292_v63  ;;  %v3785_v2 = vunpack.c.l.b16 %v3700_v57  ;;  %v3786_v6 = vunpack.c.h.b16 %v3700_v57 }
 0x50c   : > { %5140 = vlog2.f32 %v3253_v40  ;;  %v5135_v27 = vpop.eup %5134  ;;  %v3196_v33 = vpack.c.bf16 %v7208_v46, %v7204_v45  ;;  %v3198_v7 = vpack.c.bf16 %v8293_v60, %v7239_v38  ;;  %v3439_v11 = vpack.c.bf16 %v3407_v9, %v3405_v59  ;;  %v8296_v38 = vld [vmem:[#allocation119_spill] sm:$0xff]  ;;  %v8304_v60 = vld [vmem:[#allocation54_spill] sm:$0xff] }
 0x50d   : > { %v3702_v10 = vsel %vm7507_vm1, %v2534_v13, %v3654_v12  ;;  %v3345_v28 = vmul.f32 0.6931472, %v5135_v27  ;;  %v2352_v50 = vshrl.u32 %v2351_v4, 7  ;;  %v2524_v34 = vpack.c.bf16 %v8295_v0, %v8294_v51 }
 0x50e   : > { %v3789_v39 = vunpack.c.l.b16 %v3702_v10  ;;  %v3790_v42 = vunpack.c.h.b16 %v3702_v10  ;;  %v5137_v56 = vpop.eup %5136  ;;  %v3240_v58 = vunpack.c.l.bf16 %v3196_v33  ;;  %v3241_v26 = vunpack.c.h.bf16 %v3196_v33  ;;  %v8303_v33 = vld [vmem:[#allocation53_spill] sm:$0xff] }
 0x50f   : > { %v3566_v41 = vunpack.c.l.bf16 %v3439_v11  ;;  %v3567_v37 = vunpack.c.h.bf16 %v3439_v11  ;;  %v3347_v30 = vmul.f32 0.6931472, %v5137_v56  ;;  %v3244_v18 = vunpack.c.l.bf16 %v3198_v7  ;;  %v8305_v11 = vld [vmem:[#allocation64_spill] sm:$0xff] }
 0x510   : > { %v3829_v35 = vpack.c.b16 %v3789_v39, %v3785_v2  ;;  %v3830_v52 = vpack.c.b16 %v3790_v42, %v3786_v6  ;;  %v5139_v45 = vpop.eup %5138  ;;  %v3245_v46 = vunpack.c.h.bf16 %v3198_v7  ;;  %5142 = vlog2.f32 %v3240_v58 }
 0x511   : > { %v2541_v1 = vpack.c.bf16 %v8297_v44, %v8296_v38  ;;  %v3661_v15 = vpack.c.bf16 %v3627_v55, %v3626_v29  ;;  %v8298_v16 = vunpack.c.l.bf16 %v7481_v25  ;;  %v8299_v23 = vunpack.c.h.bf16 %v7481_v25  ;;  %v8300_v25 = vld [vmem:[#allocation76_spill] sm:$0xff] }
 0x512   : > { %3875 = vmatpush.bf16.msrb.mxu0 %v3829_v35  ;;  %3888 = vmatpush.bf16.msrb.mxu1 %v3830_v52  ;;  %v5141_v62 = vpop.eup %5140  ;;  %v3353_v48 = vmul.f32 0.6931472, %v5139_v45  ;;  %v3424_v20 = vpack.c.bf16 %v3347_v30, %v3345_v28  ;;  %5144 = vlog2.f32 %v3241_v26  ;;  %v2543_v32 = vpack.c.bf16 %v7493_v19, %v7487_v22  ;;  %v8306_v28 = vld [vmem:[#allocation65_spill] sm:$0xff]  ;;  %v8307_v35 = vld [vmem:[#allocation80_spill] sm:$0xff] }
 0x513   : > { %v3630_v21 = vadd.f32 %v3566_v41, %v8298_v16  ;;  %v3631_v40 = vadd.f32 %v3567_v37, %v8299_v23  ;;  %v3355_v17 = vmul.f32 0.6931472, %v5141_v62  ;;  %v3709_v43 = vsel %vm7507_vm1, %v2541_v1, %v3661_v15  ;;  %v8311_v38 = vld [vmem:[#allocation72_spill] sm:$0xff] }
 0x514   : > { %v3536_v13 = vunpack.c.l.bf16 %v3424_v20  ;;  %v3537_v24 = vunpack.c.h.bf16 %v3424_v20  ;;  %5146 = vlog2.f32 %v3244_v18  ;;  %v2358_v12 = vadd.s32 48, %v2352_v50 }
 0x515   : > { %v3663_v8 = vpack.c.bf16 %v3631_v40, %v3630_v21  ;;  %v3426_v29 = vpack.c.bf16 %v3355_v17, %v3353_v48  ;;  %5148 = vlog2.f32 %v3245_v46  ;;  %v3803_v57 = vunpack.c.l.b16 %v3709_v43  ;;  %v8310_v46 = vld [vmem:[#allocation71_spill] sm:$0xff] }
 0x516   : > { %v8301_v54 = vunpack.c.l.bf16 %v8300_v25  ;;  %v8302_v55 = vunpack.c.h.bf16 %v8300_v25  ;;  %v3804_v19 = vunpack.c.h.b16 %v3709_v43  ;;  %v5143_v2 = vpop.eup %5142  ;;  %v3192_v7 = vpack.c.bf16 %v8304_v60, %v8303_v33 }
 0x517   : > { %v3711_v22 = vsel %vm7507_vm1, %v2543_v32, %v3663_v8  ;;  %v3540_v9 = vunpack.c.l.bf16 %v3426_v29  ;;  %v3541_v10 = vunpack.c.h.bf16 %v3426_v29  ;;  %v3329_v42 = vmul.f32 0.6931472, %v5143_v2  ;;  %v8312_v29 = vld [vmem:[#allocation38_spill] sm:$0xff] }
 0x518   : > { %v3600_v63 = vadd.f32 %v3536_v13, %v8301_v54  ;;  %v3601_v59 = vadd.f32 %v3537_v24, %v8302_v55  ;;  %v3807_v6 = vunpack.c.l.b16 %v3711_v22  ;;  %v3808_v27 = vunpack.c.h.b16 %v3711_v22  ;;  %v5145_v56 = vpop.eup %5144  ;;  %v8314_v54 = vld [vmem:[#allocation120_spill] sm:$0xff] }
 0x519   : > { %v3194_v50 = vpack.c.bf16 %v8306_v28, %v8305_v11  ;;  %v8308_v52 = vunpack.c.l.bf16 %v8307_v35  ;;  %v8309_v26 = vunpack.c.h.bf16 %v8307_v35  ;;  %v2526_v44 = vpack.c.bf16 %v8311_v38, %v8310_v46 }
 0x51a   : > { %v3648_v39 = vpack.c.bf16 %v3601_v59, %v3600_v63  ;;  %v3839_v37 = vpack.c.b16 %v3807_v6, %v3803_v57  ;;  %v3840_v30 = vpack.c.b16 %v3808_v27, %v3804_v19  ;;  %v5147_v18 = vpop.eup %5146  ;;  %v3331_v1 = vmul.f32 0.6931472, %v5145_v56  ;;  %v8313_v57 = vld [vmem:[#allocation39_spill] sm:$0xff]  ;;  %v8315_v63 = vld [vmem:[#allocation121_spill] sm:$0xff]  ;;  %v8319_v27 = vld [vmem:[#allocation66_spill] sm:$0xff] }
 0x51b   : > { %v3604_v58 = vadd.f32 %v3540_v9, %v8308_v52  ;;  %v3605_v41 = vadd.f32 %v3541_v10, %v8309_v26  ;;  %v3232_v15 = vunpack.c.l.bf16 %v3192_v7  ;;  %v5149_v62 = vpop.eup %5148  ;;  %vm2374_vm2 = vcmp.lt.s32.totalorder %v2358_v12, 50  ;;  %v8324_v56 = vld [vmem:[#allocation51_spill] sm:$0xff] }
 0x51c   : > { %v3696_v45 = vsel %vm7507_vm1, %v2528_v36, %v3648_v39  ;;  %v3337_v21 = vmul.f32 0.6931472, %v5147_v18  ;;  %3899 = vmatpush.bf16.msrb.mxu2 %v3839_v37  ;;  %3912 = vmatpush.bf16.msrb.mxu3 %v3840_v30  ;;  %v3233_v23 = vunpack.c.h.bf16 %v3192_v7  ;;  %v3339_v20 = vmul.f32 0.6931472, %v5149_v62  ;;  %vm7637_vm3 = vmpackc.low %vm2374_vm2, %vm2374_vm2  ;;  %v8326_v30 = vld [vmem:[#allocation21_spill] sm:$0xff]  ;;  %v8327_v18 = vld [vmem:[#allocation23_spill] sm:$0xff] }
 0x51d   : > { %v3650_v16 = vpack.c.bf16 %v3605_v41, %v3604_v58  ;;  %v3777_v40 = vunpack.c.l.b16 %v3696_v45  ;;  %v3778_v48 = vunpack.c.h.b16 %v3696_v45  ;;  %v3420_v17 = vpack.c.bf16 %v3331_v1, %v3329_v42 }
 0x51e   : > { %v3236_v3 = vunpack.c.l.bf16 %v3194_v50  ;;  %v3237_v36 = vunpack.c.h.bf16 %v3194_v50  ;;  %5150 = vlog2.f32 %v3232_v15  ;;  %v3422_v13 = vpack.c.bf16 %v3339_v20, %v3337_v21 }
 0x51f   : > { %v3698_v61 = vsel %vm7507_vm1, %v2530_v53, %v3650_v16  ;;  %v3528_v24 = vunpack.c.l.bf16 %v3420_v17  ;;  %v3529_v8 = vunpack.c.h.bf16 %v3420_v17  ;;  %v2520_v25 = vpack.c.bf16 %v8313_v57, %v8312_v29  ;;  %v8316_v53 = vld [vmem:[#allocation56_spill] sm:$0xff] }
 0x520   : > { %v3781_v32 = vunpack.c.l.b16 %v3698_v61  ;;  %v3782_v43 = vunpack.c.h.b16 %v3698_v61  ;;  %5152 = vlog2.f32 %v3233_v23  ;;  %v3209_v55 = vpack.c.bf16 %v8315_v63, %v8314_v54  ;;  %v8328_v23 = vld [vmem:[#allocation46_spill] sm:$0xff]  ;;  %v8330_v63 = vld [vmem:[#allocation112_spill] sm:$0xff] }
 0x521   : > { %v3532_v49 = vunpack.c.l.bf16 %v3422_v13  ;;  %v3533_v22 = vunpack.c.h.bf16 %v3422_v13  ;;  %v8317_v19 = vunpack.c.l.bf16 %v8316_v53  ;;  %v8318_v9 = vunpack.c.h.bf16 %v8316_v53 }
 0x522   : > { %v3825_v59 = vpack.c.b16 %v3781_v32, %v3777_v40  ;;  %v3826_v47 = vpack.c.b16 %v3782_v43, %v3778_v48  ;;  %5154 = vlog2.f32 %v3236_v3  ;;  %v3211_v6 = vpack.c.bf16 %v7500_v5, %v7498_v14  ;;  %v8325_v14 = vld [vmem:[#allocation52_spill] sm:$0xff]  ;;  %v8329_v40 = vld [vmem:[#allocation47_spill] sm:$0xff] }
 0x523   : > { %v3592_v2 = vadd.f32 %v3528_v24, %v8317_v19  ;;  %v3593_v10 = vadd.f32 %v3529_v8, %v8318_v9  ;;  %v8320_v39 = vunpack.c.l.bf16 %v8319_v27  ;;  %v8321_v33 = vunpack.c.h.bf16 %v8319_v27 }
 0x524   : > { %3876 = vmatpush.bf16.msrb.mxu0 %v3825_v59  ;;  %3889 = vmatpush.bf16.msrb.mxu1 %v3826_v47  ;;  %5156 = vlog2.f32 %v3237_v36  ;;  %v3266_v11 = vunpack.c.l.bf16 %v3209_v55  ;;  %v5151_v28 = vpop.eup %5150  ;;  %v2522_v5 = vpack.c.bf16 %v8325_v14, %v8324_v56  ;;  %v3267_v35 = vunpack.c.h.bf16 %v3209_v55  ;;  %v8331_v55 = vld [vmem:[#allocation113_spill] sm:$0xff] }
 0x525   : > { %v3596_v42 = vadd.f32 %v3532_v49, %v8320_v39  ;;  %v3597_v60 = vadd.f32 %v3533_v22, %v8321_v33  ;;  %v3644_v50 = vpack.c.bf16 %v3593_v10, %v3592_v2  ;;  %v3270_v52 = vunpack.c.l.bf16 %v3211_v6  ;;  %v8332_v49 = vld [vmem:[#allocation41_spill] sm:$0xff]  ;;  %v8335_v39 = vld [vmem:[#allocation116_spill] sm:$0xff] }
 0x526   : > { %v3313_v26 = vmul.f32 0.6931472, %v5151_v28  ;;  %v3271_v41 = vunpack.c.h.bf16 %v3211_v6  ;;  %5158 = vlog2.f32 %v3266_v11  ;;  %v5153_v37 = vpop.eup %5152  ;;  %v3188_v45 = vpack.c.bf16 %v8327_v18, %v8326_v30  ;;  %v8342_v30 = vld [vmem:[#allocation108_spill] sm:$0xff]  ;;  %v8343_v18 = vld [vmem:[#allocation109_spill] sm:$0xff] }
 0x527   : > { %v3646_v58 = vpack.c.bf16 %v3597_v60, %v3596_v42  ;;  %v3692_v12 = vsel %vm7637_vm3, %v2524_v34, %v3644_v50  ;;  %5160 = vlog2.f32 %v3267_v35  ;;  %v3315_v15 = vmul.f32 0.6931472, %v5153_v37  ;;  %v8336_v42 = vld [vmem:[#allocation117_spill] sm:$0xff] }
 0x528   : > { %v3769_v38 = vunpack.c.l.b16 %v3692_v12  ;;  %v3770_v1 = vunpack.c.h.b16 %v3692_v12  ;;  %v5155_v62 = vpop.eup %5154  ;;  %5162 = vlog2.f32 %v3270_v52  ;;  %v3190_v51 = vpack.c.bf16 %v8329_v40, %v8328_v23  ;;  %v8337_v35 = vld [vmem:[#allocation49_spill] sm:$0xff] }
 0x529   : > { %v3694_v46 = vsel %vm7507_vm1, %v2526_v44, %v3646_v58  ;;  %v3321_v48 = vmul.f32 0.6931472, %v5155_v62  ;;  %v3416_v34 = vpack.c.bf16 %v3315_v15, %v3313_v26  ;;  %5164 = vlog2.f32 %v3271_v41  ;;  %v8344_v15 = vld [vmem:[#allocation114_spill] sm:$0xff]  ;;  %v8345_v62 = vld [vmem:[#allocation115_spill] sm:$0xff] }
 0x52a   : > { %v3773_v16 = vunpack.c.l.b16 %v3694_v46  ;;  %v3774_v21 = vunpack.c.h.b16 %v3694_v46  ;;  %v5157_v0 = vpop.eup %5156  ;;  %v3224_v20 = vunpack.c.l.bf16 %v3188_v45  ;;  %v3225_v36 = vunpack.c.h.bf16 %v3188_v45 }
 0x52b   : > { %v3323_v3 = vmul.f32 0.6931472, %v5157_v0  ;;  %v3520_v32 = vunpack.c.l.bf16 %v3416_v34  ;;  %v3521_v43 = vunpack.c.h.bf16 %v3416_v34  ;;  %v3228_v13 = vunpack.c.l.bf16 %v3190_v51  ;;  %v8346_v34 = vld [vmem:[#allocation111_spill] sm:$0xff] }
 0x52c   : > { %v3821_v17 = vpack.c.b16 %v3773_v16, %v3769_v38  ;;  %v3822_v61 = vpack.c.b16 %v3774_v21, %v3770_v1  ;;  %v5159_v44 = vpop.eup %5158  ;;  %v3229_v24 = vunpack.c.h.bf16 %v3190_v51  ;;  %v2537_v59 = vpack.c.bf16 %v8331_v55, %v8330_v63  ;;  %v8349_v55 = vld [vmem:[#allocation118_spill] sm:$0xff] }
 0x52d   : > { %v5161_v8 = vpop.eup %5160  ;;  %v3418_v54 = vpack.c.bf16 %v3323_v3, %v3321_v48  ;;  %v3381_v47 = vmul.f32 0.6931472, %v5159_v44  ;;  %5166 = vlog2.f32 %v3224_v20  ;;  %v8333_v22 = vunpack.c.l.bf16 %v8332_v49 }
 0x52e   : > { %3877 = vmatpush.bf16.msrb.mxu0 %v3821_v17  ;;  %3890 = vmatpush.bf16.msrb.mxu1 %v3822_v61  ;;  %v8334_v19 = vunpack.c.h.bf16 %v8332_v49  ;;  %v3383_v9 = vmul.f32 0.6931472, %v5161_v8  ;;  %5168 = vlog2.f32 %v3225_v36  ;;  %v5163_v10 = vpop.eup %5162  ;;  %v2539_v33 = vpack.c.bf16 %v8336_v42, %v8335_v39 }
 0x52f   : > { %v3584_v53 = vadd.f32 %v3520_v32, %v8333_v22  ;;  %v3524_v6 = vunpack.c.l.bf16 %v3418_v54  ;;  %v3525_v27 = vunpack.c.h.bf16 %v3418_v54  ;;  %5170 = vlog2.f32 %v3228_v13  ;;  %v5165_v60 = vpop.eup %5164 }
 0x530   : > { %v3585_v2 = vadd.f32 %v3521_v43, %v8334_v19  ;;  %v3389_v28 = vmul.f32 0.6931472, %v5163_v10  ;;  %v3433_v50 = vpack.c.bf16 %v3383_v9, %v3381_v47  ;;  %5172 = vlog2.f32 %v3229_v24 }
 0x531   : > { %v8338_v52 = vunpack.c.l.bf16 %v8337_v35  ;;  %v8339_v26 = vunpack.c.h.bf16 %v8337_v35  ;;  %v3391_v12 = vmul.f32 0.6931472, %v5165_v60  ;;  %v3205_v45 = vpack.c.bf16 %v8343_v18, %v8342_v30 }
 0x532   : > { %v3640_v11 = vpack.c.bf16 %v3585_v2, %v3584_v53  ;;  %v3554_v38 = vunpack.c.l.bf16 %v3433_v50  ;;  %v3555_v1 = vunpack.c.h.bf16 %v3433_v50  ;;  %v3207_v16 = vpack.c.bf16 %v8345_v62, %v8344_v15 }
 0x533   : > { %v3588_v58 = vadd.f32 %v3524_v6, %v8338_v52  ;;  %v3589_v41 = vadd.f32 %v3525_v27, %v8339_v26  ;;  %v5167_v21 = vpop.eup %5166  ;;  %v3435_v0 = vpack.c.bf16 %v3391_v12, %v3389_v28  ;;  %v8347_v20 = vunpack.c.l.bf16 %v8346_v34 }
 0x534   : > { %v3688_v46 = vsel %vm7666_vm5, %v2520_v25, %v3640_v11  ;;  %v5169_v48 = vpop.eup %5168  ;;  %v8348_v61 = vunpack.c.h.bf16 %v8346_v34  ;;  %v3297_v57 = vmul.f32 0.6931472, %v5167_v21  ;;  %v3258_v3 = vunpack.c.l.bf16 %v3205_v45 }
 0x535   : > { %v3642_v23 = vpack.c.bf16 %v3589_v41, %v3588_v58  ;;  %v3761_v40 = vunpack.c.l.b16 %v3688_v46  ;;  %v3762_v51 = vunpack.c.h.b16 %v3688_v46  ;;  %v3618_v17 = vadd.f32 %v3554_v38, %v8347_v20  ;;  %v5171_v25 = vpop.eup %5170  ;;  %v8356_v46 = vld [vmem:[#allocation17_spill] sm:$0xff]  ;;  %v8362_v20 = vld [vmem:[#allocation34_spill] sm:$0xff] }
 0x536   : > { %v3619_v29 = vadd.f32 %v3555_v1, %v8348_v61  ;;  %v3558_v44 = vunpack.c.l.bf16 %v3435_v0  ;;  %v3559_v32 = vunpack.c.h.bf16 %v3435_v0  ;;  %v3299_v43 = vmul.f32 0.6931472, %v5169_v48  ;;  %v5173_v13 = vpop.eup %5172  ;;  %v8357_v1 = vld [vmem:[#allocation31_spill] sm:$0xff] }
 0x537   : > { %v3690_v36 = vsel %vm7666_vm5, %v2522_v5, %v3642_v23  ;;  %v3305_v63 = vmul.f32 0.6931472, %v5171_v25  ;;  %v8350_v47 = vunpack.c.l.bf16 %v8349_v55  ;;  %v8351_v22 = vunpack.c.h.bf16 %v8349_v55  ;;  %v8361_v0 = vld [vmem:[#allocation15_spill] sm:$0xff] }
 0x538   : > { %v3765_v24 = vunpack.c.l.b16 %v3690_v36  ;;  %v3766_v8 = vunpack.c.h.b16 %v3690_v36  ;;  %v3657_v54 = vpack.c.bf16 %v3619_v29, %v3618_v17  ;;  %v3307_v19 = vmul.f32 0.6931472, %v5173_v13  ;;  %v8363_v17 = vld [vmem:[#allocation27_spill] sm:$0xff]  ;;  %v8364_v29 = vld [vmem:[#allocation106_spill] sm:$0xff]  ;;  %v8365_v36 = vld [vmem:[#allocation32_spill] sm:$0xff] }
 0x539   : > { %v3622_v49 = vadd.f32 %v3558_v44, %v8350_v47  ;;  %v3623_v53 = vadd.f32 %v3559_v32, %v8351_v22  ;;  %v3412_v2 = vpack.c.bf16 %v3299_v43, %v3297_v57  ;;  %v3259_v9 = vunpack.c.h.bf16 %v3205_v45  ;;  %v8355_v45 = vld [vmem:[#allocation25_spill] sm:$0xff] }
 0x53a   : > { %v3817_v56 = vpack.c.b16 %v3765_v24, %v3761_v40  ;;  %v3818_v14 = vpack.c.b16 %v3766_v8, %v3762_v51  ;;  %v3705_v5 = vsel %vm7507_vm1, %v2537_v59, %v3657_v54  ;;  %v3414_v39 = vpack.c.bf16 %v3307_v19, %v3305_v63  ;;  %v8352_v59 = vld [vmem:[#allocation30_spill] sm:$0xff]  ;;  %v8366_v44 = vld [vmem:[#allocation33_spill] sm:$0xff]  ;;  %v8368_v19 = vld [vmem:[#allocation103_spill] sm:$0xff] }
 0x53b   : > { %v3659_v10 = vpack.c.bf16 %v3623_v53, %v3622_v49  ;;  %v3795_v6 = vunpack.c.l.b16 %v3705_v5  ;;  %v3796_v27 = vunpack.c.h.b16 %v3705_v5  ;;  %v3512_v42 = vunpack.c.l.bf16 %v3412_v2  ;;  %v8360_v51 = vld [vmem:[#allocation14_spill] sm:$0xff] }
 0x53c   : > { %3878 = vmatpush.bf16.msrb.mxu0 %v3817_v56  ;;  %3891 = vmatpush.bf16.msrb.mxu1 %v3818_v14  ;;  %v3513_v60 = vunpack.c.h.bf16 %v3412_v2  ;;  %v3262_v11 = vunpack.c.l.bf16 %v3207_v16  ;;  %v3263_v28 = vunpack.c.h.bf16 %v3207_v16  ;;  %v3516_v35 = vunpack.c.l.bf16 %v3414_v39  ;;  %v8367_v53 = vld [vmem:[#allocation102_spill] sm:$0xff] }
 0x53d   : > { %v3707_v50 = vsel %vm7507_vm1, %v2539_v33, %v3659_v10  ;;  %v3517_v52 = vunpack.c.h.bf16 %v3414_v39  ;;  %5174 = vlog2.f32 %v3258_v3  ;;  %v8353_v41 = vunpack.c.l.bf16 %v8352_v59 }
 0x53e   : > { %v3799_v58 = vunpack.c.l.b16 %v3707_v50  ;;  %v3800_v26 = vunpack.c.h.b16 %v3707_v50  ;;  %v8354_v30 = vunpack.c.h.bf16 %v8352_v59  ;;  %v2516_v38 = vpack.c.bf16 %v8356_v46, %v8355_v45  ;;  %v8372_v50 = vld [vmem:[#allocation105_spill] sm:$0xff]  ;;  %v8377_v45 = vld [vmem:[#allocation28_spill] sm:$0xff]  ;;  %v8378_v46 = vld [vmem:[#allocation18_spill] sm:$0xff] }
 0x53f   : > { %v3576_v12 = vadd.f32 %v3512_v42, %v8353_v41  ;;  %v8358_v15 = vunpack.c.l.bf16 %v8357_v1  ;;  %v8359_v16 = vunpack.c.h.bf16 %v8357_v1  ;;  %5176 = vlog2.f32 %v3259_v9  ;;  %v8369_v42 = vld [vmem:[#allocation99_spill] sm:$0xff] }
 0x540   : > { %v3577_v18 = vadd.f32 %v3513_v60, %v8354_v30  ;;  %v3835_v21 = vpack.c.b16 %v3799_v58, %v3795_v6  ;;  %v3836_v23 = vpack.c.b16 %v3800_v26, %v3796_v27  ;;  %5178 = vlog2.f32 %v3262_v11  ;;  %v8370_v60 = vld [vmem:[#allocation100_spill] sm:$0xff]  ;;  %v8374_v58 = vld [vmem:[#allocation110_spill] sm:$0xff] }
 0x541   : > { %v3580_v62 = vadd.f32 %v3516_v35, %v8358_v15  ;;  %v3581_v33 = vadd.f32 %v3517_v52, %v8359_v16  ;;  %v2518_v48 = vpack.c.bf16 %v8361_v0, %v8360_v51  ;;  %5180 = vlog2.f32 %v3263_v28  ;;  %v8371_v28 = vld [vmem:[#allocation104_spill] sm:$0xff]  ;;  %v8373_v52 = vld [vmem:[#allocation107_spill] sm:$0xff]  ;;  %v8379_v51 = vld [vmem:[#allocation89_spill] sm:$0xff] }
 0x542   : > { %v3636_v40 = vpack.c.bf16 %v3577_v18, %v3576_v12  ;;  %v3184_v61 = vpack.c.bf16 %v8363_v17, %v8362_v20  ;;  %v3486_v57 = vunpack.c.l.bf16 %v8364_v29  ;;  %v3487_v3 = vunpack.c.h.bf16 %v8364_v29  ;;  %3900 = vmatpush.bf16.msrb.mxu2 %v3835_v21  ;;  %3913 = vmatpush.bf16.msrb.mxu3 %v3836_v23  ;;  %v8375_v12 = vld [vmem:[#allocation13_spill] sm:$0xff]  ;;  %v8376_v30 = vld [vmem:[#allocation36_spill] sm:$0xff]  ;;  %v8380_v0 = vld [vmem:[#allocation90_spill] sm:$0xff] }
 0x543   : > { %v3638_v34 = vpack.c.bf16 %v3581_v33, %v3580_v62  ;;  %v3186_v32 = vpack.c.bf16 %v8366_v44, %v8365_v36  ;;  %v5175_v43 = vpop.eup %5174  ;;  %v2533_v2 = vpack.c.bf16 %v8368_v19, %v8367_v53  ;;  %v3201_v11 = vpack.c.bf16 %v8370_v60, %v8369_v42  ;;  %v8382_v20 = vld [vmem:[#allocation96_spill] sm:$0xff]  ;;  %v8383_v36 = vld [vmem:[#allocation101_spill] sm:$0xff] }
 0x544   : > { %v3684_v25 = vsel %vm7666_vm5, %v2516_v38, %v3636_v40  ;;  %v3216_v54 = vunpack.c.l.bf16 %v3184_v61  ;;  %v3365_v47 = vmul.f32 0.6931472, %v5175_v43  ;;  %v3217_v49 = vunpack.c.h.bf16 %v3184_v61 }
 0x545   : > { %v3686_v13 = vsel %vm7666_vm5, %v2518_v48, %v3638_v34  ;;  %v3753_v24 = vunpack.c.l.b16 %v3684_v25  ;;  %v3754_v8 = vunpack.c.h.b16 %v3684_v25  ;;  %v5177_v22 = vpop.eup %5176  ;;  %v3220_v56 = vunpack.c.l.bf16 %v3186_v32  ;;  %v8381_v34 = vld [vmem:[#allocation94_spill] sm:$0xff] }
 0x546   : > { %v3757_v63 = vunpack.c.l.b16 %v3686_v13  ;;  %v3758_v55 = vunpack.c.h.b16 %v3686_v13  ;;  %v3221_v14 = vunpack.c.h.bf16 %v3186_v32  ;;  %5182 = vlog2.f32 %v3216_v54  ;;  %v5179_v5 = vpop.eup %5178 }
 0x547   : > { %v3367_v6 = vmul.f32 0.6931472, %v5177_v22  ;;  %5184 = vlog2.f32 %v3217_v49  ;;  %v5181_v27 = vpop.eup %5180  ;;  %v3373_v39 = vmul.f32 0.6931472, %v5179_v5  ;;  %v3203_v35 = vpack.c.bf16 %v8372_v50, %v8371_v28 }
 0x548   : > { %v3813_v9 = vpack.c.b16 %v3757_v63, %v3753_v24  ;;  %v3814_v10 = vpack.c.b16 %v3758_v55, %v3754_v8  ;;  %5186 = vlog2.f32 %v3220_v56  ;;  %v2535_v26 = vpack.c.bf16 %v8374_v58, %v8373_v52 }
 0x549   : > { %v3375_v59 = vmul.f32 0.6931472, %v5181_v27  ;;  %v3429_v41 = vpack.c.bf16 %v3367_v6, %v3365_v47  ;;  %5188 = vlog2.f32 %v3221_v14  ;;  %v2512_v18 = vpack.c.bf16 %v8376_v30, %v8375_v12 }
 0x54a   : > { %3879 = vmatpush.bf16.msrb.mxu0 %v3813_v9  ;;  %3892 = vmatpush.bf16.msrb.mxu1 %v3814_v10  ;;  %v2514_v38 = vpack.c.bf16 %v8378_v46, %v8377_v45  ;;  %v3250_v1 = vunpack.c.l.bf16 %v3201_v11  ;;  %v3251_v15 = vunpack.c.h.bf16 %v3201_v11  ;;  %v3254_v21 = vunpack.c.l.bf16 %v3203_v35  ;;  %v8398_v45 = vld [vmem:[#allocation78_spill] sm:$0xff] }
 0x54b   : > { %v3431_v62 = vpack.c.bf16 %v3375_v59, %v3373_v39  ;;  %v3546_v16 = vunpack.c.l.bf16 %v3429_v41  ;;  %v3547_v33 = vunpack.c.h.bf16 %v3429_v41  ;;  %v3255_v40 = vunpack.c.h.bf16 %v3203_v35  ;;  %v8386_v41 = vld [vmem:[#allocation29_spill] sm:$0xff] }
 0x54c   : > { %v5183_v23 = vpop.eup %5182  ;;  %5190 = vlog2.f32 %v3250_v1  ;;  %v3197_v48 = vpack.c.bf16 %v8380_v0, %v8379_v51  ;;  %v3199_v17 = vpack.c.bf16 %v8382_v20, %v8381_v34  ;;  %v8384_v44 = vunpack.c.l.bf16 %v8383_v36 }
 0x54d   : > { %v5185_v61 = vpop.eup %5184  ;;  %v3550_v29 = vunpack.c.l.bf16 %v3431_v62  ;;  %v3551_v25 = vunpack.c.h.bf16 %v3431_v62  ;;  %v8385_v43 = vunpack.c.h.bf16 %v8383_v36  ;;  %v3281_v8 = vmul.f32 0.6931472, %v5183_v23  ;;  %v8393_v36 = vld [vmem:[#allocation93_spill] sm:$0xff] }
 0x54e   : > { %v3610_v32 = vadd.f32 %v3546_v16, %v8384_v44  ;;  %v5187_v24 = vpop.eup %5186  ;;  %v3283_v54 = vmul.f32 0.6931472, %v5185_v61  ;;  %5192 = vlog2.f32 %v3251_v15  ;;  %v3242_v63 = vunpack.c.l.bf16 %v3197_v48 }
 0x54f   : > { %v3611_v13 = vadd.f32 %v3547_v33, %v8385_v43  ;;  %v5189_v55 = vpop.eup %5188  ;;  %v3614_v47 = vadd.f32 %v3550_v29, %v3486_v57  ;;  %v3615_v49 = vadd.f32 %v3551_v25, %v3487_v3  ;;  %v3289_v53 = vmul.f32 0.6931472, %v5187_v24  ;;  %v8392_v25 = vld [vmem:[#allocation92_spill] sm:$0xff] }
 0x550   : > { %v3291_v19 = vmul.f32 0.6931472, %v5189_v55  ;;  %v3408_v56 = vpack.c.bf16 %v3283_v54, %v3281_v8  ;;  %5194 = vlog2.f32 %v3254_v21  ;;  %v3243_v14 = vunpack.c.h.bf16 %v3197_v48 }
 0x551   : > { %v3653_v22 = vpack.c.bf16 %v3611_v13, %v3610_v32  ;;  %v3655_v5 = vpack.c.bf16 %v3615_v49, %v3614_v47  ;;  %5196 = vlog2.f32 %v3255_v40  ;;  %v3246_v10 = vunpack.c.l.bf16 %v3199_v17 }
 0x552   : > { %v5191_v6 = vpop.eup %5190  ;;  %v3410_v42 = vpack.c.bf16 %v3291_v19, %v3289_v53  ;;  %v3504_v60 = vunpack.c.l.bf16 %v3408_v56  ;;  %v3505_v3 = vunpack.c.h.bf16 %v3408_v56  ;;  %v3247_v28 = vunpack.c.h.bf16 %v3199_v17  ;;  %v8394_v53 = vld [vmem:[#allocation91_spill] sm:$0xff] }
 0x553   : > { %v3701_v9 = vsel %vm7507_vm1, %v2533_v2, %v3653_v22  ;;  %v3703_v57 = vsel %vm7507_vm1, %v2535_v26, %v3655_v5  ;;  %v3349_v11 = vmul.f32 0.6931472, %v5191_v6  ;;  %v8387_v2 = vunpack.c.l.bf16 %v8386_v41  ;;  %v8389_v26 = vld [vmem:[#allocation20_spill] sm:$0xff] }
 0x554   : > { %v3787_v27 = vunpack.c.l.b16 %v3701_v9  ;;  %v3788_v39 = vunpack.c.h.b16 %v3701_v9  ;;  %v5193_v50 = vpop.eup %5192  ;;  %v3791_v35 = vunpack.c.l.b16 %v3703_v57  ;;  %v3792_v52 = vunpack.c.h.b16 %v3703_v57  ;;  %v8397_v9 = vld [vmem:[#allocation77_spill] sm:$0xff] }
 0x555   : > { %v3508_v58 = vunpack.c.l.bf16 %v3410_v42  ;;  %v3509_v59 = vunpack.c.h.bf16 %v3410_v42  ;;  %v3568_v1 = vadd.f32 %v3504_v60, %v8387_v2  ;;  %v8388_v15 = vunpack.c.h.bf16 %v8386_v41  ;;  %v8400_v42 = vld [vmem:[#allocation85_spill] sm:$0xff]  ;;  %v8404_v41 = vld [vmem:[#allocation86_spill] sm:$0xff] }
 0x556   : > { %v3351_v16 = vmul.f32 0.6931472, %v5193_v50  ;;  %5198 = vlog2.f32 %v3242_v63  ;;  %v5195_v33 = vpop.eup %5194  ;;  %v3831_v21 = vpack.c.b16 %v3791_v35, %v3787_v27  ;;  %v3832_v23 = vpack.c.b16 %v3792_v52, %v3788_v39  ;;  %v8399_v39 = vld [vmem:[#allocation83_spill] sm:$0xff] }
 0x557   : > { %v3569_v62 = vadd.f32 %v3505_v3, %v8388_v15  ;;  %v8390_v40 = vunpack.c.l.bf16 %v8389_v26  ;;  %v8391_v0 = vunpack.c.h.bf16 %v8389_v26  ;;  %v5197_v34 = vpop.eup %5196  ;;  %v3357_v17 = vmul.f32 0.6931472, %v5195_v33  ;;  %v8401_v3 = vld [vmem:[#allocation95_spill] sm:$0xff]  ;;  %v8406_v33 = vld [vmem:[#allocation98_spill] sm:$0xff] }
 0x558   : > { %v3425_v61 = vpack.c.bf16 %v3351_v16, %v3349_v11  ;;  %5200 = vlog2.f32 %v3243_v14  ;;  %3901 = vmatpush.bf16.msrb.mxu2 %v3831_v21  ;;  %3914 = vmatpush.bf16.msrb.mxu3 %v3832_v23  ;;  %v2529_v44 = vpack.c.bf16 %v8393_v36, %v8392_v25  ;;  %v3359_v32 = vmul.f32 0.6931472, %v5197_v34  ;;  %v8405_v16 = vld [vmem:[#allocation97_spill] sm:$0xff] }
 0x559   : > { %v3572_v51 = vadd.f32 %v3508_v58, %v8390_v40  ;;  %v3573_v48 = vadd.f32 %v3509_v59, %v8391_v0  ;;  %v3632_v20 = vpack.c.bf16 %v3569_v62, %v3568_v1  ;;  %5202 = vlog2.f32 %v3246_v10 }
 0x55a   : > { %v3538_v13 = vunpack.c.l.bf16 %v3425_v61  ;;  %v3539_v24 = vunpack.c.h.bf16 %v3425_v61  ;;  %5204 = vlog2.f32 %v3247_v28  ;;  %v3427_v55 = vpack.c.bf16 %v3359_v32, %v3357_v17 }
 0x55b   : > { %v3634_v29 = vpack.c.bf16 %v3573_v48, %v3572_v51  ;;  %v3680_v43 = vsel %vm7666_vm5, %v2512_v18, %v3632_v20  ;;  %v8395_v12 = vunpack.c.l.bf16 %v8394_v53  ;;  %v8396_v18 = vunpack.c.h.bf16 %v8394_v53 }
 0x55c   : > { %v3745_v54 = vunpack.c.l.b16 %v3680_v43  ;;  %v3746_v63 = vunpack.c.h.b16 %v3680_v43  ;;  %v5199_v47 = vpop.eup %5198  ;;  %v3542_v56 = vunpack.c.l.bf16 %v3427_v55  ;;  %v3543_v14 = vunpack.c.h.bf16 %v3427_v55  ;;  %v8407_v43 = vld [vmem:[#allocation59_spill] sm:$0xff] }
 0x55d   : > { %v3682_v8 = vsel %vm7666_vm5, %v2514_v38, %v3634_v29  ;;  %v3602_v30 = vadd.f32 %v3538_v13, %v8395_v12  ;;  %v3603_v19 = vadd.f32 %v3539_v24, %v8396_v18  ;;  %v3333_v5 = vmul.f32 0.6931472, %v5199_v47  ;;  %v8408_v13 = vld [vmem:[#allocation60_spill] sm:$0xff]  ;;  %v8413_v18 = vld [vmem:[#allocation69_spill] sm:$0xff] }
 0x55e   : > { %v3749_v49 = vunpack.c.l.b16 %v3682_v8  ;;  %v3750_v22 = vunpack.c.h.b16 %v3682_v8  ;;  %v3193_v46 = vpack.c.bf16 %v8398_v45, %v8397_v9  ;;  %v5201_v10 = vpop.eup %5200  ;;  %v3195_v60 = vpack.c.bf16 %v8400_v42, %v8399_v39  ;;  %v8416_v9 = vld [vmem:[#allocation84_spill] sm:$0xff] }
 0x55f   : > { %v3649_v27 = vpack.c.bf16 %v3603_v19, %v3602_v30  ;;  %v5203_v57 = vpop.eup %5202  ;;  %v8402_v11 = vunpack.c.l.bf16 %v8401_v3  ;;  %v8403_v50 = vunpack.c.h.bf16 %v8401_v3  ;;  %v3335_v52 = vmul.f32 0.6931472, %v5201_v10  ;;  %v8414_v19 = vld [vmem:[#allocation70_spill] sm:$0xff]  ;;  %v8418_v39 = vld [vmem:[#allocation88_spill] sm:$0xff] }
 0x560   : > { %v3809_v38 = vpack.c.b16 %v3749_v49, %v3745_v54  ;;  %v3810_v6 = vpack.c.b16 %v3750_v22, %v3746_v63  ;;  %v3234_v58 = vunpack.c.l.bf16 %v3193_v46  ;;  %v5205_v59 = vpop.eup %5204  ;;  %v3471_v2 = vunpack.c.h.bf16 %v8404_v41  ;;  %v8409_v63 = vld [vmem:[#allocation79_spill] sm:$0xff] }
 0x561   : > { %v3606_v28 = vadd.f32 %v3542_v56, %v8402_v11  ;;  %v3607_v35 = vadd.f32 %v3543_v14, %v8403_v50  ;;  %v3697_v1 = vsel %vm7507_vm1, %v2529_v44, %v3649_v27  ;;  %v3341_v15 = vmul.f32 0.6931472, %v5203_v57  ;;  %v8417_v27 = vld [vmem:[#allocation87_spill] sm:$0xff] }
 0x562   : > { %3880 = vmatpush.bf16.msrb.mxu0 %v3809_v38  ;;  %3893 = vmatpush.bf16.msrb.mxu1 %v3810_v6  ;;  %v3235_v62 = vunpack.c.h.bf16 %v3193_v46  ;;  %v2531_v21 = vpack.c.bf16 %v8406_v33, %v8405_v16  ;;  %v3343_v26 = vmul.f32 0.6931472, %v5205_v59  ;;  %v3238_v40 = vunpack.c.l.bf16 %v3195_v60  ;;  %v8419_v16 = vld [vmem:[#allocation75_spill] sm:$0xff]  ;;  %v8420_v33 = vld [vmem:[#allocation42_spill] sm:$0xff] }
 0x563   : > { %v3651_v23 = vpack.c.bf16 %v3607_v35, %v3606_v28  ;;  %v3779_v51 = vunpack.c.l.b16 %v3697_v1  ;;  %v3780_v0 = vunpack.c.h.b16 %v3697_v1  ;;  %v3421_v48 = vpack.c.bf16 %v3335_v52, %v3333_v5  ;;  %v8415_v5 = vld [vmem:[#allocation81_spill] sm:$0xff] }
 0x564   : > { %5206 = vlog2.f32 %v3234_v58  ;;  %v3423_v20 = vpack.c.bf16 %v3343_v26, %v3341_v15  ;;  %v3239_v17 = vunpack.c.h.bf16 %v3195_v60  ;;  %v3189_v24 = vpack.c.bf16 %v8408_v13, %v8407_v43  ;;  %v8422_v26 = vld [vmem:[#allocation48_spill] sm:$0xff] }
 0x565   : > { %v3699_v34 = vsel %vm7507_vm1, %v2531_v21, %v3651_v23  ;;  %5208 = vlog2.f32 %v3235_v62  ;;  %v3530_v25 = vunpack.c.l.bf16 %v3421_v48  ;;  %v3531_v36 = vunpack.c.h.bf16 %v3421_v48  ;;  %v8421_v21 = vld [vmem:[#allocation43_spill] sm:$0xff] }
 0x566   : > { %v3783_v61 = vunpack.c.l.b16 %v3699_v34  ;;  %v3784_v29 = vunpack.c.h.b16 %v3699_v34  ;;  %v3534_v44 = vunpack.c.l.bf16 %v3423_v20  ;;  %v3535_v32 = vunpack.c.h.bf16 %v3423_v20 }
 0x567   : > { %5210 = vlog2.f32 %v3238_v40  ;;  %v8410_v55 = vunpack.c.l.bf16 %v8409_v63  ;;  %v8411_v49 = vunpack.c.h.bf16 %v8409_v63  ;;  %v8412_v53 = vunpack.c.l.bf16 %v8404_v41  ;;  %v7802_v41 = vld [vmem:[%s7955_s3] sm:$0xf] }
 0x568   : > { %v3827_v8 = vpack.c.b16 %v3783_v61, %v3779_v51  ;;  %v3828_v54 = vpack.c.b16 %v3784_v29, %v3780_v0  ;;  %v3599_v30 = vadd.f32 %v3535_v32, %v3471_v2  ;;  %5212 = vlog2.f32 %v3239_v17  ;;  %3894 = vmatmul.bf16.vlgmr.msrb.gmra.mxu1 %v7802_v41  ;;  %3881 = vmatmul.bf16.vlgmr.msrb.gmra.mxu0 %v7802_v41  ;;  %v8423_v40 = vld [vmem:[#allocation50_spill] sm:$0xff]  ;;  %v8424_v32 = vld [vmem:[#allocation63_spill] sm:$0xff] }
 0x569   : > { %v3594_v47 = vadd.f32 %v3530_v25, %v8410_v55  ;;  %v3595_v22 = vadd.f32 %v3531_v36, %v8411_v49  ;;  %v3598_v12 = vadd.f32 %v3534_v44, %v8412_v53  ;;  %v3191_v56 = vpack.c.bf16 %v8414_v19, %v8413_v18  ;;  %v8428_v18 = vld [vmem:[#allocation19_spill] sm:$0xff] }
 0x56a   : > { %v5207_v14 = vpop.eup %5206  ;;  %3902 = vmatpush.bf16.msrb.mxu2 %v3827_v8  ;;  %3915 = vmatpush.bf16.msrb.mxu3 %v3828_v54  ;;  %v2525_v45 = vpack.c.bf16 %v8416_v9, %v8415_v5  ;;  %v3226_v10 = vunpack.c.l.bf16 %v3189_v24  ;;  %v3227_v38 = vunpack.c.h.bf16 %v3189_v24  ;;  %v2527_v42 = vpack.c.bf16 %v8418_v39, %v8417_v27  ;;  %v8431_v27 = vld [vmem:[#allocation40_spill] sm:$0xff] }
 0x56b   : > { %v3645_v46 = vpack.c.bf16 %v3595_v22, %v3594_v47  ;;  %v5209_v6 = vpop.eup %5208  ;;  %v3647_v60 = vpack.c.bf16 %v3599_v30, %v3598_v12  ;;  %v3317_v57 = vmul.f32 0.6931472, %v5207_v14  ;;  %v3230_v3 = vunpack.c.l.bf16 %v3191_v56  ;;  %v8427_v30 = vld [vmem:[#allocation26_spill] sm:$0xff]  ;;  %v8430_v14 = vld [vmem:[#allocation68_spill] sm:$0xff] }
 0x56c   : > { %v3319_v28 = vmul.f32 0.6931472, %v5209_v6  ;;  %v3231_v50 = vunpack.c.h.bf16 %v3191_v56  ;;  %5214 = vlog2.f32 %v3226_v10  ;;  %v3462_v31 = vunpack.c.l.bf16 %v8419_v16  ;;  %v8429_v56 = vld [vmem:[#allocation67_spill] sm:$0xff] }
 0x56d   : > { %v3693_v11 = vsel %vm7637_vm3, %v2525_v45, %v3645_v46  ;;  %v5211_v35 = vpop.eup %5210  ;;  %v3695_v52 = vsel %vm7507_vm1, %v2527_v42, %v3647_v60  ;;  %5216 = vlog2.f32 %v3227_v38  ;;  %v3185_v23 = vpack.c.bf16 %v8421_v21, %v8420_v33 }
 0x56e   : > { %v3771_v58 = vunpack.c.l.b16 %v3693_v11  ;;  %v3772_v59 = vunpack.c.h.b16 %v3693_v11  ;;  %v3775_v2 = vunpack.c.l.b16 %v3695_v52  ;;  %v3776_v1 = vunpack.c.h.b16 %v3695_v52  ;;  %v5213_v62 = vpop.eup %5212  ;;  %v8433_v11 = vld [vmem:[#allocation73_spill] sm:$0xff] }
 0x56f   : > { %v3325_v15 = vmul.f32 0.6931472, %v5211_v35  ;;  %v3417_v7 = vpack.c.bf16 %v3319_v28, %v3317_v57  ;;  %5218 = vlog2.f32 %v3230_v3  ;;  %v3187_v51 = vpack.c.bf16 %v8423_v40, %v8422_v26  ;;  %v8432_v57 = vld [vmem:[#allocation57_spill] sm:$0xff]  ;;  %v8434_v28 = vld [vmem:[#allocation74_spill] sm:$0xff] }
 0x570   : > { %v3823_v0 = vpack.c.b16 %v3775_v2, %v3771_v58  ;;  %v3824_v48 = vpack.c.b16 %v3776_v1, %v3772_v59  ;;  %v3327_v34 = vmul.f32 0.6931472, %v5213_v62  ;;  %5220 = vlog2.f32 %v3231_v50 }
 0x571   : > { %v3522_v20 = vunpack.c.l.bf16 %v3417_v7  ;;  %v3523_v17 = vunpack.c.h.bf16 %v3417_v7  ;;  %v3218_v61 = vunpack.c.l.bf16 %v3185_v23  ;;  %v3219_v29 = vunpack.c.h.bf16 %v3185_v23 }
 0x572   : > { %v5215_v25 = vpop.eup %5214  ;;  %v3463_v36 = vunpack.c.h.bf16 %v8419_v16  ;;  %3903 = vmatpush.bf16.msrb.mxu2 %v3823_v0  ;;  %3916 = vmatpush.bf16.msrb.mxu3 %v3824_v48  ;;  %v3419_v44 = vpack.c.bf16 %v3327_v34, %v3325_v15  ;;  %v8425_v43 = vunpack.c.l.bf16 %v8424_v32  ;;  %v3222_v24 = vunpack.c.l.bf16 %v3187_v51 }
 0x573   : > { %v5217_v8 = vpop.eup %5216  ;;  %v8426_v54 = vunpack.c.h.bf16 %v8424_v32  ;;  %v3301_v55 = vmul.f32 0.6931472, %v5215_v25  ;;  %v3223_v47 = vunpack.c.h.bf16 %v3187_v51  ;;  %5222 = vlog2.f32 %v3218_v61  ;;  %v8435_v25 = vld [vmem:[#allocation44_spill] sm:$0xff] }
 0x574   : > { %v3586_v13 = vadd.f32 %v3522_v20, %v8425_v43  ;;  %v3526_v49 = vunpack.c.l.bf16 %v3419_v44  ;;  %v3527_v22 = vunpack.c.h.bf16 %v3419_v44  ;;  %v3303_v53 = vmul.f32 0.6931472, %v5217_v8 }
 0x575   : > { %v3587_v63 = vadd.f32 %v3523_v17, %v8426_v54  ;;  %5224 = vlog2.f32 %v3219_v29  ;;  %v5219_v12 = vpop.eup %5218  ;;  %v7818_v19 = vpack.c.bf16 %v8428_v18, %v8427_v30  ;;  %v2521_v5 = vpack.c.bf16 %v8430_v14, %v8429_v56  ;;  %v8437_v54 = vld [vmem:[#allocation35_spill] sm:$0xff] }
 0x576   : > { %5226 = vlog2.f32 %v3222_v24  ;;  %v3590_v45 = vadd.f32 %v3526_v49, %v3462_v31  ;;  %v3591_v46 = vadd.f32 %v3527_v22, %v3463_v36  ;;  %v3309_v10 = vmul.f32 0.6931472, %v5219_v12  ;;  %v5221_v6 = vpop.eup %5220  ;;  %v8436_v36 = vld [vmem:[#allocation45_spill] sm:$0xff]  ;;  %v8438_v22 = vld [vmem:[#allocation55_spill] sm:$0xff] }
 0x577   : > { %v3641_v9 = vpack.c.bf16 %v3587_v63, %v3586_v13  ;;  %v3413_v38 = vpack.c.bf16 %v3303_v53, %v3301_v55  ;;  %v3450_v39 = vunpack.c.l.bf16 %v8431_v27  ;;  %v3451_v42 = vunpack.c.h.bf16 %v8431_v27  ;;  %v8439_v53 = vld [vmem:[#allocation58_spill] sm:$0xff] }
 0x578   : > { %5228 = vlog2.f32 %v3223_v47  ;;  %v3454_v3 = vunpack.c.l.bf16 %v8432_v57  ;;  %v2523_v50 = vpack.c.bf16 %v8434_v28, %v8433_v11  ;;  %v3643_v35 = vpack.c.bf16 %v3591_v46, %v3590_v45  ;;  %v8440_v28 = vld [vmem:[#allocation22_spill] sm:$0xff] }
 0x579   : > { %v3689_v60 = vsel %vm7666_vm5, %v2521_v5, %v3641_v9  ;;  %v3311_v52 = vmul.f32 0.6931472, %v5221_v6  ;;  %v5223_v58 = vpop.eup %5222  ;;  %v3455_v59 = vunpack.c.h.bf16 %v8432_v57  ;;  %v3514_v1 = vunpack.c.l.bf16 %v3413_v38 }
 0x57a   : > { %v3763_v2 = vunpack.c.l.b16 %v3689_v60  ;;  %v3515_v15 = vunpack.c.h.bf16 %v3413_v38  ;;  %v3691_v62 = vsel %vm7666_vm5, %v2523_v50, %v3643_v35  ;;  %v3764_v16 = vunpack.c.h.b16 %v3689_v60  ;;  %v8441_v50 = vld [vmem:[#allocation16_spill] sm:$0xff] }
 0x57b   : > { %v5225_v7 = vpop.eup %5224  ;;  %v3415_v31 = vpack.c.bf16 %v3311_v52, %v3309_v10  ;;  %v3285_v33 = vmul.f32 0.6931472, %v5223_v58  ;;  %v3767_v23 = vunpack.c.l.b16 %v3691_v62  ;;  %v3768_v26 = vunpack.c.h.b16 %v3691_v62  ;;  %v8442_v52 = vld [vmem:[#allocation24_spill] sm:$0xff]  ;;  %v8443_v58 = vld [vmem:[#allocation37_spill] sm:$0xff] }
 0x57c   : > { %v5227_v21 = vpop.eup %5226  ;;  %v3578_v40 = vadd.f32 %v3514_v1, %v3450_v39  ;;  %v3579_v51 = vadd.f32 %v3515_v15, %v3451_v42  ;;  %v3287_v34 = vmul.f32 0.6931472, %v5225_v7  ;;  %v2517_v44 = vpack.c.bf16 %v8436_v36, %v8435_v25 }
 0x57d   : > { %v3518_v0 = vunpack.c.l.bf16 %v3415_v31  ;;  %v3519_v48 = vunpack.c.h.bf16 %v3415_v31  ;;  %v3293_v20 = vmul.f32 0.6931472, %v5227_v21  ;;  %v3819_v61 = vpack.c.b16 %v3767_v23, %v3763_v2 }
 0x57e   : > { %v5229_v17 = vpop.eup %5228  ;;  %v3820_v29 = vpack.c.b16 %v3768_v26, %v3764_v16  ;;  %v3637_v32 = vpack.c.bf16 %v3579_v51, %v3578_v40  ;;  %v3409_v8 = vpack.c.bf16 %v3287_v34, %v3285_v33  ;;  %v3442_v63 = vunpack.c.l.bf16 %v8437_v54 }
 0x57f   : > { %v3582_v43 = vadd.f32 %v3518_v0, %v3454_v3  ;;  %v3583_v13 = vadd.f32 %v3519_v48, %v3455_v59  ;;  %v3295_v24 = vmul.f32 0.6931472, %v5229_v17  ;;  %v3443_v55 = vunpack.c.h.bf16 %v8437_v54  ;;  %3904 = vmatpush.bf16.msrb.mxu2 %v3819_v61 }
 0x580   : > { %3917 = vmatpush.bf16.msrb.mxu3 %v3820_v29  ;;  %v3685_v47 = vsel %vm7666_vm5, %v2517_v44, %v3637_v32  ;;  %v3446_v49 = vunpack.c.l.bf16 %v7818_v19  ;;  %v2519_v12 = vpack.c.bf16 %v8439_v53, %v8438_v22  ;;  %v3447_v56 = vunpack.c.h.bf16 %v7818_v19  ;;  %v7871_v53 = vld [vmem:[%s5657_s30] sm:$0xff] }
 0x581   : > { %v3639_v30 = vpack.c.bf16 %v3583_v13, %v3582_v43  ;;  %v3411_v18 = vpack.c.bf16 %v3295_v24, %v3293_v20  ;;  %v3755_v14 = vunpack.c.l.b16 %v3685_v47  ;;  %v3506_v5 = vunpack.c.l.bf16 %v3409_v8 }
 0x582   : > { %v3507_v9 = vunpack.c.h.bf16 %v3409_v8  ;;  %v3756_v46 = vunpack.c.h.b16 %v3685_v47  ;;  %v2513_v19 = vpack.c.bf16 %v8441_v50, %v8440_v28  ;;  %v2515_v59 = vpack.c.bf16 %v8443_v58, %v8442_v52 }
 0x583   : > { %v3687_v45 = vsel %vm7666_vm5, %v2519_v12, %v3639_v30  ;;  %v3510_v10 = vunpack.c.l.bf16 %v3411_v18  ;;  %v3511_v38 = vunpack.c.h.bf16 %v3411_v18  ;;  %v3570_v39 = vadd.f32 %v3506_v5, %v3442_v63  ;;  %v7877_v5 = vld [vmem:[%s5657_s30 + $0x8] sm:$0xff]  ;;  %s4218_s30 = sld [smem:[#allocation6 + $0x1]] }
 0x584   : > { %v3759_v6 = vunpack.c.l.b16 %v3687_v45  ;;  %v3760_v27 = vunpack.c.h.b16 %v3687_v45  ;;  %v3571_v42 = vadd.f32 %v3507_v9, %v3443_v55  ;;  %v3966_v40 = vstv %s4221_s12  ;;  %s5367_s12 = sshra.s32 %s4124_s11, 4  ;;  %s5368_s12 = int_to_ptr.hbm [resolvable:$true] %s5367_s12 }
 0x585   : > { %v3574_v60 = vadd.f32 %v3510_v10, %v3446_v49  ;;  %v3575_v57 = vadd.f32 %v3511_v38, %v3447_v56  ;;  %v3925_v37 = vstv %s4220_s13  ;;  %v4318_v12 = vrot.slane %v7871_v53, 9  ;;  %s5369_s13 = scalar_lea.hbm %s5368_s12, 4  ;;  %p5374_p3 = scmp.lt.s32.totalorder %s5368_s12, %s7957_s5 }
 0x586   : > { %v3815_v3 = vpack.c.b16 %v3759_v6, %v3755_v14  ;;  %v3816_v11 = vpack.c.b16 %v3760_v27, %v3756_v46  ;;  %v3633_v35 = vpack.c.bf16 %v3571_v42, %v3570_v39  ;;  %v4319_v9 = vrot.slane %v7877_v5, 9  ;;  %p5370_p0 = scmp.ne.s32.totalorder %s5368_s12, %s5369_s13  ;;  %p5375_p4 = scmp.lt.s32.totalorder %s5373_s15, %s5369_s13 }
 0x587   : > { %v3635_v2 = vpack.c.bf16 %v3575_v57, %v3574_v60  ;;  %v4026_v27 = vmul.f32 %v7871_v53, %v4318_v12  ;;  %vm4105_vm9 = vcmp.lt.s32.totalorder %v2351_v4, 512 }
 0x588   : > { %3905 = vmatpush.bf16.msrb.mxu2 %v3815_v3  ;;  %3918 = vmatpush.bf16.msrb.mxu3 %v3816_v11  ;;  %v3681_v1 = vsel %vm7666_vm5, %v2513_v19, %v3633_v35  ;;  %v4027_v57 = vmul.f32 %v7877_v5, %v4319_v9  ;;  %p5371_p1 = pnand %p5370_p0, %p5505_p5  ;;  %p5376_p7 = por %p5375_p4, %p5374_p3 }
 0x589   : > { %v3683_v15 = vsel %vm7666_vm5, %v2515_v59, %v3635_v2  ;;  %v3747_v7 = vunpack.c.l.b16 %v3681_v1  ;;  %v3748_v16 = vunpack.c.h.b16 %v3681_v1 }
 0x58a   : > { %v3751_v62 = vunpack.c.l.b16 %v3683_v15  ;;  %v3752_v31 = vunpack.c.h.b16 %v3683_v15  ;;  %p5372_p2 = pneg %p5371_p1 }
 0x58c   : > { %v3811_v33 = vpack.c.b16 %v3751_v62, %v3747_v7  ;;  %v3812_v21 = vpack.c.b16 %v3752_v31, %v3748_v16  ;;  %p5377_p8 = pnand %p5376_p7, %p5372_p2 }
 0x58e   : > { %3906 = vmatpush.bf16.msrb.mxu2 %v3811_v33  ;;  %3919 = vmatpush.bf16.msrb.mxu3 %v3812_v21 }
 0x591   : > { %3907 = vmatmul.bf16.vlgmr.msrb.gmra.mxu2 %v7802_v41  ;;  %3920 = vmatmul.bf16.vlgmr.msrb.gmra.mxu3 %v7802_v41 }
 0x5e5   : > { %v3895_v23 = vpop.f32.mrf.mxu1  ;;  %v3882_v45 = vpop.f32.mrf.mxu0 }
 0x5e6   : > { %v7854_v51 = vadd.f32 %v3966_v40, %v3895_v23  ;;  %v7857_v48 = vadd.f32 %v3925_v37, %v3895_v23  ;;  %v7882_v38 = vadd.f32 %v3925_v37, %v3882_v45  ;;  %v7884_v6 = vadd.f32 %v3966_v40, %v3882_v45 }
 0x5e8   : > { %v3976_v0 = vand.u32 2147483647, %v7854_v51  ;;  %v3935_v20 = vand.u32 2147483647, %v7857_v48  ;;  %v3934_v3 = vand.u32 2147483647, %v7882_v38 }
 0x5e9   : > { %v3975_v11 = vand.u32 2147483647, %v7884_v6  ;;  %v3972_v62 = vmax.f32 %v7854_v51, 0.0  ;;  %v4015_v51 = vrot.slane %v7877_v5, 7 }
 0x5ea   : > { %v3980_v34 = vsub.f32 0.0, %v3976_v0  ;;  %v3939_v61 = vsub.f32 0.0, %v3935_v20  ;;  %v3938_v19 = vsub.f32 0.0, %v3934_v3 }
 0x5eb   : > { %v3979_v35 = vsub.f32 0.0, %v3975_v11 }
 0x5ec   : > { %v3985_v17 = vmul.f32 1.442695, %v3980_v34  ;;  %v3944_v29 = vmul.f32 1.442695, %v3939_v61  ;;  %v3942_v2 = vmul.f32 1.442695, %v3938_v19 }
 0x5ed   : > { %v3897_v26 = vpop.f32.mrf.mxu1  ;;  %v3983_v1 = vmul.f32 1.442695, %v3979_v35  ;;  %v3884_v15 = vpop.f32.mrf.mxu0  ;;  %v4043_v35 = vstv %s4042_s22 }
 0x5ee   : > { %5230 = vpow2.f32 %v3985_v17  ;;  %v3931_v26 = vmax.f32 %v7857_v48, 0.0  ;;  %v4060_v17 = vstv %s4218_s30 }
 0x5ef   : > { %5232 = vpow2.f32 %v3944_v29  ;;  %v4014_v29 = vrot.slane %v7871_v53, 7 }
 0x5f4   : > { %v5231_v25 = vpop.eup %5230 }
 0x5f5   : > { %v3992_v13 = vadd.f32 1.0, %v5231_v25  ;;  %v5233_v47 = vpop.eup %5232 }
 0x5f6   : > { %v3951_v14 = vadd.f32 1.0, %v5233_v47  ;;  %v4019_v47 = vsub.f32 %v7877_v5, %v4015_v51 }
 0x5f7   : > { %5234 = vlog2.f32 %v3992_v13 }
 0x5fd   : > { %v5235_v28 = vpop.eup %5234 }
 0x5fe   : > { %v3998_v16 = vmul.f32 0.6931472, %v5235_v28 }
 0x600   : > { %v4004_v34 = vadd.f32 %v3998_v16, %v3972_v62 }
 0x614   : > { %v3908_v41 = vpop.f32.mrf.mxu2  ;;  %v3921_v24 = vpop.f32.mrf.mxu3 }
 0x615   : > { %v7860_v36 = vadd.f32 %v3925_v37, %v3908_v41  ;;  %v7862_v44 = vadd.f32 %v3966_v40, %v3908_v41  ;;  %v7866_v63 = vadd.f32 %v3925_v37, %v3921_v24  ;;  %v7868_v55 = vadd.f32 %v3966_v40, %v3921_v24 }
 0x617   : > { %v3936_v32 = vand.u32 2147483647, %v7860_v36  ;;  %v3977_v43 = vand.u32 2147483647, %v7862_v44  ;;  %v3937_v30 = vand.u32 2147483647, %v7866_v63 }
 0x618   : > { %v3978_v18 = vand.u32 2147483647, %v7868_v55  ;;  %v3973_v48 = vmax.f32 %v7862_v44, 0.0  ;;  %v3974_v5 = vmax.f32 %v7868_v55, 0.0 }
 0x619   : > { %v3940_v8 = vsub.f32 0.0, %v3936_v32  ;;  %v3981_v54 = vsub.f32 0.0, %v3977_v43  ;;  %v3941_v46 = vsub.f32 0.0, %v3937_v30  ;;  %v3932_v43 = vmax.f32 %v7860_v36, 0.0 }
 0x61a   : > { %v3982_v10 = vsub.f32 0.0, %v3978_v18 }
 0x61b   : > { %v3946_v49 = vmul.f32 1.442695, %v3940_v8  ;;  %v3987_v22 = vmul.f32 1.442695, %v3981_v54  ;;  %v3948_v39 = vmul.f32 1.442695, %v3941_v46  ;;  %v4009_v8 = vstv %s4008_s23 }
 0x61c   : > { %v3910_v56 = vpop.f32.mrf.mxu2  ;;  %v3989_v42 = vmul.f32 1.442695, %v3982_v10  ;;  %v3923_v60 = vpop.f32.mrf.mxu3  ;;  %v4062_v54 = vmul.f32 %v4060_v17, %v4004_v34 }
 0x61d   : > { %5236 = vpow2.f32 %v3946_v49 }
 0x61e   : > { %5238 = vpow2.f32 %v3987_v22  ;;  %v4070_v10 = vrot.slane %v4062_v54, 1 }
 0x61f   : > { %5240 = vlog2.f32 %v3951_v14  ;;  %v4018_v14 = vsub.f32 %v7871_v53, %v4014_v29 }
 0x620   : > { %5242 = vpow2.f32 %v3948_v39 }
 0x621   : > { %5244 = vpow2.f32 %v3989_v42 }
 0x622   : > { %5246 = vrcp.f32 %v4026_v27  ;;  %v3933_v27 = vmax.f32 %v7866_v63, 0.0 }
 0x623   : > { %v5237_v50 = vpop.eup %5236  ;;  %5248 = vrcp.f32 %v4027_v57 }
 0x624   : > { %v5239_v52 = vpop.eup %5238  ;;  %v3952_v58 = vadd.f32 1.0, %v5237_v50  ;;  %v3930_v50 = vmax.f32 %v7882_v38, 0.0  ;;  %v8444_v38 = vld [vmem:[#allocation12_spill] sm:$0xff] }
 0x625   : > { %v3993_v59 = vadd.f32 1.0, %v5239_v52  ;;  %v5241_v7 = vpop.eup %5240 }
 0x626   : > { %5250 = vlog2.f32 %v3952_v58  ;;  %v5243_v31 = vpop.eup %5242  ;;  %v3957_v40 = vmul.f32 0.6931472, %v5241_v7 }
 0x627   : > { %5252 = vlog2.f32 %v3993_v59  ;;  %v5245_v33 = vpop.eup %5244  ;;  %v3953_v21 = vadd.f32 1.0, %v5243_v31  ;;  %v3971_v59 = vmax.f32 %v7884_v6, 0.0 }
 0x628   : > { %5254 = vpow2.f32 %v3942_v2  ;;  %v5247_v23 = vpop.eup %5246  ;;  %v3994_v37 = vadd.f32 1.0, %v5245_v33  ;;  %v3963_v32 = vadd.f32 %v3957_v40, %v3931_v26 }
 0x629   : > { %5256 = vpow2.f32 %v3983_v1  ;;  %v5249_v0 = vpop.eup %5248  ;;  %v4032_v9 = vrot.slane %v5247_v23, 7 }
 0x62a   : > { %5258 = vlog2.f32 %v3953_v21  ;;  %v4033_v30 = vrot.slane %v5249_v0, 7  ;;  %v4011_v45 = vmul.f32 %v4009_v8, %v3963_v32  ;;  %v8445_v21 = vperm.slane %v8444_v38, 1 }
 0x62b   : > { %5260 = vlog2.f32 %v3994_v37  ;;  %v4036_v53 = vmul.f32 %v4032_v9, %v4018_v14  ;;  %v8446_v37 = vld [vmem:[#allocation11_spill] sm:$0xff] }
 0x62c   : > { %v5251_v20 = vpop.eup %5250  ;;  %v4037_v60 = vmul.f32 %v4033_v30, %v4019_v47  ;;  %v4078_v52 = vsub.f32 %v4011_v45, %v4070_v10  ;;  %v8447_v0 = vperm.slane %v8446_v37, 5  ;;  %v8449_v54 = vperm.slane %v8446_v37, 1 }
 0x62d   : > { %v5253_v61 = vpop.eup %5252  ;;  %v3959_v41 = vmul.f32 0.6931472, %v5251_v20  ;;  %v4044_v62 = vmul.f32 %v4043_v35, %v4036_v53  ;;  %v8448_v20 = vperm.slane %v8444_v38, 5 }
 0x62e   : > { %v5255_v25 = vpop.eup %5254  ;;  %v4000_v13 = vmul.f32 0.6931472, %v5253_v61  ;;  %v4045_v63 = vmul.f32 %v4043_v35, %v4037_v60  ;;  %v4039_v34 = vmul.f32 %v4011_v45, %v8447_v0 }
 0x62f   : > { %v5257_v24 = vpop.eup %5256  ;;  %v3950_v49 = vadd.f32 1.0, %v5255_v25  ;;  %v3964_v22 = vadd.f32 %v3959_v41, %v3932_v43  ;;  %v4049_v51 = vperm.slane %v4044_v62, 7 }
 0x630   : > { %v4005_v12 = vadd.f32 %v4000_v13, %v3973_v48  ;;  %v3991_v18 = vadd.f32 1.0, %v5257_v24  ;;  %v5259_v56 = vpop.eup %5258  ;;  %v4050_v26 = vperm.slane %v4045_v63, 3  ;;  %v4051_v29 = vperm.slane %v4045_v63, 7 }
 0x631   : > { %5262 = vlog2.f32 %v3950_v49  ;;  %v5261_v36 = vpop.eup %5260  ;;  %v3961_v46 = vmul.f32 0.6931472, %v5259_v56  ;;  %v4012_v42 = vmul.f32 %v4009_v8, %v3964_v22  ;;  %v4057_v13 = vsub.f32 %v4039_v34, %v4049_v51 }
 0x632   : > { %v4063_v44 = vmul.f32 %v4060_v17, %v4005_v12  ;;  %5264 = vlog2.f32 %v3991_v18  ;;  %v4002_v39 = vmul.f32 0.6931472, %v5261_v36  ;;  %v4048_v49 = vperm.slane %v4044_v62, 3 }
 0x633   : > { %v3965_v3 = vadd.f32 %v3961_v46, %v3933_v27  ;;  %v4040_v23 = vmul.f32 %v4012_v42, %v8445_v21 }
 0x634   : > { %v4071_v57 = vrot.slane %v4063_v44, 1  ;;  %v4006_v11 = vadd.f32 %v4002_v39, %v3974_v5 }
 0x635   : > { %v4013_v55 = vmul.f32 %v4009_v8, %v3965_v3  ;;  %v4058_v32 = vsub.f32 %v4040_v23, %v4050_v26 }
 0x636   : > { %v4079_v28 = vsub.f32 %v4012_v42, %v4071_v57  ;;  %v4064_v58 = vmul.f32 %v4060_v17, %v4006_v11 }
 0x637   : > { %v5263_v19 = vpop.eup %5262  ;;  %v4041_v61 = vmul.f32 %v4013_v55, %v8448_v20 }
 0x638   : > { %v5265_v2 = vpop.eup %5264  ;;  %v3955_v1 = vmul.f32 0.6931472, %v5263_v19  ;;  %5266 = vrcp.f32 %v4079_v28  ;;  %v4072_v15 = vrot.slane %v4064_v58, 1 }
 0x639   : > { %v3996_v7 = vmul.f32 0.6931472, %v5265_v2  ;;  %5268 = vrcp.f32 %v4078_v52  ;;  %v4059_v24 = vsub.f32 %v4041_v61, %v4051_v29 }
 0x63a   : > { %v3962_v16 = vadd.f32 %v3955_v1, %v3930_v50  ;;  %v4080_v31 = vsub.f32 %v4013_v55, %v4072_v15 }
 0x63b   : > { %v4003_v33 = vadd.f32 %v3996_v7, %v3971_v59 }
 0x63c   : > { %5270 = vrcp.f32 %v4080_v31  ;;  %v4010_v40 = vmul.f32 %v4009_v8, %v3962_v16 }
 0x63d   : > { %v4061_v6 = vmul.f32 %v4060_v17, %v4003_v33 }
 0x63e   : > { %v5267_v41 = vpop.eup %5266  ;;  %v4038_v47 = vmul.f32 %v4010_v40, %v8449_v54 }
 0x63f   : > { %v4069_v25 = vrot.slane %v4061_v6, 1  ;;  %v5269_v43 = vpop.eup %5268  ;;  %v4087_v8 = vmul.f32 %v5267_v41, %v4058_v32 }
 0x640   : > { %v4086_v22 = vmul.f32 %v5269_v43, %v4057_v13  ;;  %v4056_v56 = vsub.f32 %v4038_v47, %v4048_v49 }
 0x641   : > { %v4077_v48 = vsub.f32 %v4010_v40, %v4069_v25  ;;  %v4094_v30 = vrot.slane %v4087_v8, 6 }
 0x642   : > { %v5271_v17 = vpop.eup %5270  ;;  %v4093_v14 = vrot.slane %v4086_v22, 7 }
 0x643   : > { %5272 = vrcp.f32 %v4077_v48  ;;  %v4088_v12 = vmul.f32 %v5271_v17, %v4059_v24 }
 0x645   : > { %v4095_v18 = vrot.slane %v4088_v12, 5 }
 0x647   : > { %v4099_v45 = vsel %vm4098_vm6, %v4094_v30, %v4095_v18 }
 0x649   : > { %v5273_v9 = vpop.eup %5272 }
 0x64a   : > { %v4085_v36 = vmul.f32 %v5273_v9, %v4056_v56 }
 0x64c   : > { %v4097_v44 = vsel %vm4096_vm7, %v4085_v36, %v4093_v14 }
 0x64d   : > { %v4101_v46 = vsel %vm4100_vm8, %v4097_v44, %v4099_v45 }
 0x64e   : > { %4107 = vst.msk [vmem:[%s249_s9] sm:$0xf] %vm4105_vm9, %v4101_v46 }
 0x64f   : > { %5380 = shalt.err (!%p5377_p8)
}
 0x650   : > { %4356 = dma.vmem_to_hbm [thread:$0]  (%p5505_p5), %s4122_s10, 64, %s4124_s11, %s4109_s17  }
 0x651 PF: > { %p4373_p9 = scmp.ge.s32.totalorder %s5423_s21, 2  ;;  %s4135_s22 = sand.u32 1, %s5411_s18  }
 0x652   : > { %s4136_s25 = scalar_lea.sflag [#allocation4], %s4135_s22 }
 0x653   : > { %p4366_p10 = pnand %p4373_p9, %p5509_p6 }
 0x655   : > { %p4367_p11 = pneg %p4366_p10 }
 0x657   : > { %5406 = dma.done.wait (%p4367_p11), %s4136_s25, 64  }
 0x658   : > { %5408 = vsyncadd (%p4367_p11), %s4136_s25, 4294967232  ;;  %p17_p12 = scmp.ge.s32.totalorder %s5492_s24, 4   ;;  %s8450_s18 = smov %s5415_s19 }
 0x659   : > { %s8451_s19 = smov %s5419_s20  ;;  %s8452_s20 = smov %s5503_s27 }
 0x65a   : > { %s8453_s21 = smov %s5492_s24  ;;  %19 = sbr.rel (!%p17_p12) target bundleno = 5 (0x5), region = 87 }
 0x65f   :  { %4142 = vsyncpa [#allocation3], 1 }
 0x660   :  { %4144 = vsyncpa [#allocation3 + $0x1], 1 }
 0x661   :  { %4145 = vsyncpa [#allocation4], 1 }
 0x662   :  { %4147 = vsyncpa [#allocation4 + $0x1], 1 }
 0x663   :  { %4148 = vsyncpa [#allocation5], 1 }
 0x664   :  { %4150 = vsyncpa [#allocation5 + $0x1], 1 }

</bundles_post_ra>
